<compile_context>
chip_gen: v7x
topology: tpu7x:2x2x1
jax: 0.10.0
libtpu: 0.0.40
codegen_flags: <defaults>
</compile_context>

<pallas_src>
import math

import jax
import jax.numpy as jnp
from jax import lax
from jax.experimental import pallas as pl
from jax.experimental.pallas import tpu as pltpu

# Model hyper-parameters: TransformerPlacementModel(input_dim=16, hidden_dim=128, num_heads=8)
SEQ = 8                  # sequence length
INPUT_DIM = 16           # raw feature dim
HIDDEN = 128             # d_model: multiple of 128 (lane width) and of NUM_HEADS
NUM_HEADS = 8
HEAD_DIM = HIDDEN // NUM_HEADS
DFF = 2048               # nn.TransformerEncoderLayer default dim_feedforward
NUM_LAYERS = 3
OUT_PAD = 128            # lane-padded width of the scalar output head (real out_dim = 1)
LN_EPS = 1e-5            # nn.LayerNorm default eps


def _layer_norm(x, gamma, beta):
    """f32 LayerNorm over the last dim (biased variance, eps=1e-5), matching torch."""
    mean = jnp.mean(x, axis=-1, keepdims=True)
    xc = x - mean
    var = jnp.mean(xc * xc, axis=-1, keepdims=True)
    return xc * lax.rsqrt(var + LN_EPS) * gamma + beta


def transformer_kernel(
    x_ref, w_emb_ref, b_emb_ref,
    w_qkv_ref, b_qkv_ref, w_o_ref, b_o_ref, g1_ref, be1_ref,
    w_ff1_ref, b_ff1_ref, w_ff2_ref, b_ff2_ref, g2_ref, be2_ref,
    w_out_ref, b_out_ref,
    out_ref,
    h_scratch,
):
    layer = pl.program_id(0)

    # ---- Embedding (layer 0 only): (S, Din) @ (Din, E) + b  -> resident f32 scratch.
    @pl.when(layer == 0)
    def _():
        emb = jnp.dot(x_ref[...], w_emb_ref[...],
                      preferred_element_type=jnp.float32)
        h_scratch[...] = emb + b_emb_ref[...]

    x = h_scratch[...]                                  # (S, E) f32 residual stream

    # ---- Multi-head self-attention (post-norm encoder layer, eval mode) ----
    # Fused QKV projection: bf16 MXU operands, f32 accumulation.
    qkv = jnp.dot(x.astype(jnp.bfloat16), w_qkv_ref[...],
                  preferred_element_type=jnp.float32) + b_qkv_ref[...]
    q = qkv[:, 0:HIDDEN]
    k = qkv[:, HIDDEN:2 * HIDDEN]
    v = qkv[:, 2 * HIDDEN:3 * HIDDEN]

    scale = 1.0 / math.sqrt(HEAD_DIM)
    attn = jnp.zeros_like(x)                            # (S, E) f32 accumulator
    for h in range(NUM_HEADS):                          # static unroll (8 heads)
        lo = h * HEAD_DIM
        qh = q[:, lo:lo + HEAD_DIM]
        kh = k[:, lo:lo + HEAD_DIM]
        vh = v[:, lo:lo + HEAD_DIM]
        # scores = qh @ kh^T as an NT dot_general (no explicit transpose), f32.
        s = lax.dot_general(qh, kh, (((1,), (1,)), ((), ())),
                            preferred_element_type=jnp.float32) * scale
        s = s - jnp.max(s, axis=-1, keepdims=True)
        p = jnp.exp(s)
        p = p * pl.reciprocal(jnp.sum(p, axis=-1, keepdims=True), approx=True)
        oh = jnp.dot(p, vh, preferred_element_type=jnp.float32)        # (S, hd)
        # Head-concat fused into the output projection (avoids lane concat):
        #   concat_h(oh) @ W_o  ==  sum_h  oh @ W_o[h*hd:(h+1)*hd, :]
        attn = attn + jnp.dot(oh.astype(jnp.bfloat16),
                              w_o_ref[lo:lo + HEAD_DIM, :],
                              preferred_element_type=jnp.float32)
    attn = attn + b_o_ref[...]
    x = _layer_norm(x + attn, g1_ref[...], be1_ref[...])

    # ---- Feed-forward: relu(x W1 + b1) W2 + b2, residual + LayerNorm ----
    h1 = jnp.dot(x.astype(jnp.bfloat16), w_ff1_ref[...],
                 preferred_element_type=jnp.float32) + b_ff1_ref[...]
    h1 = jnp.maximum(h1, 0.0)
    h2 = jnp.dot(h1.astype(jnp.bfloat16), w_ff2_ref[...],
                 preferred_element_type=jnp.float32) + b_ff2_ref[...]
    x = _layer_norm(x + h2, g2_ref[...], be2_ref[...])
    h_scratch[...] = x

    # ---- Output head (last layer only): Linear(E -> 1), lane-padded, + sigmoid ----
    @pl.when(layer == pl.num_programs(0) - 1)
    def _():
        logits = jnp.dot(x, w_out_ref[...],
                         preferred_element_type=jnp.float32) + b_out_ref[...]
        out_ref[...] = 1.0 / (1.0 + jnp.exp(-logits))   # lane-dense (S, 128) store


def transformer_forward(x, params):
    (w_emb, b_emb, w_qkv, b_qkv, w_o, b_o, g1, be1,
     w_ff1, b_ff1, w_ff2, b_ff2, g2, be2, w_out, b_out) = params
    s = x.shape[0]

    # bf16 copies of the big per-layer weight slabs (MXU operands, halves their DMA).
    w_qkv_bf = w_qkv.astype(jnp.bfloat16)
    w_o_bf = w_o.astype(jnp.bfloat16)
    w_ff1_bf = w_ff1.astype(jnp.bfloat16)
    w_ff2_bf = w_ff2.astype(jnp.bfloat16)

    # Lane-dense output head: zero-pad (E, 1) -> (E, 128); wrapper slices column 0.
    w_out_pad = jnp.zeros((HIDDEN, OUT_PAD), jnp.float32).at[:, :1].set(w_out)
    b_out_pad = jnp.zeros((1, OUT_PAD), jnp.float32).at[:, :1].set(b_out)

    def full2d(a):                    # small 2-D operand: one full-array block
        return pl.BlockSpec(a.shape, lambda l: (0, 0))

    def per_layer(a):                 # (L, ...) stacked params: one layer slab per step
        return pl.BlockSpec((None,) + a.shape[1:], lambda l: (l, 0, 0))

    args = (x, w_emb, b_emb,
            w_qkv_bf, b_qkv, w_o_bf, b_o, g1, be1,
            w_ff1_bf, b_ff1, w_ff2_bf, b_ff2, g2, be2,
            w_out_pad, b_out_pad)

    # Advisory cost estimate so XLA can schedule around the custom call.
    per_layer_flops = (2 * s * HIDDEN * 3 * HIDDEN        # fused QKV projection
                       + 4 * s * s * HIDDEN               # scores + attn @ V
                       + 2 * s * HIDDEN * HIDDEN          # output projection
                       + 4 * s * HIDDEN * DFF)            # feed-forward
    flops = (NUM_LAYERS * per_layer_flops
             + 2 * s * INPUT_DIM * HIDDEN + 2 * s * HIDDEN * OUT_PAD)
    transcendentals = NUM_LAYERS * (NUM_HEADS * s * s + 4 * s) + s * OUT_PAD
    bytes_accessed = (sum(int(a.size) * a.dtype.itemsize for a in args)
                      + s * OUT_PAD * 4)

    out = pl.pallas_call(
        transformer_kernel,
        out_shape=jax.ShapeDtypeStruct((s, OUT_PAD), jnp.float32),
        grid=(NUM_LAYERS,),
        in_specs=[
            full2d(x), full2d(w_emb), full2d(b_emb),
            per_layer(w_qkv_bf), per_layer(b_qkv),
            per_layer(w_o_bf), per_layer(b_o),
            per_layer(g1), per_layer(be1),
            per_layer(w_ff1_bf), per_layer(b_ff1),
            per_layer(w_ff2_bf), per_layer(b_ff2),
            per_layer(g2), per_layer(be2),
            full2d(w_out_pad), full2d(b_out_pad),
        ],
        out_specs=pl.BlockSpec((s, OUT_PAD), lambda l: (0, 0)),
        scratch_shapes=[pltpu.VMEM((s, HIDDEN), jnp.float32)],
        compiler_params=pltpu.CompilerParams(
            dimension_semantics=("arbitrary",)),          # layers are sequential
        cost_estimate=pl.CostEstimate(flops=flops,
                                      transcendentals=transcendentals,
                                      bytes_accessed=bytes_accessed),
    )(*args)
    return out[:, :1]                                      # real out_dim = 1


def init_params(key, input_dim, hidden, dff, num_layers, out_dim=1):
    """Deterministic glorot-style init matching the module's parameter shapes."""
    ks = jax.random.split(key, 2 + 4 * num_layers)
    kit = iter(ks)

    def glorot(k, shape):
        fan_in, fan_out = shape[-2], shape[-1]
        limit = math.sqrt(6.0 / (fan_in + fan_out))
        return jax.random.uniform(k, shape, jnp.float32, -limit, limit)

    w_emb = glorot(next(kit), (input_dim, hidden))
    b_emb = jnp.zeros((1, hidden), jnp.float32)

    w_qkv = jnp.stack([glorot(next(kit), (hidden, 3 * hidden)) for _ in range(num_layers)])
    w_o = jnp.stack([glorot(next(kit), (hidden, hidden)) for _ in range(num_layers)])
    w_ff1 = jnp.stack([glorot(next(kit), (hidden, dff)) for _ in range(num_layers)])
    w_ff2 = jnp.stack([glorot(next(kit), (dff, hidden)) for _ in range(num_layers)])

    b_qkv = jnp.zeros((num_layers, 1, 3 * hidden), jnp.float32)
    b_o = jnp.zeros((num_layers, 1, hidden), jnp.float32)
    b_ff1 = jnp.zeros((num_layers, 1, dff), jnp.float32)
    b_ff2 = jnp.zeros((num_layers, 1, hidden), jnp.float32)
    g1 = jnp.ones((num_layers, 1, hidden), jnp.float32)
    be1 = jnp.zeros((num_layers, 1, hidden), jnp.float32)
    g2 = jnp.ones((num_layers, 1, hidden), jnp.float32)
    be2 = jnp.zeros((num_layers, 1, hidden), jnp.float32)

    w_out = glorot(next(kit), (hidden, out_dim))
    b_out = jnp.zeros((1, out_dim), jnp.float32)

    return (w_emb, b_emb, w_qkv, b_qkv, w_o, b_o, g1, be1,
            w_ff1, b_ff1, w_ff2, b_ff2, g2, be2, w_out, b_out)


def reference_forward(x, params):
    """Pure-JAX f32 reference of the PyTorch forward (eval mode)."""
    (w_emb, b_emb, w_qkv, b_qkv, w_o, b_o, g1, be1,
     w_ff1, b_ff1, w_ff2, b_ff2, g2, be2, w_out, b_out) = params

    def layer_norm(h, g, b):
        mean = jnp.mean(h, axis=-1, keepdims=True)
        var = jnp.mean((h - mean) ** 2, axis=-1, keepdims=True)
        return (h - mean) / jnp.sqrt(var + LN_EPS) * g + b

    h = x @ w_emb + b_emb
    for l in range(NUM_LAYERS):
        qkv = h @ w_qkv[l] + b_qkv[l]
        q, k, v = jnp.split(qkv, 3, axis=-1)
        heads = []
        for i in range(NUM_HEADS):
            lo = i * HEAD_DIM
            qh, kh, vh = (q[:, lo:lo + HEAD_DIM], k[:, lo:lo + HEAD_DIM],
                          v[:, lo:lo + HEAD_DIM])
            sc = (qh @ kh.T) / math.sqrt(HEAD_DIM)
            heads.append(jax.nn.softmax(sc, axis=-1) @ vh)
        attn = jnp.concatenate(heads, axis=-1) @ w_o[l] + b_o[l]
        h = layer_norm(h + attn, g1[l], be1[l])
        ff = jnp.maximum(h @ w_ff1[l] + b_ff1[l], 0.0) @ w_ff2[l] + b_ff2[l]
        h = layer_norm(h + ff, g2[l], be2[l])
    return jax.nn.sigmoid(h @ w_out + b_out)


if __name__ == "__main__":
    key = jax.random.PRNGKey(0)
    k_x, k_p = jax.random.split(key)

    x = jax.random.normal(k_x, (SEQ, INPUT_DIM), dtype=jnp.float32)
    params = init_params(k_p, INPUT_DIM, HIDDEN, DFF, NUM_LAYERS)

    out = transformer_forward(x, params)
    jax.block_until_ready(out)

    ref = reference_forward(x, params)
    assert out.shape == (SEQ, 1)
    max_diff = float(jnp.max(jnp.abs(out - ref)))
    # bf16 MXU operands with f32 accumulation vs. the f32 reference: loose-but-meaningful
    # tolerance on the bounded sigmoid output.
    assert jnp.allclose(out, ref, atol=5e-2, rtol=0.0), f"max|diff|={max_diff}"

    print("KERNEL_OK")
</pallas_src>

<mosaic_0001>
module attributes {stable_mosaic.version = 11 : i64} {
  func.func @transformer_kernel(%arg0: i32, %arg1: memref<8x16xf32, #tpu.memory_space<vmem>>, %arg2: memref<16x128xf32, #tpu.memory_space<vmem>>, %arg3: memref<1x128xf32, #tpu.memory_space<vmem>>, %arg4: memref<1x128x384xbf16, #tpu.memory_space<vmem>>, %arg5: memref<1x1x384xf32, #tpu.memory_space<vmem>>, %arg6: memref<1x128x128xbf16, #tpu.memory_space<vmem>>, %arg7: memref<1x1x128xf32, #tpu.memory_space<vmem>>, %arg8: memref<1x1x128xf32, #tpu.memory_space<vmem>>, %arg9: memref<1x1x128xf32, #tpu.memory_space<vmem>>, %arg10: memref<1x128x2048xbf16, #tpu.memory_space<vmem>>, %arg11: memref<1x1x2048xf32, #tpu.memory_space<vmem>>, %arg12: memref<1x2048x128xbf16, #tpu.memory_space<vmem>>, %arg13: memref<1x1x128xf32, #tpu.memory_space<vmem>>, %arg14: memref<1x1x128xf32, #tpu.memory_space<vmem>>, %arg15: memref<1x1x128xf32, #tpu.memory_space<vmem>>, %arg16: memref<128x128xf32, #tpu.memory_space<vmem>>, %arg17: memref<1x128xf32, #tpu.memory_space<vmem>>, %arg18: memref<8x128xf32, #tpu.memory_space<vmem>>, %arg19: memref<8x128xf32, #tpu.memory_space<vmem>>) attributes {dimension_semantics = [#tpu.dimension_semantics<arbitrary>], iteration_bounds = array<i64: 3>, scalar_prefetch = 0 : i64, scratch_operands = 1 : i64, tpu.core_type = #tpu.core_type<tc>, window_params = [{pipeline_mode = #tpu.pipeline_mode<synchronous>, transform_indices = @transform_0, window_bounds = array<i64: 8, 16>}, {pipeline_mode = #tpu.pipeline_mode<synchronous>, transform_indices = @transform_1, window_bounds = array<i64: 16, 128>}, {pipeline_mode = #tpu.pipeline_mode<synchronous>, transform_indices = @transform_2, window_bounds = array<i64: 1, 128>}, {transform_indices = @transform_3, window_bounds = array<i64: 1, 128, 384>}, {transform_indices = @transform_4, window_bounds = array<i64: 1, 1, 384>}, {transform_indices = @transform_5, window_bounds = array<i64: 1, 128, 128>}, {transform_indices = @transform_6, window_bounds = array<i64: 1, 1, 128>}, {transform_indices = @transform_7, window_bounds = array<i64: 1, 1, 128>}, {transform_indices = @transform_8, window_bounds = array<i64: 1, 1, 128>}, {transform_indices = @transform_9, window_bounds = array<i64: 1, 128, 2048>}, {transform_indices = @transform_10, window_bounds = array<i64: 1, 1, 2048>}, {transform_indices = @transform_11, window_bounds = array<i64: 1, 2048, 128>}, {transform_indices = @transform_12, window_bounds = array<i64: 1, 1, 128>}, {transform_indices = @transform_13, window_bounds = array<i64: 1, 1, 128>}, {transform_indices = @transform_14, window_bounds = array<i64: 1, 1, 128>}, {pipeline_mode = #tpu.pipeline_mode<synchronous>, transform_indices = @transform_15, window_bounds = array<i64: 128, 128>}, {pipeline_mode = #tpu.pipeline_mode<synchronous>, transform_indices = @transform_16, window_bounds = array<i64: 1, 128>}, {pipeline_mode = #tpu.pipeline_mode<synchronous>, transform_indices = @transform_17, window_bounds = array<i64: 8, 128>}]} {
    %c0_i32 = arith.constant 0 : i32
    %0 = arith.cmpi eq, %arg0, %c0_i32 : i32
    %1 = arith.extui %0 : i1 to i32
    %c0_i32_0 = arith.constant 0 : i32
    %2 = arith.cmpi ne, %1, %c0_i32_0 : i32
    scf.if %2 {
      %c0_117 = arith.constant 0 : index
      %c0_118 = arith.constant 0 : index
      %268 = vector.load %arg1[%c0_117, %c0_118] : memref<8x16xf32, #tpu.memory_space<vmem>>, vector<8x16xf32>
      %c0_119 = arith.constant 0 : index
      %c0_120 = arith.constant 0 : index
      %269 = vector.load %arg2[%c0_119, %c0_120] : memref<16x128xf32, #tpu.memory_space<vmem>>, vector<16x128xf32>
      %cst_121 = arith.constant dense<0.000000e+00> : vector<8x128xf32>
      %270 = tpu.matmul %268, %269, %cst_121 {dimension_numbers = #tpu.dot_dimension_numbers<[1], [0], [0], [1], [0, 0, 1, 1], [], []>} : vector<8x16xf32>, vector<16x128xf32>, vector<8x128xf32> -> vector<8x128xf32>
      %c0_122 = arith.constant 0 : index
      %c0_123 = arith.constant 0 : index
      %271 = vector.load %arg3[%c0_122, %c0_123] : memref<1x128xf32, #tpu.memory_space<vmem>>, vector<1x128xf32>
      %272 = vector.broadcast %271 : vector<1x128xf32> to vector<8x128xf32>
      %273 = arith.addf %270, %272 : vector<8x128xf32>
      %c0_124 = arith.constant 0 : index
      %c0_125 = arith.constant 0 : index
      %274 = vector.load %arg19[%c0_124, %c0_125] : memref<8x128xf32, #tpu.memory_space<vmem>>, vector<8x128xf32>
      tpu.vector_store %arg19[%c0_124, %c0_125], %273 {strides = array<i32>} : memref<8x128xf32, #tpu.memory_space<vmem>>, vector<8x128xf32>,
    } else {
    }
    %c0 = arith.constant 0 : index
    %c0_1 = arith.constant 0 : index
    %3 = vector.load %arg19[%c0, %c0_1] : memref<8x128xf32, #tpu.memory_space<vmem>>, vector<8x128xf32>
    %4 = arith.truncf %3 : vector<8x128xf32> to vector<8x128xbf16>
    %c0_2 = arith.constant 0 : index
    %c0_3 = arith.constant 0 : index
    %c0_4 = arith.constant 0 : index
    %5 = vector.load %arg4[%c0_2, %c0_3, %c0_4] : memref<1x128x384xbf16, #tpu.memory_space<vmem>>, vector<1x128x384xbf16>
    %6 = vector.shape_cast %5 : vector<1x128x384xbf16> to vector<128x384xbf16>
    %cst = arith.constant dense<0.000000e+00> : vector<8x384xf32>
    %7 = tpu.matmul %4, %6, %cst {dimension_numbers = #tpu.dot_dimension_numbers<[1], [0], [0], [1], [0, 0, 1, 1], [], []>} : vector<8x128xbf16>, vector<128x384xbf16>, vector<8x384xf32> -> vector<8x384xf32>
    %c0_5 = arith.constant 0 : index
    %c0_6 = arith.constant 0 : index
    %c0_7 = arith.constant 0 : index
    %8 = vector.load %arg5[%c0_5, %c0_6, %c0_7] : memref<1x1x384xf32, #tpu.memory_space<vmem>>, vector<1x1x384xf32>
    %9 = vector.shape_cast %8 : vector<1x1x384xf32> to vector<1x384xf32>
    %10 = vector.broadcast %9 : vector<1x384xf32> to vector<8x384xf32>
    %11 = arith.addf %7, %10 : vector<8x384xf32>
    %12 = vector.extract_strided_slice %11 {offsets = [0, 0], sizes = [8, 128], strides = [1, 1]} : vector<8x384xf32> to vector<8x128xf32>
    %13 = vector.extract_strided_slice %11 {offsets = [0, 128], sizes = [8, 128], strides = [1, 1]} : vector<8x384xf32> to vector<8x128xf32>
    %14 = vector.extract_strided_slice %11 {offsets = [0, 256], sizes = [8, 128], strides = [1, 1]} : vector<8x384xf32> to vector<8x128xf32>
    %cst_8 = arith.constant 0.000000e+00 : f32
    %15 = vector.broadcast %cst_8 : f32 to vector<8x128xf32>
    %16 = vector.extract_strided_slice %12 {offsets = [0, 0], sizes = [8, 16], strides = [1, 1]} : vector<8x128xf32> to vector<8x16xf32>
    %17 = vector.extract_strided_slice %13 {offsets = [0, 0], sizes = [8, 16], strides = [1, 1]} : vector<8x128xf32> to vector<8x16xf32>
    %18 = vector.extract_strided_slice %14 {offsets = [0, 0], sizes = [8, 16], strides = [1, 1]} : vector<8x128xf32> to vector<8x16xf32>
    %cst_9 = arith.constant dense<0.000000e+00> : vector<8x8xf32>
    %19 = tpu.matmul %16, %17, %cst_9 {dimension_numbers = #tpu.dot_dimension_numbers<[1], [1], [0], [0], [0, 0, 1, 0], [], []>} : vector<8x16xf32>, vector<8x16xf32>, vector<8x8xf32> -> vector<8x8xf32>
    %cst_10 = arith.constant 2.500000e-01 : f32
    %20 = vector.broadcast %cst_10 : f32 to vector<8x8xf32>
    %21 = arith.mulf %19, %20 : vector<8x8xf32>
    %cst_11 = arith.constant dense<0xFF800000> : vector<8xf32>
    %22 = vector.multi_reduction <maximumf>, %21, %cst_11 [1] : vector<8x8xf32> to vector<8xf32>
    %23 = vector.shape_cast %22 : vector<8xf32> to vector<8x1xf32>
    %24 = vector.broadcast %23 : vector<8x1xf32> to vector<8x8xf32>
    %25 = arith.subf %21, %24 : vector<8x8xf32>
    %26 = math.exp %25 : vector<8x8xf32>
    %cst_12 = arith.constant dense<0.000000e+00> : vector<8xf32>
    %27 = vector.multi_reduction <add>, %26, %cst_12 [1] : vector<8x8xf32> to vector<8xf32>
    %28 = vector.shape_cast %27 : vector<8xf32> to vector<8x1xf32>
    %29 = tpu.reciprocal %28 {approx = true} : vector<8x1xf32> -> vector<8x1xf32>
    %30 = vector.broadcast %29 : vector<8x1xf32> to vector<8x8xf32>
    %31 = arith.mulf %26, %30 : vector<8x8xf32>
    %cst_13 = arith.constant dense<0.000000e+00> : vector<8x16xf32>
    %32 = tpu.matmul %31, %18, %cst_13 {dimension_numbers = #tpu.dot_dimension_numbers<[1], [0], [0], [1], [0, 0, 1, 1], [], []>} : vector<8x8xf32>, vector<8x16xf32>, vector<8x16xf32> -> vector<8x16xf32>
    %33 = arith.truncf %32 : vector<8x16xf32> to vector<8x16xbf16>
    %c0_14 = arith.constant 0 : index
    %c0_15 = arith.constant 0 : index
    %c0_16 = arith.constant 0 : index
    %34 = vector.load %arg6[%c0_14, %c0_15, %c0_16] : memref<1x128x128xbf16, #tpu.memory_space<vmem>>, vector<1x16x128xbf16>
    %35 = vector.shape_cast %34 : vector<1x16x128xbf16> to vector<16x128xbf16>
    %cst_17 = arith.constant dense<0.000000e+00> : vector<8x128xf32>
    %36 = tpu.matmul %33, %35, %cst_17 {dimension_numbers = #tpu.dot_dimension_numbers<[1], [0], [0], [1], [0, 0, 1, 1], [], []>} : vector<8x16xbf16>, vector<16x128xbf16>, vector<8x128xf32> -> vector<8x128xf32>
    %37 = arith.addf %15, %36 : vector<8x128xf32>
    %38 = vector.extract_strided_slice %12 {offsets = [0, 16], sizes = [8, 16], strides = [1, 1]} : vector<8x128xf32> to vector<8x16xf32>
    %39 = vector.extract_strided_slice %13 {offsets = [0, 16], sizes = [8, 16], strides = [1, 1]} : vector<8x128xf32> to vector<8x16xf32>
    %40 = vector.extract_strided_slice %14 {offsets = [0, 16], sizes = [8, 16], strides = [1, 1]} : vector<8x128xf32> to vector<8x16xf32>
    %cst_18 = arith.constant dense<0.000000e+00> : vector<8x8xf32>
    %41 = tpu.matmul %38, %39, %cst_18 {dimension_numbers = #tpu.dot_dimension_numbers<[1], [1], [0], [0], [0, 0, 1, 0], [], []>} : vector<8x16xf32>, vector<8x16xf32>, vector<8x8xf32> -> vector<8x8xf32>
    %cst_19 = arith.constant 2.500000e-01 : f32
    %42 = vector.broadcast %cst_19 : f32 to vector<8x8xf32>
    %43 = arith.mulf %41, %42 : vector<8x8xf32>
    %cst_20 = arith.constant dense<0xFF800000> : vector<8xf32>
    %44 = vector.multi_reduction <maximumf>, %43, %cst_20 [1] : vector<8x8xf32> to vector<8xf32>
    %45 = vector.shape_cast %44 : vector<8xf32> to vector<8x1xf32>
    %46 = vector.broadcast %45 : vector<8x1xf32> to vector<8x8xf32>
    %47 = arith.subf %43, %46 : vector<8x8xf32>
    %48 = math.exp %47 : vector<8x8xf32>
    %cst_21 = arith.constant dense<0.000000e+00> : vector<8xf32>
    %49 = vector.multi_reduction <add>, %48, %cst_21 [1] : vector<8x8xf32> to vector<8xf32>
    %50 = vector.shape_cast %49 : vector<8xf32> to vector<8x1xf32>
    %51 = tpu.reciprocal %50 {approx = true} : vector<8x1xf32> -> vector<8x1xf32>
    %52 = vector.broadcast %51 : vector<8x1xf32> to vector<8x8xf32>
    %53 = arith.mulf %48, %52 : vector<8x8xf32>
    %cst_22 = arith.constant dense<0.000000e+00> : vector<8x16xf32>
    %54 = tpu.matmul %53, %40, %cst_22 {dimension_numbers = #tpu.dot_dimension_numbers<[1], [0], [0], [1], [0, 0, 1, 1], [], []>} : vector<8x8xf32>, vector<8x16xf32>, vector<8x16xf32> -> vector<8x16xf32>
    %55 = arith.truncf %54 : vector<8x16xf32> to vector<8x16xbf16>
    %c0_23 = arith.constant 0 : index
    %c16 = arith.constant 16 : index
    %c0_24 = arith.constant 0 : index
    %56 = vector.load %arg6[%c0_23, %c16, %c0_24] : memref<1x128x128xbf16, #tpu.memory_space<vmem>>, vector<1x16x128xbf16>
    %57 = vector.shape_cast %56 : vector<1x16x128xbf16> to vector<16x128xbf16>
    %cst_25 = arith.constant dense<0.000000e+00> : vector<8x128xf32>
    %58 = tpu.matmul %55, %57, %cst_25 {dimension_numbers = #tpu.dot_dimension_numbers<[1], [0], [0], [1], [0, 0, 1, 1], [], []>} : vector<8x16xbf16>, vector<16x128xbf16>, vector<8x128xf32> -> vector<8x128xf32>
    %59 = arith.addf %37, %58 : vector<8x128xf32>
    %60 = vector.extract_strided_slice %12 {offsets = [0, 32], sizes = [8, 16], strides = [1, 1]} : vector<8x128xf32> to vector<8x16xf32>
    %61 = vector.extract_strided_slice %13 {offsets = [0, 32], sizes = [8, 16], strides = [1, 1]} : vector<8x128xf32> to vector<8x16xf32>
    %62 = vector.extract_strided_slice %14 {offsets = [0, 32], sizes = [8, 16], strides = [1, 1]} : vector<8x128xf32> to vector<8x16xf32>
    %cst_26 = arith.constant dense<0.000000e+00> : vector<8x8xf32>
    %63 = tpu.matmul %60, %61, %cst_26 {dimension_numbers = #tpu.dot_dimension_numbers<[1], [1], [0], [0], [0, 0, 1, 0], [], []>} : vector<8x16xf32>, vector<8x16xf32>, vector<8x8xf32> -> vector<8x8xf32>
    %cst_27 = arith.constant 2.500000e-01 : f32
    %64 = vector.broadcast %cst_27 : f32 to vector<8x8xf32>
    %65 = arith.mulf %63, %64 : vector<8x8xf32>
    %cst_28 = arith.constant dense<0xFF800000> : vector<8xf32>
    %66 = vector.multi_reduction <maximumf>, %65, %cst_28 [1] : vector<8x8xf32> to vector<8xf32>
    %67 = vector.shape_cast %66 : vector<8xf32> to vector<8x1xf32>
    %68 = vector.broadcast %67 : vector<8x1xf32> to vector<8x8xf32>
    %69 = arith.subf %65, %68 : vector<8x8xf32>
    %70 = math.exp %69 : vector<8x8xf32>
    %cst_29 = arith.constant dense<0.000000e+00> : vector<8xf32>
    %71 = vector.multi_reduction <add>, %70, %cst_29 [1] : vector<8x8xf32> to vector<8xf32>
    %72 = vector.shape_cast %71 : vector<8xf32> to vector<8x1xf32>
    %73 = tpu.reciprocal %72 {approx = true} : vector<8x1xf32> -> vector<8x1xf32>
    %74 = vector.broadcast %73 : vector<8x1xf32> to vector<8x8xf32>
    %75 = arith.mulf %70, %74 : vector<8x8xf32>
    %cst_30 = arith.constant dense<0.000000e+00> : vector<8x16xf32>
    %76 = tpu.matmul %75, %62, %cst_30 {dimension_numbers = #tpu.dot_dimension_numbers<[1], [0], [0], [1], [0, 0, 1, 1], [], []>} : vector<8x8xf32>, vector<8x16xf32>, vector<8x16xf32> -> vector<8x16xf32>
    %77 = arith.truncf %76 : vector<8x16xf32> to vector<8x16xbf16>
    %c0_31 = arith.constant 0 : index
    %c32 = arith.constant 32 : index
    %c0_32 = arith.constant 0 : index
    %78 = vector.load %arg6[%c0_31, %c32, %c0_32] : memref<1x128x128xbf16, #tpu.memory_space<vmem>>, vector<1x16x128xbf16>
    %79 = vector.shape_cast %78 : vector<1x16x128xbf16> to vector<16x128xbf16>
    %cst_33 = arith.constant dense<0.000000e+00> : vector<8x128xf32>
    %80 = tpu.matmul %77, %79, %cst_33 {dimension_numbers = #tpu.dot_dimension_numbers<[1], [0], [0], [1], [0, 0, 1, 1], [], []>} : vector<8x16xbf16>, vector<16x128xbf16>, vector<8x128xf32> -> vector<8x128xf32>
    %81 = arith.addf %59, %80 : vector<8x128xf32>
    %82 = vector.extract_strided_slice %12 {offsets = [0, 48], sizes = [8, 16], strides = [1, 1]} : vector<8x128xf32> to vector<8x16xf32>
    %83 = vector.extract_strided_slice %13 {offsets = [0, 48], sizes = [8, 16], strides = [1, 1]} : vector<8x128xf32> to vector<8x16xf32>
    %84 = vector.extract_strided_slice %14 {offsets = [0, 48], sizes = [8, 16], strides = [1, 1]} : vector<8x128xf32> to vector<8x16xf32>
    %cst_34 = arith.constant dense<0.000000e+00> : vector<8x8xf32>
    %85 = tpu.matmul %82, %83, %cst_34 {dimension_numbers = #tpu.dot_dimension_numbers<[1], [1], [0], [0], [0, 0, 1, 0], [], []>} : vector<8x16xf32>, vector<8x16xf32>, vector<8x8xf32> -> vector<8x8xf32>
    %cst_35 = arith.constant 2.500000e-01 : f32
    %86 = vector.broadcast %cst_35 : f32 to vector<8x8xf32>
    %87 = arith.mulf %85, %86 : vector<8x8xf32>
    %cst_36 = arith.constant dense<0xFF800000> : vector<8xf32>
    %88 = vector.multi_reduction <maximumf>, %87, %cst_36 [1] : vector<8x8xf32> to vector<8xf32>
    %89 = vector.shape_cast %88 : vector<8xf32> to vector<8x1xf32>
    %90 = vector.broadcast %89 : vector<8x1xf32> to vector<8x8xf32>
    %91 = arith.subf %87, %90 : vector<8x8xf32>
    %92 = math.exp %91 : vector<8x8xf32>
    %cst_37 = arith.constant dense<0.000000e+00> : vector<8xf32>
    %93 = vector.multi_reduction <add>, %92, %cst_37 [1] : vector<8x8xf32> to vector<8xf32>
    %94 = vector.shape_cast %93 : vector<8xf32> to vector<8x1xf32>
    %95 = tpu.reciprocal %94 {approx = true} : vector<8x1xf32> -> vector<8x1xf32>
    %96 = vector.broadcast %95 : vector<8x1xf32> to vector<8x8xf32>
    %97 = arith.mulf %92, %96 : vector<8x8xf32>
    %cst_38 = arith.constant dense<0.000000e+00> : vector<8x16xf32>
    %98 = tpu.matmul %97, %84, %cst_38 {dimension_numbers = #tpu.dot_dimension_numbers<[1], [0], [0], [1], [0, 0, 1, 1], [], []>} : vector<8x8xf32>, vector<8x16xf32>, vector<8x16xf32> -> vector<8x16xf32>
    %99 = arith.truncf %98 : vector<8x16xf32> to vector<8x16xbf16>
    %c0_39 = arith.constant 0 : index
    %c48 = arith.constant 48 : index
    %c0_40 = arith.constant 0 : index
    %100 = vector.load %arg6[%c0_39, %c48, %c0_40] : memref<1x128x128xbf16, #tpu.memory_space<vmem>>, vector<1x16x128xbf16>
    %101 = vector.shape_cast %100 : vector<1x16x128xbf16> to vector<16x128xbf16>
    %cst_41 = arith.constant dense<0.000000e+00> : vector<8x128xf32>
    %102 = tpu.matmul %99, %101, %cst_41 {dimension_numbers = #tpu.dot_dimension_numbers<[1], [0], [0], [1], [0, 0, 1, 1], [], []>} : vector<8x16xbf16>, vector<16x128xbf16>, vector<8x128xf32> -> vector<8x128xf32>
    %103 = arith.addf %81, %102 : vector<8x128xf32>
    %104 = vector.extract_strided_slice %12 {offsets = [0, 64], sizes = [8, 16], strides = [1, 1]} : vector<8x128xf32> to vector<8x16xf32>
    %105 = vector.extract_strided_slice %13 {offsets = [0, 64], sizes = [8, 16], strides = [1, 1]} : vector<8x128xf32> to vector<8x16xf32>
    %106 = vector.extract_strided_slice %14 {offsets = [0, 64], sizes = [8, 16], strides = [1, 1]} : vector<8x128xf32> to vector<8x16xf32>
    %cst_42 = arith.constant dense<0.000000e+00> : vector<8x8xf32>
    %107 = tpu.matmul %104, %105, %cst_42 {dimension_numbers = #tpu.dot_dimension_numbers<[1], [1], [0], [0], [0, 0, 1, 0], [], []>} : vector<8x16xf32>, vector<8x16xf32>, vector<8x8xf32> -> vector<8x8xf32>
    %cst_43 = arith.constant 2.500000e-01 : f32
    %108 = vector.broadcast %cst_43 : f32 to vector<8x8xf32>
    %109 = arith.mulf %107, %108 : vector<8x8xf32>
    %cst_44 = arith.constant dense<0xFF800000> : vector<8xf32>
    %110 = vector.multi_reduction <maximumf>, %109, %cst_44 [1] : vector<8x8xf32> to vector<8xf32>
    %111 = vector.shape_cast %110 : vector<8xf32> to vector<8x1xf32>
    %112 = vector.broadcast %111 : vector<8x1xf32> to vector<8x8xf32>
    %113 = arith.subf %109, %112 : vector<8x8xf32>
    %114 = math.exp %113 : vector<8x8xf32>
    %cst_45 = arith.constant dense<0.000000e+00> : vector<8xf32>
    %115 = vector.multi_reduction <add>, %114, %cst_45 [1] : vector<8x8xf32> to vector<8xf32>
    %116 = vector.shape_cast %115 : vector<8xf32> to vector<8x1xf32>
    %117 = tpu.reciprocal %116 {approx = true} : vector<8x1xf32> -> vector<8x1xf32>
    %118 = vector.broadcast %117 : vector<8x1xf32> to vector<8x8xf32>
    %119 = arith.mulf %114, %118 : vector<8x8xf32>
    %cst_46 = arith.constant dense<0.000000e+00> : vector<8x16xf32>
    %120 = tpu.matmul %119, %106, %cst_46 {dimension_numbers = #tpu.dot_dimension_numbers<[1], [0], [0], [1], [0, 0, 1, 1], [], []>} : vector<8x8xf32>, vector<8x16xf32>, vector<8x16xf32> -> vector<8x16xf32>
    %121 = arith.truncf %120 : vector<8x16xf32> to vector<8x16xbf16>
    %c0_47 = arith.constant 0 : index
    %c64 = arith.constant 64 : index
    %c0_48 = arith.constant 0 : index
    %122 = vector.load %arg6[%c0_47, %c64, %c0_48] : memref<1x128x128xbf16, #tpu.memory_space<vmem>>, vector<1x16x128xbf16>
    %123 = vector.shape_cast %122 : vector<1x16x128xbf16> to vector<16x128xbf16>
    %cst_49 = arith.constant dense<0.000000e+00> : vector<8x128xf32>
    %124 = tpu.matmul %121, %123, %cst_49 {dimension_numbers = #tpu.dot_dimension_numbers<[1], [0], [0], [1], [0, 0, 1, 1], [], []>} : vector<8x16xbf16>, vector<16x128xbf16>, vector<8x128xf32> -> vector<8x128xf32>
    %125 = arith.addf %103, %124 : vector<8x128xf32>
    %126 = vector.extract_strided_slice %12 {offsets = [0, 80], sizes = [8, 16], strides = [1, 1]} : vector<8x128xf32> to vector<8x16xf32>
    %127 = vector.extract_strided_slice %13 {offsets = [0, 80], sizes = [8, 16], strides = [1, 1]} : vector<8x128xf32> to vector<8x16xf32>
    %128 = vector.extract_strided_slice %14 {offsets = [0, 80], sizes = [8, 16], strides = [1, 1]} : vector<8x128xf32> to vector<8x16xf32>
    %cst_50 = arith.constant dense<0.000000e+00> : vector<8x8xf32>
    %129 = tpu.matmul %126, %127, %cst_50 {dimension_numbers = #tpu.dot_dimension_numbers<[1], [1], [0], [0], [0, 0, 1, 0], [], []>} : vector<8x16xf32>, vector<8x16xf32>, vector<8x8xf32> -> vector<8x8xf32>
    %cst_51 = arith.constant 2.500000e-01 : f32
    %130 = vector.broadcast %cst_51 : f32 to vector<8x8xf32>
    %131 = arith.mulf %129, %130 : vector<8x8xf32>
    %cst_52 = arith.constant dense<0xFF800000> : vector<8xf32>
    %132 = vector.multi_reduction <maximumf>, %131, %cst_52 [1] : vector<8x8xf32> to vector<8xf32>
    %133 = vector.shape_cast %132 : vector<8xf32> to vector<8x1xf32>
    %134 = vector.broadcast %133 : vector<8x1xf32> to vector<8x8xf32>
    %135 = arith.subf %131, %134 : vector<8x8xf32>
    %136 = math.exp %135 : vector<8x8xf32>
    %cst_53 = arith.constant dense<0.000000e+00> : vector<8xf32>
    %137 = vector.multi_reduction <add>, %136, %cst_53 [1] : vector<8x8xf32> to vector<8xf32>
    %138 = vector.shape_cast %137 : vector<8xf32> to vector<8x1xf32>
    %139 = tpu.reciprocal %138 {approx = true} : vector<8x1xf32> -> vector<8x1xf32>
    %140 = vector.broadcast %139 : vector<8x1xf32> to vector<8x8xf32>
    %141 = arith.mulf %136, %140 : vector<8x8xf32>
    %cst_54 = arith.constant dense<0.000000e+00> : vector<8x16xf32>
    %142 = tpu.matmul %141, %128, %cst_54 {dimension_numbers = #tpu.dot_dimension_numbers<[1], [0], [0], [1], [0, 0, 1, 1], [], []>} : vector<8x8xf32>, vector<8x16xf32>, vector<8x16xf32> -> vector<8x16xf32>
    %143 = arith.truncf %142 : vector<8x16xf32> to vector<8x16xbf16>
    %c0_55 = arith.constant 0 : index
    %c80 = arith.constant 80 : index
    %c0_56 = arith.constant 0 : index
    %144 = vector.load %arg6[%c0_55, %c80, %c0_56] : memref<1x128x128xbf16, #tpu.memory_space<vmem>>, vector<1x16x128xbf16>
    %145 = vector.shape_cast %144 : vector<1x16x128xbf16> to vector<16x128xbf16>
    %cst_57 = arith.constant dense<0.000000e+00> : vector<8x128xf32>
    %146 = tpu.matmul %143, %145, %cst_57 {dimension_numbers = #tpu.dot_dimension_numbers<[1], [0], [0], [1], [0, 0, 1, 1], [], []>} : vector<8x16xbf16>, vector<16x128xbf16>, vector<8x128xf32> -> vector<8x128xf32>
    %147 = arith.addf %125, %146 : vector<8x128xf32>
    %148 = vector.extract_strided_slice %12 {offsets = [0, 96], sizes = [8, 16], strides = [1, 1]} : vector<8x128xf32> to vector<8x16xf32>
    %149 = vector.extract_strided_slice %13 {offsets = [0, 96], sizes = [8, 16], strides = [1, 1]} : vector<8x128xf32> to vector<8x16xf32>
    %150 = vector.extract_strided_slice %14 {offsets = [0, 96], sizes = [8, 16], strides = [1, 1]} : vector<8x128xf32> to vector<8x16xf32>
    %cst_58 = arith.constant dense<0.000000e+00> : vector<8x8xf32>
    %151 = tpu.matmul %148, %149, %cst_58 {dimension_numbers = #tpu.dot_dimension_numbers<[1], [1], [0], [0], [0, 0, 1, 0], [], []>} : vector<8x16xf32>, vector<8x16xf32>, vector<8x8xf32> -> vector<8x8xf32>
    %cst_59 = arith.constant 2.500000e-01 : f32
    %152 = vector.broadcast %cst_59 : f32 to vector<8x8xf32>
    %153 = arith.mulf %151, %152 : vector<8x8xf32>
    %cst_60 = arith.constant dense<0xFF800000> : vector<8xf32>
    %154 = vector.multi_reduction <maximumf>, %153, %cst_60 [1] : vector<8x8xf32> to vector<8xf32>
    %155 = vector.shape_cast %154 : vector<8xf32> to vector<8x1xf32>
    %156 = vector.broadcast %155 : vector<8x1xf32> to vector<8x8xf32>
    %157 = arith.subf %153, %156 : vector<8x8xf32>
    %158 = math.exp %157 : vector<8x8xf32>
    %cst_61 = arith.constant dense<0.000000e+00> : vector<8xf32>
    %159 = vector.multi_reduction <add>, %158, %cst_61 [1] : vector<8x8xf32> to vector<8xf32>
    %160 = vector.shape_cast %159 : vector<8xf32> to vector<8x1xf32>
    %161 = tpu.reciprocal %160 {approx = true} : vector<8x1xf32> -> vector<8x1xf32>
    %162 = vector.broadcast %161 : vector<8x1xf32> to vector<8x8xf32>
    %163 = arith.mulf %158, %162 : vector<8x8xf32>
    %cst_62 = arith.constant dense<0.000000e+00> : vector<8x16xf32>
    %164 = tpu.matmul %163, %150, %cst_62 {dimension_numbers = #tpu.dot_dimension_numbers<[1], [0], [0], [1], [0, 0, 1, 1], [], []>} : vector<8x8xf32>, vector<8x16xf32>, vector<8x16xf32> -> vector<8x16xf32>
    %165 = arith.truncf %164 : vector<8x16xf32> to vector<8x16xbf16>
    %c0_63 = arith.constant 0 : index
    %c96 = arith.constant 96 : index
    %c0_64 = arith.constant 0 : index
    %166 = vector.load %arg6[%c0_63, %c96, %c0_64] : memref<1x128x128xbf16, #tpu.memory_space<vmem>>, vector<1x16x128xbf16>
    %167 = vector.shape_cast %166 : vector<1x16x128xbf16> to vector<16x128xbf16>
    %cst_65 = arith.constant dense<0.000000e+00> : vector<8x128xf32>
    %168 = tpu.matmul %165, %167, %cst_65 {dimension_numbers = #tpu.dot_dimension_numbers<[1], [0], [0], [1], [0, 0, 1, 1], [], []>} : vector<8x16xbf16>, vector<16x128xbf16>, vector<8x128xf32> -> vector<8x128xf32>
    %169 = arith.addf %147, %168 : vector<8x128xf32>
    %170 = vector.extract_strided_slice %12 {offsets = [0, 112], sizes = [8, 16], strides = [1, 1]} : vector<8x128xf32> to vector<8x16xf32>
    %171 = vector.extract_strided_slice %13 {offsets = [0, 112], sizes = [8, 16], strides = [1, 1]} : vector<8x128xf32> to vector<8x16xf32>
    %172 = vector.extract_strided_slice %14 {offsets = [0, 112], sizes = [8, 16], strides = [1, 1]} : vector<8x128xf32> to vector<8x16xf32>
    %cst_66 = arith.constant dense<0.000000e+00> : vector<8x8xf32>
    %173 = tpu.matmul %170, %171, %cst_66 {dimension_numbers = #tpu.dot_dimension_numbers<[1], [1], [0], [0], [0, 0, 1, 0], [], []>} : vector<8x16xf32>, vector<8x16xf32>, vector<8x8xf32> -> vector<8x8xf32>
    %cst_67 = arith.constant 2.500000e-01 : f32
    %174 = vector.broadcast %cst_67 : f32 to vector<8x8xf32>
    %175 = arith.mulf %173, %174 : vector<8x8xf32>
    %cst_68 = arith.constant dense<0xFF800000> : vector<8xf32>
    %176 = vector.multi_reduction <maximumf>, %175, %cst_68 [1] : vector<8x8xf32> to vector<8xf32>
    %177 = vector.shape_cast %176 : vector<8xf32> to vector<8x1xf32>
    %178 = vector.broadcast %177 : vector<8x1xf32> to vector<8x8xf32>
    %179 = arith.subf %175, %178 : vector<8x8xf32>
    %180 = math.exp %179 : vector<8x8xf32>
    %cst_69 = arith.constant dense<0.000000e+00> : vector<8xf32>
    %181 = vector.multi_reduction <add>, %180, %cst_69 [1] : vector<8x8xf32> to vector<8xf32>
    %182 = vector.shape_cast %181 : vector<8xf32> to vector<8x1xf32>
    %183 = tpu.reciprocal %182 {approx = true} : vector<8x1xf32> -> vector<8x1xf32>
    %184 = vector.broadcast %183 : vector<8x1xf32> to vector<8x8xf32>
    %185 = arith.mulf %180, %184 : vector<8x8xf32>
    %cst_70 = arith.constant dense<0.000000e+00> : vector<8x16xf32>
    %186 = tpu.matmul %185, %172, %cst_70 {dimension_numbers = #tpu.dot_dimension_numbers<[1], [0], [0], [1], [0, 0, 1, 1], [], []>} : vector<8x8xf32>, vector<8x16xf32>, vector<8x16xf32> -> vector<8x16xf32>
    %187 = arith.truncf %186 : vector<8x16xf32> to vector<8x16xbf16>
    %c0_71 = arith.constant 0 : index
    %c112 = arith.constant 112 : index
    %c0_72 = arith.constant 0 : index
    %188 = vector.load %arg6[%c0_71, %c112, %c0_72] : memref<1x128x128xbf16, #tpu.memory_space<vmem>>, vector<1x16x128xbf16>
    %189 = vector.shape_cast %188 : vector<1x16x128xbf16> to vector<16x128xbf16>
    %cst_73 = arith.constant dense<0.000000e+00> : vector<8x128xf32>
    %190 = tpu.matmul %187, %189, %cst_73 {dimension_numbers = #tpu.dot_dimension_numbers<[1], [0], [0], [1], [0, 0, 1, 1], [], []>} : vector<8x16xbf16>, vector<16x128xbf16>, vector<8x128xf32> -> vector<8x128xf32>
    %191 = arith.addf %169, %190 : vector<8x128xf32>
    %c0_74 = arith.constant 0 : index
    %c0_75 = arith.constant 0 : index
    %c0_76 = arith.constant 0 : index
    %192 = vector.load %arg7[%c0_74, %c0_75, %c0_76] : memref<1x1x128xf32, #tpu.memory_space<vmem>>, vector<1x1x128xf32>
    %193 = vector.shape_cast %192 : vector<1x1x128xf32> to vector<1x128xf32>
    %194 = vector.broadcast %193 : vector<1x128xf32> to vector<8x128xf32>
    %195 = arith.addf %191, %194 : vector<8x128xf32>
    %196 = arith.addf %3, %195 : vector<8x128xf32>
    %c0_77 = arith.constant 0 : index
    %c0_78 = arith.constant 0 : index
    %c0_79 = arith.constant 0 : index
    %197 = vector.load %arg8[%c0_77, %c0_78, %c0_79] : memref<1x1x128xf32, #tpu.memory_space<vmem>>, vector<1x1x128xf32>
    %198 = vector.shape_cast %197 : vector<1x1x128xf32> to vector<1x128xf32>
    %c0_80 = arith.constant 0 : index
    %c0_81 = arith.constant 0 : index
    %c0_82 = arith.constant 0 : index
    %199 = vector.load %arg9[%c0_80, %c0_81, %c0_82] : memref<1x1x128xf32, #tpu.memory_space<vmem>>, vector<1x1x128xf32>
    %200 = vector.shape_cast %199 : vector<1x1x128xf32> to vector<1x128xf32>
    %cst_83 = arith.constant dense<0.000000e+00> : vector<8xf32>
    %201 = vector.multi_reduction <add>, %196, %cst_83 [1] : vector<8x128xf32> to vector<8xf32>
    %202 = vector.shape_cast %201 : vector<8xf32> to vector<8x1xf32>
    %cst_84 = arith.constant 1.280000e+02 : f32
    %203 = vector.broadcast %cst_84 : f32 to vector<8x1xf32>
    %204 = arith.divf %202, %203 : vector<8x1xf32>
    %205 = vector.broadcast %204 : vector<8x1xf32> to vector<8x128xf32>
    %206 = arith.subf %196, %205 : vector<8x128xf32>
    %207 = arith.mulf %206, %206 : vector<8x128xf32>
    %cst_85 = arith.constant dense<0.000000e+00> : vector<8xf32>
    %208 = vector.multi_reduction <add>, %207, %cst_85 [1] : vector<8x128xf32> to vector<8xf32>
    %209 = vector.shape_cast %208 : vector<8xf32> to vector<8x1xf32>
    %cst_86 = arith.constant 1.280000e+02 : f32
    %210 = vector.broadcast %cst_86 : f32 to vector<8x1xf32>
    %211 = arith.divf %209, %210 : vector<8x1xf32>
    %cst_87 = arith.constant 9.99999974E-6 : f32
    %212 = vector.broadcast %cst_87 : f32 to vector<8x1xf32>
    %213 = arith.addf %211, %212 : vector<8x1xf32>
    %214 = math.rsqrt %213 : vector<8x1xf32>
    %215 = vector.broadcast %214 : vector<8x1xf32> to vector<8x128xf32>
    %216 = arith.mulf %206, %215 : vector<8x128xf32>
    %217 = vector.broadcast %198 : vector<1x128xf32> to vector<8x128xf32>
    %218 = arith.mulf %216, %217 : vector<8x128xf32>
    %219 = vector.broadcast %200 : vector<1x128xf32> to vector<8x128xf32>
    %220 = arith.addf %218, %219 : vector<8x128xf32>
    %221 = arith.truncf %220 : vector<8x128xf32> to vector<8x128xbf16>
    %c0_88 = arith.constant 0 : index
    %c0_89 = arith.constant 0 : index
    %c0_90 = arith.constant 0 : index
    %222 = vector.load %arg10[%c0_88, %c0_89, %c0_90] : memref<1x128x2048xbf16, #tpu.memory_space<vmem>>, vector<1x128x2048xbf16>
    %223 = vector.shape_cast %222 : vector<1x128x2048xbf16> to vector<128x2048xbf16>
    %cst_91 = arith.constant dense<0.000000e+00> : vector<8x2048xf32>
    %224 = tpu.matmul %221, %223, %cst_91 {dimension_numbers = #tpu.dot_dimension_numbers<[1], [0], [0], [1], [0, 0, 1, 1], [], []>} : vector<8x128xbf16>, vector<128x2048xbf16>, vector<8x2048xf32> -> vector<8x2048xf32>
    %c0_92 = arith.constant 0 : index
    %c0_93 = arith.constant 0 : index
    %c0_94 = arith.constant 0 : index
    %225 = vector.load %arg11[%c0_92, %c0_93, %c0_94] : memref<1x1x2048xf32, #tpu.memory_space<vmem>>, vector<1x1x2048xf32>
    %226 = vector.shape_cast %225 : vector<1x1x2048xf32> to vector<1x2048xf32>
    %227 = vector.broadcast %226 : vector<1x2048xf32> to vector<8x2048xf32>
    %228 = arith.addf %224, %227 : vector<8x2048xf32>
    %cst_95 = arith.constant 0.000000e+00 : f32
    %229 = vector.broadcast %cst_95 : f32 to vector<8x2048xf32>
    %230 = arith.maximumf %228, %229 : vector<8x2048xf32>
    %231 = arith.truncf %230 : vector<8x2048xf32> to vector<8x2048xbf16>
    %c0_96 = arith.constant 0 : index
    %c0_97 = arith.constant 0 : index
    %c0_98 = arith.constant 0 : index
    %232 = vector.load %arg12[%c0_96, %c0_97, %c0_98] : memref<1x2048x128xbf16, #tpu.memory_space<vmem>>, vector<1x2048x128xbf16>
    %233 = vector.shape_cast %232 : vector<1x2048x128xbf16> to vector<2048x128xbf16>
    %cst_99 = arith.constant dense<0.000000e+00> : vector<8x128xf32>
    %234 = tpu.matmul %231, %233, %cst_99 {dimension_numbers = #tpu.dot_dimension_numbers<[1], [0], [0], [1], [0, 0, 1, 1], [], []>} : vector<8x2048xbf16>, vector<2048x128xbf16>, vector<8x128xf32> -> vector<8x128xf32>
    %c0_100 = arith.constant 0 : index
    %c0_101 = arith.constant 0 : index
    %c0_102 = arith.constant 0 : index
    %235 = vector.load %arg13[%c0_100, %c0_101, %c0_102] : memref<1x1x128xf32, #tpu.memory_space<vmem>>, vector<1x1x128xf32>
    %236 = vector.shape_cast %235 : vector<1x1x128xf32> to vector<1x128xf32>
    %237 = vector.broadcast %236 : vector<1x128xf32> to vector<8x128xf32>
    %238 = arith.addf %234, %237 : vector<8x128xf32>
    %239 = arith.addf %220, %238 : vector<8x128xf32>
    %c0_103 = arith.constant 0 : index
    %c0_104 = arith.constant 0 : index
    %c0_105 = arith.constant 0 : index
    %240 = vector.load %arg14[%c0_103, %c0_104, %c0_105] : memref<1x1x128xf32, #tpu.memory_space<vmem>>, vector<1x1x128xf32>
    %241 = vector.shape_cast %240 : vector<1x1x128xf32> to vector<1x128xf32>
    %c0_106 = arith.constant 0 : index
    %c0_107 = arith.constant 0 : index
    %c0_108 = arith.constant 0 : index
    %242 = vector.load %arg15[%c0_106, %c0_107, %c0_108] : memref<1x1x128xf32, #tpu.memory_space<vmem>>, vector<1x1x128xf32>
    %243 = vector.shape_cast %242 : vector<1x1x128xf32> to vector<1x128xf32>
    %cst_109 = arith.constant dense<0.000000e+00> : vector<8xf32>
    %244 = vector.multi_reduction <add>, %239, %cst_109 [1] : vector<8x128xf32> to vector<8xf32>
    %245 = vector.shape_cast %244 : vector<8xf32> to vector<8x1xf32>
    %cst_110 = arith.constant 1.280000e+02 : f32
    %246 = vector.broadcast %cst_110 : f32 to vector<8x1xf32>
    %247 = arith.divf %245, %246 : vector<8x1xf32>
    %248 = vector.broadcast %247 : vector<8x1xf32> to vector<8x128xf32>
    %249 = arith.subf %239, %248 : vector<8x128xf32>
    %250 = arith.mulf %249, %249 : vector<8x128xf32>
    %cst_111 = arith.constant dense<0.000000e+00> : vector<8xf32>
    %251 = vector.multi_reduction <add>, %250, %cst_111 [1] : vector<8x128xf32> to vector<8xf32>
    %252 = vector.shape_cast %251 : vector<8xf32> to vector<8x1xf32>
    %cst_112 = arith.constant 1.280000e+02 : f32
    %253 = vector.broadcast %cst_112 : f32 to vector<8x1xf32>
    %254 = arith.divf %252, %253 : vector<8x1xf32>
    %cst_113 = arith.constant 9.99999974E-6 : f32
    %255 = vector.broadcast %cst_113 : f32 to vector<8x1xf32>
    %256 = arith.addf %254, %255 : vector<8x1xf32>
    %257 = math.rsqrt %256 : vector<8x1xf32>
    %258 = vector.broadcast %257 : vector<8x1xf32> to vector<8x128xf32>
    %259 = arith.mulf %249, %258 : vector<8x128xf32>
    %260 = vector.broadcast %241 : vector<1x128xf32> to vector<8x128xf32>
    %261 = arith.mulf %259, %260 : vector<8x128xf32>
    %262 = vector.broadcast %243 : vector<1x128xf32> to vector<8x128xf32>
    %263 = arith.addf %261, %262 : vector<8x128xf32>
    %c0_114 = arith.constant 0 : index
    %c0_115 = arith.constant 0 : index
    %264 = vector.load %arg19[%c0_114, %c0_115] : memref<8x128xf32, #tpu.memory_space<vmem>>, vector<8x128xf32>
    tpu.vector_store %arg19[%c0_114, %c0_115], %263 {strides = array<i32>} : memref<8x128xf32, #tpu.memory_space<vmem>>, vector<8x128xf32>,
    %c2_i32 = arith.constant 2 : i32
    %265 = arith.cmpi eq, %arg0, %c2_i32 : i32
    %266 = arith.extui %265 : i1 to i32
    %c0_i32_116 = arith.constant 0 : i32
    %267 = arith.cmpi ne, %266, %c0_i32_116 : i32
    scf.if %267 {
      %c0_117 = arith.constant 0 : index
      %c0_118 = arith.constant 0 : index
      %268 = vector.load %arg16[%c0_117, %c0_118] : memref<128x128xf32, #tpu.memory_space<vmem>>, vector<128x128xf32>
      %cst_119 = arith.constant dense<0.000000e+00> : vector<8x128xf32>
      %269 = tpu.matmul %263, %268, %cst_119 {dimension_numbers = #tpu.dot_dimension_numbers<[1], [0], [0], [1], [0, 0, 1, 1], [], []>} : vector<8x128xf32>, vector<128x128xf32>, vector<8x128xf32> -> vector<8x128xf32>
      %c0_120 = arith.constant 0 : index
      %c0_121 = arith.constant 0 : index
      %270 = vector.load %arg17[%c0_120, %c0_121] : memref<1x128xf32, #tpu.memory_space<vmem>>, vector<1x128xf32>
      %271 = vector.broadcast %270 : vector<1x128xf32> to vector<8x128xf32>
      %272 = arith.addf %269, %271 : vector<8x128xf32>
      %cst_122 = arith.constant 0.000000e+00 : f32
      %273 = vector.broadcast %cst_122 : f32 to vector<8x128xf32>
      %274 = arith.subf %273, %272 : vector<8x128xf32>
      %275 = math.exp %274 : vector<8x128xf32>
      %cst_123 = arith.constant 1.000000e+00 : f32
      %276 = vector.broadcast %cst_123 : f32 to vector<8x128xf32>
      %277 = arith.addf %276, %275 : vector<8x128xf32>
      %cst_124 = arith.constant 1.000000e+00 : f32
      %278 = vector.broadcast %cst_124 : f32 to vector<8x128xf32>
      %279 = arith.divf %278, %277 : vector<8x128xf32>
      %c0_125 = arith.constant 0 : index
      %c0_126 = arith.constant 0 : index
      %280 = vector.load %arg18[%c0_125, %c0_126] : memref<8x128xf32, #tpu.memory_space<vmem>>, vector<8x128xf32>
      tpu.vector_store %arg18[%c0_125, %c0_126], %279 {strides = array<i32>} : memref<8x128xf32, #tpu.memory_space<vmem>>, vector<8x128xf32>,
    } else {
    }
    return
  }
  func.func @transform_0(%arg0: i32) -> (i32, i32) {
    %c0_i32 = arith.constant 0 : i32
    %c0_i32_0 = arith.constant 0 : i32
    %c0_i32_1 = arith.constant 0 : i32
    return %c0_i32, %c0_i32_0 : i32, i32
  }
  func.func @transform_1(%arg0: i32) -> (i32, i32) {
    %c0_i32 = arith.constant 0 : i32
    %c0_i32_0 = arith.constant 0 : i32
    %c0_i32_1 = arith.constant 0 : i32
    return %c0_i32, %c0_i32_0 : i32, i32
  }
  func.func @transform_2(%arg0: i32) -> (i32, i32) {
    %c0_i32 = arith.constant 0 : i32
    %c0_i32_0 = arith.constant 0 : i32
    %c0_i32_1 = arith.constant 0 : i32
    return %c0_i32, %c0_i32_0 : i32, i32
  }
  func.func @transform_3(%arg0: i32) -> (i32, i32, i32) {
    %c0_i32 = arith.constant 0 : i32
    %c0_i32_0 = arith.constant 0 : i32
    %c0_i32_1 = arith.constant 0 : i32
    return %arg0, %c0_i32, %c0_i32_0 : i32, i32, i32
  }
  func.func @transform_4(%arg0: i32) -> (i32, i32, i32) {
    %c0_i32 = arith.constant 0 : i32
    %c0_i32_0 = arith.constant 0 : i32
    %c0_i32_1 = arith.constant 0 : i32
    return %arg0, %c0_i32, %c0_i32_0 : i32, i32, i32
  }
  func.func @transform_5(%arg0: i32) -> (i32, i32, i32) {
    %c0_i32 = arith.constant 0 : i32
    %c0_i32_0 = arith.constant 0 : i32
    %c0_i32_1 = arith.constant 0 : i32
    return %arg0, %c0_i32, %c0_i32_0 : i32, i32, i32
  }
  func.func @transform_6(%arg0: i32) -> (i32, i32, i32) {
    %c0_i32 = arith.constant 0 : i32
    %c0_i32_0 = arith.constant 0 : i32
    %c0_i32_1 = arith.constant 0 : i32
    return %arg0, %c0_i32, %c0_i32_0 : i32, i32, i32
  }
  func.func @transform_7(%arg0: i32) -> (i32, i32, i32) {
    %c0_i32 = arith.constant 0 : i32
    %c0_i32_0 = arith.constant 0 : i32
    %c0_i32_1 = arith.constant 0 : i32
    return %arg0, %c0_i32, %c0_i32_0 : i32, i32, i32
  }
  func.func @transform_8(%arg0: i32) -> (i32, i32, i32) {
    %c0_i32 = arith.constant 0 : i32
    %c0_i32_0 = arith.constant 0 : i32
    %c0_i32_1 = arith.constant 0 : i32
    return %arg0, %c0_i32, %c0_i32_0 : i32, i32, i32
  }
  func.func @transform_9(%arg0: i32) -> (i32, i32, i32) {
    %c0_i32 = arith.constant 0 : i32
    %c0_i32_0 = arith.constant 0 : i32
    %c0_i32_1 = arith.constant 0 : i32
    return %arg0, %c0_i32, %c0_i32_0 : i32, i32, i32
  }
  func.func @transform_10(%arg0: i32) -> (i32, i32, i32) {
    %c0_i32 = arith.constant 0 : i32
    %c0_i32_0 = arith.constant 0 : i32
    %c0_i32_1 = arith.constant 0 : i32
    return %arg0, %c0_i32, %c0_i32_0 : i32, i32, i32
  }
  func.func @transform_11(%arg0: i32) -> (i32, i32, i32) {
    %c0_i32 = arith.constant 0 : i32
    %c0_i32_0 = arith.constant 0 : i32
    %c0_i32_1 = arith.constant 0 : i32
    return %arg0, %c0_i32, %c0_i32_0 : i32, i32, i32
  }
  func.func @transform_12(%arg0: i32) -> (i32, i32, i32) {
    %c0_i32 = arith.constant 0 : i32
    %c0_i32_0 = arith.constant 0 : i32
    %c0_i32_1 = arith.constant 0 : i32
    return %arg0, %c0_i32, %c0_i32_0 : i32, i32, i32
  }
  func.func @transform_13(%arg0: i32) -> (i32, i32, i32) {
    %c0_i32 = arith.constant 0 : i32
    %c0_i32_0 = arith.constant 0 : i32
    %c0_i32_1 = arith.constant 0 : i32
    return %arg0, %c0_i32, %c0_i32_0 : i32, i32, i32
  }
  func.func @transform_14(%arg0: i32) -> (i32, i32, i32) {
    %c0_i32 = arith.constant 0 : i32
    %c0_i32_0 = arith.constant 0 : i32
    %c0_i32_1 = arith.constant 0 : i32
    return %arg0, %c0_i32, %c0_i32_0 : i32, i32, i32
  }
  func.func @transform_15(%arg0: i32) -> (i32, i32) {
    %c0_i32 = arith.constant 0 : i32
    %c0_i32_0 = arith.constant 0 : i32
    %c0_i32_1 = arith.constant 0 : i32
    return %c0_i32, %c0_i32_0 : i32, i32
  }
  func.func @transform_16(%arg0: i32) -> (i32, i32) {
    %c0_i32 = arith.constant 0 : i32
    %c0_i32_0 = arith.constant 0 : i32
    %c0_i32_1 = arith.constant 0 : i32
    return %c0_i32, %c0_i32_0 : i32, i32
  }
  func.func @transform_17(%arg0: i32) -> (i32, i32) {
    %c0_i32 = arith.constant 0 : i32
    %c0_i32_0 = arith.constant 0 : i32
    %c0_i32_1 = arith.constant 0 : i32
    return %c0_i32, %c0_i32_0 : i32, i32
  }
}

</mosaic_0001>

<bundles_post_ra>
// kernel: tpu_custom_call.1
= control target key start
LH: loop header
LB: loop body
LE: loop exit
PB: predicated region body
PF: predicated region fallthrough
CT: control target
= control target key end

     0   :  { %s9361_s0 = inlined_call_operand.hbm [shape: f32[8,16], index: 0, kind: input, shape index: {}]   ;;  %s9362_s1 = inlined_call_operand.hbm [shape: f32[16,128], index: 1, kind: input, shape index: {}]   ;;  %s9363_s2 = inlined_call_operand.hbm [shape: f32[1,128], index: 2, kind: input, shape index: {}]   ;;  %s9364_s3 = inlined_call_operand.hbm [shape: bf16[3,128,384], index: 3, kind: input, shape index: {}]   ;;  %s9365_s4 = inlined_call_operand.hbm [shape: f32[3,1,384], index: 4, kind: input, shape index: {}]   ;;  %s9366_s5 = inlined_call_operand.hbm [shape: bf16[3,128,128], index: 5, kind: input, shape index: {}]   ;;  %s9367_s6 = inlined_call_operand.hbm [shape: f32[3,1,128], index: 6, kind: input, shape index: {}]   ;;  %s9368_s7 = inlined_call_operand.hbm [shape: f32[3,1,128], index: 7, kind: input, shape index: {}]   ;;  %s9369_s8 = inlined_call_operand.hbm [shape: f32[3,1,128], index: 8, kind: input, shape index: {}]   ;;  %s9370_s9 = inlined_call_operand.hbm [shape: bf16[3,128,2048], index: 9, kind: input, shape index: {}]   ;;  %s9371_s10 = inlined_call_operand.hbm [shape: f32[3,1,2048], index: 10, kind: input, shape index: {}]   ;;  %s9372_s11 = inlined_call_operand.hbm [shape: bf16[3,2048,128], index: 11, kind: input, shape index: {}]   ;;  %s9373_s12 = inlined_call_operand.hbm [shape: f32[3,1,128], index: 12, kind: input, shape index: {}]   ;;  %s9374_s13 = inlined_call_operand.hbm [shape: f32[3,1,128], index: 13, kind: input, shape index: {}]   ;;  %s9375_s14 = inlined_call_operand.hbm [shape: f32[3,1,128], index: 14, kind: input, shape index: {}]   ;;  %s9376_s15 = inlined_call_operand.hbm [shape: f32[128,128], index: 15, kind: input, shape index: {}]   ;;  %s9377_s16 = inlined_call_operand.hbm [shape: f32[1,128], index: 16, kind: input, shape index: {}]   ;;  %s9378_s17 = inlined_call_operand.hbm [shape: f32[8,128], index: 17, kind: output, shape index: {}]  }
   0x1   :  { %9415 = sst [smem:[#allocation48_spill]] %s9361_s0 }
   0x2   :  { %9416 = sst [smem:[#allocation49_spill]] %s9362_s1 }
   0x3   :  { %9417 = sst [smem:[#allocation50_spill]] %s9364_s3 }
   0x4   :  { %9418 = sst [smem:[#allocation51_spill]] %s9366_s5 }
   0x5   :  { %9419 = sst [smem:[#allocation52_spill]] %s9367_s6 }
   0x6   :  { %9420 = sst [smem:[#allocation53_spill]] %s9369_s8 }
   0x7   :  { %9421 = sst [smem:[#allocation54_spill]] %s9371_s10 }
   0x8   :  { %9422 = sst [smem:[#allocation55_spill]] %s9373_s12 }
   0x9   :  { %9423 = sst [smem:[#allocation56_spill]] %s9375_s14 }
   0xa   :  { %9424 = sst [smem:[#allocation57_spill]] %s9378_s17 }
   0xb   :  { %22 = vsyncpa [#allocation4], 0 }
   0xc   :  { %23 = vsyncpa [#allocation7], 0 }
   0xd   :  { %24 = vsyncpa [#allocation10], 0 }
   0xe   :  { %26 = vsyncpa [#allocation10 + $0x1], 0 }
   0xf   :  { %27 = vsyncpa [#allocation13], 0 }
  0x10   :  { %29 = vsyncpa [#allocation13 + $0x1], 0 }
  0x11   :  { %30 = vsyncpa [#allocation16], 0 }
  0x12   :  { %32 = vsyncpa [#allocation16 + $0x1], 0 }
  0x13   :  { %33 = vsyncpa [#allocation19], 0 }
  0x14   :  { %35 = vsyncpa [#allocation19 + $0x1], 0 }
  0x15   :  { %36 = vsyncpa [#allocation22], 0 }
  0x16   :  { %38 = vsyncpa [#allocation22 + $0x1], 0 }
  0x17   :  { %39 = vsyncpa [#allocation25], 0 }
  0x18   :  { %41 = vsyncpa [#allocation25 + $0x1], 0 }
  0x19   :  { %42 = vsyncpa [#allocation28], 0 }
  0x1a   :  { %43 = vsyncpa [#allocation5], 0  ;;  %s8126_s24 = smov 0   ;;  %s8128_s25 = smov 0  }
  0x1b   :  { %s8130_s26 = smov 0   ;;  %s8132_s27 = smov 0  }
  0x1c LB: > { %9425 = sst [smem:[#allocation41_spill]] %s7985_s25  ;;  %s8145_s28 = sadd.s32 4294967295, %s7993_s27   ;;  %s7993_s27 = sphi %s8132_s27, %s9487_s27   ;;  %s7989_s26 = sphi %s8130_s26, %s9490_s26   ;;  %s7985_s25 = sphi %s8128_s25, %s9489_s25   ;;  %s7981_s24 = sphi %s8126_s24, %s9488_s24  }
  0x1d   : > { %9426 = sst [smem:[#allocation42_spill]] %s7989_s26  ;;  %s8148_s29 = sadd.s32 1, %s7993_s27  }
  0x1e   : > { %9427 = sst [smem:[#allocation43_spill]] %s8145_s28  ;;  %s116_s0 = ssub.s32 %s7993_s27, %s8148_s29 }
  0x1f   : > { %9428 = sst [smem:[#allocation44_spill]] %s8148_s29  ;;  %s119_s30 = sadd.s32 1, %s7989_s26 }
  0x20   : > { %p117_p0 = scmp.eq.s32.totalorder %s116_s0, 0  ;;  %p126_p1 = scmp.ne.s32.totalorder %s7989_s26, %s7985_s25 }
  0x21   : > { %p127_p2 = scmp.eq.s32.totalorder %s7993_s27, 0  ;;  %p132_p3 = scmp.ne.s32.totalorder %s7985_s25, %s7981_s24 }
  0x22   : > { %s8158_s18 = scalar_select %p117_p0, %s7989_s26, %s119_s30  }
  0x23   : > { %p8160_p4 = por %p127_p2, %p126_p1  ;;  %p9388_p5 = scmp.eq.s32.totalorder %s8145_s28, 0 }
  0x24   : > { %9429 = sst [smem:[#allocation45_spill]] %s8158_s18  ;;  %p6161_p6 = scmp.ge.s32.totalorder %s7993_s27, 1 }
  0x25   : > { %p492_p7 = scmp.lt.s32.totalorder %s7993_s27, 4  ;;  %p8169_p8 = por %p9388_p5, %p132_p3 }
  0x26   : > { %s7995_s21 = smov [#allocation6]   ;;  %p7119_p13 = scmp.lt.s32.totalorder %s7993_s27, 3 }
  0x27   : > { %s9431_s1 = scalar_select %p8169_p8, 1, 0 }
  0x28   : > { %p8174_p10 = pnand %p6161_p6, %p492_p7  ;;  %s515_s22 = sshll.u32 %s7995_s21, 4  ;;  %s516_s22 = int_to_ptr.vmem [resolvable:$true] %s515_s22 }
  0x29   : > { %9432 = sst [smem:[#allocation46_spill]] %s9431_s1  ;;  %s8188_s24 = sand.u32 1, %s7989_s26  }
  0x2a   : > { %s9433_s20 = scalar_select %p8174_p10, 1, 0 }
  0x2b   : > { %p7061_p11 = pneg %p8174_p10  ;;  %p8192_p0 = pnand %p7119_p13, %p8160_p4 }
  0x2c   : > { %9434 = sst [smem:[#allocation47_spill]] %s9433_s20  ;;  %s9437_s21 = sld [smem:[#allocation49_spill]] }
  0x2d   : > { %p8182_p12 = pnand %p7061_p11, %p9388_p5 }
  0x2e   : > { %s9436_s0 = scalar_select %p8192_p0, 1, 0 }
  0x2f   : > { %s9435_s23 = scalar_select %p8182_p12, 1, 0 }
  0x30   : > { %p8204_p2 = pneg %p8182_p12 }
  0x32   : > { %s7397_s29 = scalar_lea.hbm %s9437_s21, 256 }
  0x33   : > { %p7398_p1 = scmp.ne.s32.totalorder %s9437_s21, %s7397_s29  ;;  %p7404_p6 = scmp.lt.u32.totalorder %s7397_s29, %s9437_s21 }
  0x34   : > { %s9438_s25 = scalar_select %p8204_p2, 1, 0 }
  0x35   : > { %p7400_p3 = pnand %p8204_p2, %p7398_p1 }
  0x37   : > { %p7401_p4 = pneg %p7400_p3 }
  0x39   : > { %p7406_p7 = pnand %p7404_p6, %p7401_p4 }
  0x3b   : > { %7409 = shalt.err (!%p7406_p7)
}
  0x3c   : > { %s7410_s18 = scalar_lea.vmem %s516_s22, 256  ;;  %p7418_p5 = scmp.lt.s32.totalorder %s516_s22, %s516_s22 }
  0x3d   : > { %p7411_p11 = scmp.ne.s32.totalorder %s516_s22, %s7410_s18  ;;  %p7419_p8 = scmp.lt.s32.totalorder %s7410_s18, %s7410_s18 }
  0x3f   : > { %p7413_p13 = pnand %p7411_p11, %p8204_p2  ;;  %p7420_p10 = por %p7419_p8, %p7418_p5 }
  0x41   : > { %p7414_p9 = pneg %p7413_p13 }
  0x43   : > { %p7421_p0 = pnand %p7420_p10, %p7414_p9 }
  0x45   : > { %7424 = shalt.err (!%p7421_p0)
}
  0x46   : > { %s7996_s17 = smov 128   ;;  %s7997_s1 = smov 8  }
  0x47   : > { %7067 = dma.hbm_to_vmem [thread:$0]  (!%p8182_p12), %s9437_s21, 256, %s516_s22, [#allocation7], %s7996_s17, %s7996_s17, %s7997_s1  }
  0x48   : > { %s7998_s30 = smov [#allocation27]   ;;  %s8221_s28 = sand.u32 1, %s7993_s27  }
  0x49   : > { %s539_s19 = sshll.u32 %s7998_s30, 4  ;;  %s7425_s14 = scalar_lea.hbm %s9376_s15, 2048  ;;  %s540_s19 = int_to_ptr.vmem [resolvable:$true] %s539_s19 }
  0x4a   : > { %p7426_p5 = scmp.ne.s32.totalorder %s9376_s15, %s7425_s14  ;;  %p7432_p10 = scmp.lt.u32.totalorder %s7425_s14, %s9376_s15 }
  0x4c   : > { %p7428_p8 = pnand %p7426_p5, %p8204_p2 }
  0x4e   : > { %p7429_p9 = pneg %p7428_p8 }
  0x50   : > { %p7434_p0 = pnand %p7432_p10, %p7429_p9 }
  0x52   : > { %7437 = shalt.err (!%p7434_p0)
}
  0x53   : > { %s7438_s22 = scalar_lea.vmem %s540_s19, 2048  ;;  %p7446_p6 = scmp.lt.s32.totalorder %s540_s19, %s540_s19 }
  0x54   : > { %p7439_p1 = scmp.ne.s32.totalorder %s540_s19, %s7438_s22  ;;  %p7447_p7 = scmp.lt.s32.totalorder %s7438_s22, %s7438_s22 }
  0x56   : > { %p7441_p3 = pnand %p7439_p1, %p8204_p2  ;;  %p7448_p11 = por %p7447_p7, %p7446_p6 }
  0x58   : > { %p7442_p4 = pneg %p7441_p3 }
  0x5a   : > { %p7449_p13 = pnand %p7448_p11, %p7442_p4 }
  0x5c   : > { %7452 = shalt.err (!%p7449_p13)
}
  0x5d   : > { %7073 = dma.hbm_to_vmem [thread:$0]  (!%p8182_p12), %s9376_s15, 2048, %s540_s19, [#allocation28], %s7996_s17, %s7996_s17, %s7997_s1  }
  0x5e   : > { %s7007_s6 = smul.u32 192, %s8188_s24  ;;  %s9439_s3 = sld [smem:[#allocation50_spill]] }
  0x5f   : > { %s7008_s8 = smul.u32 3072, %s7993_s27  ;;  %s9405_s18 = scalar_lea.sflag [#allocation10], %s8221_s28 }
  0x60   : > { %s568_s29 = scalar_lea.vmem [#allocation9], %s7007_s6  ;;  %p9440_p8 = scmp.ne.s32.totalorder %s9436_s0, 0 }
  0x61   : > { %s575_s30 = sshll.u32 %s568_s29, 4  ;;  %s8248_s30 = int_to_ptr.vmem [resolvable:$true] %s575_s30 }
  0x62   : > { %p8255_p9 = pneg %p9440_p8 }
  0x64   : > { %s8246_s26 = scalar_lea.hbm %s9439_s3, %s7008_s8  ;;  %s7458_s10 = scalar_lea.hbm %s9439_s3, 9216 }
  0x65   : > { %s7453_s22 = scalar_lea.hbm %s8246_s26, 3072  ;;  %p7459_p1 = scmp.lt.u32.totalorder %s8246_s26, %s9439_s3 }
  0x66   : > { %p7454_p5 = scmp.ne.s32.totalorder %s8246_s26, %s7453_s22  ;;  %p7460_p3 = scmp.lt.u32.totalorder %s7458_s10, %s7453_s22 }
  0x67   : > { %s9441_s17 = scalar_select %p8255_p9, 1, 0 }
  0x68   : > { %p7456_p10 = pnand %p8255_p9, %p7454_p5  ;;  %p7461_p4 = por %p7460_p3, %p7459_p1 }
  0x69   : > { %p7462_p6 = scmp.lt.u32.totalorder %s7453_s22, %s8246_s26 }
  0x6a   : > { %p7457_p0 = pneg %p7456_p10 }
  0x6b   : > { %p7463_p7 = por %p7462_p6, %p7461_p4 }
  0x6d   : > { %p7464_p11 = pnand %p7463_p7, %p7457_p0 }
  0x6f   : > { %7467 = shalt.err (!%p7464_p11)
}
  0x70   : > { %s7468_s8 = scalar_lea.vmem %s8248_s30, 3072  ;;  %s7999_s14 = smov [#allocation9]  }
  0x71   : > { %p7469_p13 = scmp.ne.s32.totalorder %s8248_s30, %s7468_s8  ;;  %s7473_s20 = sshll.u32 %s7999_s14, 4  ;;  %s7474_s20 = int_to_ptr.vmem [resolvable:$false] %s7473_s20 }
  0x72   : > { %s7475_s29 = scalar_lea.vmem %s7474_s20, 6144  ;;  %p7476_p12 = scmp.lt.s32.totalorder %s8248_s30, %s7474_s20 }
  0x73   : > { %p7471_p5 = pnand %p7469_p13, %p8255_p9  ;;  %p7477_p2 = scmp.lt.s32.totalorder %s7475_s29, %s7468_s8 }
  0x75   : > { %p7472_p10 = pneg %p7471_p5  ;;  %p7478_p1 = por %p7477_p2, %p7476_p12 }
  0x77   : > { %p7479_p3 = pnand %p7478_p1, %p7472_p10 }
  0x79   : > { %7482 = shalt.err (!%p7479_p3)
}
  0x7a   : > { %s8000_s22 = smov 192   ;;  %s8001_s1 = smov 12  }
  0x7b   : > { %7080 = dma.hbm_to_vmem [thread:$0]  (!%p9440_p8), %s8246_s26, 3072, %s8248_s30, %s9405_s18, %s8000_s22, %s8000_s22, %s8001_s1  }
  0x7c   : > { %s6170_s19 = sshll.u32 %s8188_s24, 6  ;;  %s6533_s10 = sshll.u32 %s7993_s27, 10 }
  0x7d   : > { %s9442_s5 = sld [smem:[#allocation51_spill]]  ;;  %s608_s14 = scalar_lea.vmem [#allocation12], %s6170_s19 }
  0x7e   : > { %s615_s20 = sshll.u32 %s608_s14, 4  ;;  %s9406_s29 = scalar_lea.sflag [#allocation13], %s8221_s28  ;;  %s8287_s20 = int_to_ptr.vmem [resolvable:$true] %s615_s20 }
  0x83   : > { %s8285_s8 = scalar_lea.hbm %s9442_s5, %s6533_s10  ;;  %s7488_s22 = scalar_lea.hbm %s9442_s5, 3072 }
  0x84   : > { %s7483_s3 = scalar_lea.hbm %s8285_s8, 1024  ;;  %p7489_p4 = scmp.lt.u32.totalorder %s8285_s8, %s9442_s5 }
  0x85   : > { %p7484_p12 = scmp.ne.s32.totalorder %s8285_s8, %s7483_s3  ;;  %p7490_p6 = scmp.lt.u32.totalorder %s7488_s22, %s7483_s3 }
  0x86   : > { %p7492_p11 = scmp.lt.u32.totalorder %s7483_s3, %s8285_s8 }
  0x87   : > { %p7486_p2 = pnand %p7484_p12, %p8255_p9  ;;  %p7491_p7 = por %p7490_p6, %p7489_p4 }
  0x89   : > { %p7487_p0 = pneg %p7486_p2  ;;  %p7493_p13 = por %p7492_p11, %p7491_p7 }
  0x8b   : > { %p7494_p5 = pnand %p7493_p13, %p7487_p0 }
  0x8d   : > { %7497 = shalt.err (!%p7494_p5)
}
  0x8e   : > { %s7498_s19 = scalar_lea.vmem %s8287_s20, 1024  ;;  %s8002_s12 = smov [#allocation12]  }
  0x8f   : > { %p7499_p10 = scmp.ne.s32.totalorder %s8287_s20, %s7498_s19  ;;  %s7503_s6 = sshll.u32 %s8002_s12, 4  ;;  %s7504_s6 = int_to_ptr.vmem [resolvable:$false] %s7503_s6 }
  0x90   : > { %s7505_s14 = scalar_lea.vmem %s7504_s6, 2048  ;;  %p7506_p12 = scmp.lt.s32.totalorder %s8287_s20, %s7504_s6 }
  0x91   : > { %p7501_p1 = pnand %p7499_p10, %p8255_p9  ;;  %p7507_p2 = scmp.lt.s32.totalorder %s7505_s14, %s7498_s19 }
  0x93   : > { %p7502_p3 = pneg %p7501_p1  ;;  %p7508_p4 = por %p7507_p2, %p7506_p12 }
  0x95   : > { %p7509_p6 = pnand %p7508_p4, %p7502_p3 }
  0x97   : > { %7512 = shalt.err (!%p7509_p6)
}
  0x98   : > { %s8003_s3 = smov 64   ;;  %s9407_s26 = smov 4  }
  0x99   : > { %7086 = dma.hbm_to_vmem [thread:$0]  (!%p9440_p8), %s8285_s8, 1024, %s8287_s20, %s9406_s29, %s8003_s3, %s8003_s3, %s9407_s26  }
  0x9a   : > { %s8317_s30 = sshll.u32 %s7993_s27, 4  ;;  %s645_s19 = scalar_lea.vmem [#allocation15], %s8188_s24 }
  0x9b   : > { %s8323_s10 = scalar_lea.hbm %s9368_s7, %s8317_s30  ;;  %s652_s12 = sshll.u32 %s645_s19, 4  ;;  %s8326_s12 = int_to_ptr.vmem [resolvable:$true] %s652_s12 }
  0x9c   : > { %s6176_s6 = sshll.u32 %s8188_s24, 10  ;;  %s9408_s14 = scalar_lea.sflag [#allocation16], %s8221_s28 }
  0x9d   : > { %s7513_s18 = scalar_lea.hbm %s8323_s10, 16  ;;  %s7518_s22 = scalar_lea.hbm %s9368_s7, 48 }
  0x9e   : > { %p7514_p0 = scmp.ne.s32.totalorder %s8323_s10, %s7513_s18  ;;  %p7519_p13 = scmp.lt.u32.totalorder %s8323_s10, %s9368_s7 }
  0x9f   : > { %p7520_p5 = scmp.lt.u32.totalorder %s7518_s22, %s7513_s18  ;;  %p7522_p1 = scmp.lt.u32.totalorder %s7513_s18, %s8323_s10 }
  0xa0   : > { %p7516_p7 = pnand %p7514_p0, %p8255_p9 }
  0xa1   : > { %p7521_p10 = por %p7520_p5, %p7519_p13 }
  0xa2   : > { %p7517_p11 = pneg %p7516_p7 }
  0xa3   : > { %p7523_p3 = por %p7522_p1, %p7521_p10 }
  0xa5   : > { %p7524_p12 = pnand %p7523_p3, %p7517_p11 }
  0xa7   : > { %7527 = shalt.err (!%p7524_p12)
}
  0xa8   : > { %s7528_s19 = scalar_lea.vmem %s8326_s12, 16  ;;  %s8005_s8 = smov [#allocation15]  }
  0xa9   : > { %p7529_p2 = scmp.ne.s32.totalorder %s8326_s12, %s7528_s19  ;;  %s7533_s20 = sshll.u32 %s8005_s8, 4  ;;  %s7534_s20 = int_to_ptr.vmem [resolvable:$false] %s7533_s20 }
  0xaa   : > { %s7535_s29 = scalar_lea.vmem %s7534_s20, 32  ;;  %p7536_p0 = scmp.lt.s32.totalorder %s8326_s12, %s7534_s20 }
  0xab   : > { %p7531_p4 = pnand %p7529_p2, %p8255_p9  ;;  %p7537_p7 = scmp.lt.s32.totalorder %s7535_s29, %s7528_s19 }
  0xad   : > { %p7532_p6 = pneg %p7531_p4  ;;  %p7538_p13 = por %p7537_p7, %p7536_p0 }
  0xaf   : > { %p7539_p5 = pnand %p7538_p13, %p7532_p6 }
  0xb1   : > { %7542 = shalt.err (!%p7539_p5)
}
  0xb2   : > { %7092 = dma.hbm_to_vmem [thread:$0]  (!%p9440_p8), %s8323_s10, 16, %s8326_s12, %s9408_s14  }
  0xb3   : > { %s6534_s18 = sshll.u32 %s7993_s27, 14  ;;  %s680_s8 = scalar_lea.vmem [#allocation18], %s6176_s6 }
  0xb4   : > { %s8359_s19 = scalar_lea.hbm %s9370_s9, %s6534_s18  ;;  %s687_s20 = sshll.u32 %s680_s8, 4  ;;  %s8363_s20 = int_to_ptr.vmem [resolvable:$true] %s687_s20 }
  0xb5   : > { %s9409_s29 = scalar_lea.sflag [#allocation19], %s8221_s28  ;;  %s7543_s26 = scalar_lea.hbm %s8359_s19, 16384 }
  0xb6   : > { %p7544_p11 = scmp.ne.s32.totalorder %s8359_s19, %s7543_s26  ;;  %s7548_s22 = scalar_lea.hbm %s9370_s9, 49152 }
  0xb7   : > { %p7549_p3 = scmp.lt.u32.totalorder %s8359_s19, %s9370_s9  ;;  %p7550_p12 = scmp.lt.u32.totalorder %s7548_s22, %s7543_s26 }
  0xb8   : > { %p7546_p10 = pnand %p7544_p11, %p8255_p9  ;;  %p7552_p4 = scmp.lt.u32.totalorder %s7543_s26, %s8359_s19 }
  0xb9   : > { %p7551_p2 = por %p7550_p12, %p7549_p3 }
  0xba   : > { %p7547_p1 = pneg %p7546_p10 }
  0xbb   : > { %p7553_p6 = por %p7552_p4, %p7551_p2 }
  0xbd   : > { %p7554_p0 = pnand %p7553_p6, %p7547_p1 }
  0xbf   : > { %7557 = shalt.err (!%p7554_p0)
}
  0xc0   : > { %s7558_s8 = scalar_lea.vmem %s8363_s20, 16384  ;;  %s8006_s10 = smov [#allocation18]  }
  0xc1   : > { %p7559_p7 = scmp.ne.s32.totalorder %s8363_s20, %s7558_s8  ;;  %s7563_s12 = sshll.u32 %s8006_s10, 4  ;;  %s7564_s12 = int_to_ptr.vmem [resolvable:$false] %s7563_s12 }
  0xc2   : > { %s7565_s14 = scalar_lea.vmem %s7564_s12, 32768  ;;  %p7566_p11 = scmp.lt.s32.totalorder %s8363_s20, %s7564_s12 }
  0xc3   : > { %p7561_p13 = pnand %p7559_p7, %p8255_p9  ;;  %p7567_p10 = scmp.lt.s32.totalorder %s7565_s14, %s7558_s8 }
  0xc5   : > { %p7562_p5 = pneg %p7561_p13  ;;  %p7568_p3 = por %p7567_p10, %p7566_p11 }
  0xc7   : > { %p7569_p12 = pnand %p7568_p3, %p7562_p5 }
  0xc9   : > { %7572 = shalt.err (!%p7569_p12)
}
  0xca   : > { %s8007_s26 = smov 1024   ;;  %s8395_s8 = scalar_lea.hbm %s9372_s11, %s6534_s18 }
  0xcb   : > { %7098 = dma.hbm_to_vmem [thread:$0]  (!%p9440_p8), %s8359_s19, 16384, %s8363_s20, %s9409_s29, %s8007_s26, %s8007_s26, %s8003_s3  }
  0xcc   : > { %s720_s10 = scalar_lea.vmem [#allocation21], %s6176_s6  ;;  %s9412_s14 = scalar_lea.sflag [#allocation22], %s8221_s28 }
  0xcd   : > { %s727_s12 = sshll.u32 %s720_s10, 4  ;;  %s7573_s5 = scalar_lea.hbm %s8395_s8, 16384  ;;  %s8399_s12 = int_to_ptr.vmem [resolvable:$true] %s727_s12 }
  0xce   : > { %p7574_p1 = scmp.ne.s32.totalorder %s8395_s8, %s7573_s5  ;;  %s7578_s18 = scalar_lea.hbm %s9372_s11, 49152 }
  0xcf   : > { %p7579_p6 = scmp.lt.u32.totalorder %s8395_s8, %s9372_s11  ;;  %p7580_p0 = scmp.lt.u32.totalorder %s7578_s18, %s7573_s5 }
  0xd0   : > { %p7576_p2 = pnand %p7574_p1, %p8255_p9  ;;  %p7582_p13 = scmp.lt.u32.totalorder %s7573_s5, %s8395_s8 }
  0xd1   : > { %p7581_p7 = por %p7580_p0, %p7579_p6 }
  0xd2   : > { %p7577_p4 = pneg %p7576_p2 }
  0xd3   : > { %p7583_p5 = por %p7582_p13, %p7581_p7 }
  0xd5   : > { %p7584_p11 = pnand %p7583_p5, %p7577_p4 }
  0xd7   : > { %7587 = shalt.err (!%p7584_p11)
}
  0xd8   : > { %s7588_s6 = scalar_lea.vmem %s8399_s12, 16384  ;;  %s8008_s1 = smov [#allocation21]  }
  0xd9   : > { %p7589_p10 = scmp.ne.s32.totalorder %s8399_s12, %s7588_s6  ;;  %s7593_s10 = sshll.u32 %s8008_s1, 4  ;;  %s7594_s10 = int_to_ptr.vmem [resolvable:$false] %s7593_s10 }
  0xda   : > { %s7595_s19 = scalar_lea.vmem %s7594_s10, 32768  ;;  %p7596_p1 = scmp.lt.s32.totalorder %s8399_s12, %s7594_s10 }
  0xdb   : > { %p7591_p3 = pnand %p7589_p10, %p8255_p9  ;;  %p7597_p2 = scmp.lt.s32.totalorder %s7595_s19, %s7588_s6 }
  0xdd   : > { %p7592_p12 = pneg %p7591_p3  ;;  %p7598_p6 = por %p7597_p2, %p7596_p1 }
  0xdf   : > { %p7599_p0 = pnand %p7598_p6, %p7592_p12 }
  0xe1   : > { %7602 = shalt.err (!%p7599_p0)
}
  0xe2   : > { %s9443_s5 = smov 4   ;;  %s8432_s26 = scalar_lea.hbm %s9374_s13, %s8317_s30 }
  0xe3   : > { %7104 = dma.hbm_to_vmem [thread:$0]  (!%p9440_p8), %s8395_s8, 16384, %s8399_s12, %s9412_s14, %s8003_s3, %s8003_s3, %s9443_s5  }
  0xe4   : > { %s757_s22 = scalar_lea.vmem [#allocation24], %s8188_s24  ;;  %s8009_s1 = smov [#allocation3]  }
  0xe5   : > { %s764_s6 = sshll.u32 %s757_s22, 4  ;;  %s8437_s10 = sshll.u32 %s8009_s1, 4  ;;  %s8435_s6 = int_to_ptr.vmem [resolvable:$true] %s764_s6  ;;  %s506_s10 = int_to_ptr.vmem [resolvable:$true] %s8437_s10 }
  0xe6   : > { %s9411_s19 = scalar_lea.sflag [#allocation25], %s8221_s28  ;;  %s7603_s29 = scalar_lea.hbm %s8432_s26, 16 }
  0xe7   : > { %p7604_p4 = scmp.ne.s32.totalorder %s8432_s26, %s7603_s29  ;;  %s7608_s12 = scalar_lea.hbm %s9374_s13, 48 }
  0xe8   : > { %p7609_p5 = scmp.lt.u32.totalorder %s8432_s26, %s9374_s13  ;;  %p7610_p11 = scmp.lt.u32.totalorder %s7608_s12, %s7603_s29 }
  0xe9   : > { %p7606_p7 = pnand %p7604_p4, %p8255_p9  ;;  %p7612_p3 = scmp.lt.u32.totalorder %s7603_s29, %s8432_s26 }
  0xea   : > { %p7611_p10 = por %p7610_p11, %p7609_p5 }
  0xeb   : > { %p7607_p13 = pneg %p7606_p7 }
  0xec   : > { %p7613_p12 = por %p7612_p3, %p7611_p10 }
  0xee   : > { %p7614_p1 = pnand %p7613_p12, %p7607_p13 }
  0xf0   : > { %7617 = shalt.err (!%p7614_p1)
}
  0xf1   : > { %s7618_s18 = scalar_lea.vmem %s8435_s6, 16  ;;  %s8010_s22 = smov [#allocation24]  }
  0xf2   : > { %p7619_p2 = scmp.ne.s32.totalorder %s8435_s6, %s7618_s18  ;;  %s7623_s1 = sshll.u32 %s8010_s22, 4  ;;  %s7624_s1 = int_to_ptr.vmem [resolvable:$false] %s7623_s1 }
  0xf3   : > { %s7625_s3 = scalar_lea.vmem %s7624_s1, 32  ;;  %p7626_p4 = scmp.lt.s32.totalorder %s8435_s6, %s7624_s1 }
  0xf4   : > { %p7621_p6 = pnand %p7619_p2, %p8255_p9  ;;  %p7627_p7 = scmp.lt.s32.totalorder %s7625_s3, %s7618_s18 }
  0xf6   : > { %p7622_p0 = pneg %p7621_p6  ;;  %p7628_p5 = por %p7627_p7, %p7626_p4 }
  0xf8   : > { %p7629_p11 = pnand %p7628_p5, %p7622_p0 }
  0xfa   : > { %7632 = shalt.err (!%p7629_p11)
}
  0xfb   : > { %7110 = dma.hbm_to_vmem [thread:$0]  (!%p9440_p8), %s8432_s26, 16, %s8435_s6, %s9411_s19  }
  0xfc   : > { %s9444_s12 = sld [smem:[#allocation48_spill]]  ;;  %p9445_p10 = scmp.ne.s32.totalorder %s9438_s25, 0 }
 0x102   : > { %s7633_s5 = scalar_lea.hbm %s9444_s12, 128 }
 0x103   : > { %p7634_p13 = scmp.ne.s32.totalorder %s9444_s12, %s7633_s5  ;;  %p7640_p1 = scmp.lt.u32.totalorder %s7633_s5, %s9444_s12 }
 0x105   : > { %p7636_p3 = pnand %p7634_p13, %p9445_p10 }
 0x107   : > { %p7637_p12 = pneg %p7636_p3 }
 0x109   : > { %p7642_p2 = pnand %p7640_p1, %p7637_p12 }
 0x10b   : > { %7645 = shalt.err (!%p7642_p2)
}
 0x10c   : > { %s7646_s3 = scalar_lea.vmem %s506_s10, 128  ;;  %p7654_p7 = scmp.lt.s32.totalorder %s506_s10, %s506_s10 }
 0x10d   : > { %p7647_p6 = scmp.ne.s32.totalorder %s506_s10, %s7646_s3  ;;  %p7655_p5 = scmp.lt.s32.totalorder %s7646_s3, %s7646_s3 }
 0x10f   : > { %p7649_p0 = pnand %p7647_p6, %p9445_p10  ;;  %p7656_p11 = por %p7655_p5, %p7654_p7 }
 0x111   : > { %p7650_p4 = pneg %p7649_p0 }
 0x113   : > { %p7657_p8 = pnand %p7656_p11, %p7650_p4 }
 0x115   : > { %7660 = shalt.err (!%p7657_p8)
}
 0x116   : > { %p9446_p13 = scmp.ne.s32.totalorder %s9435_s23, 0  ;;  %s8011_s29 = smov [#allocation8]  }
 0x117   : > { %s529_s8 = sshll.u32 %s8011_s29, 4  ;;  %s8012_s5 = smov [#allocation29]   ;;  %s530_s8 = int_to_ptr.vmem [resolvable:$true] %s529_s8 }
 0x118   : > { %7064 = dma.hbm_to_vmem [thread:$0]  (!%p9446_p13), %s9444_s12, 128, %s506_s10, [#allocation4]  }
 0x119   : > { %s553_s20 = sshll.u32 %s8012_s5, 4  ;;  %s7661_s1 = scalar_lea.hbm %s9363_s2, 16  ;;  %s554_s20 = int_to_ptr.vmem [resolvable:$true] %s553_s20 }
 0x11a   : > { %p7662_p8 = scmp.ne.s32.totalorder %s9363_s2, %s7661_s1  ;;  %p7668_p1 = scmp.lt.u32.totalorder %s7661_s1, %s9363_s2 }
 0x11c   : > { %p7664_p3 = pnand %p7662_p8, %p9445_p10 }
 0x11e   : > { %p7665_p12 = pneg %p7664_p3 }
 0x120   : > { %p7670_p2 = pnand %p7668_p1, %p7665_p12 }
 0x122   : > { %7673 = shalt.err (!%p7670_p2)
}
 0x123   : > { %s7674_s10 = scalar_lea.vmem %s530_s8, 16  ;;  %s7681_s6 = scalar_lea.vmem %s530_s8, 32 }
 0x124   : > { %p7675_p6 = scmp.ne.s32.totalorder %s530_s8, %s7674_s10  ;;  %p7682_p7 = scmp.lt.s32.totalorder %s530_s8, %s530_s8 }
 0x125   : > { %p7683_p5 = scmp.lt.s32.totalorder %s7681_s6, %s7674_s10 }
 0x126   : > { %p7677_p0 = pnand %p7675_p6, %p9445_p10 }
 0x127   : > { %p7684_p11 = por %p7683_p5, %p7682_p7 }
 0x128   : > { %p7678_p4 = pneg %p7677_p0 }
 0x12a   : > { %p7685_p9 = pnand %p7684_p11, %p7678_p4 }
 0x12c   : > { %7688 = shalt.err (!%p7685_p9)
}
 0x12d   : > { %7070 = dma.hbm_to_vmem [thread:$0]  (!%p9446_p13), %s9363_s2, 16, %s530_s8, [#allocation7]  }
 0x12e   : > { %s7009_s14 = smul.u32 3, %s8188_s24  ;;  %s7689_s18 = scalar_lea.hbm %s9377_s16, 16 }
 0x12f   : > { %p7690_p8 = scmp.ne.s32.totalorder %s9377_s16, %s7689_s18  ;;  %p7696_p12 = scmp.lt.u32.totalorder %s7689_s18, %s9377_s16 }
 0x131   : > { %p7692_p9 = pnand %p7690_p8, %p9445_p10 }
 0x133   : > { %p7693_p3 = pneg %p7692_p9 }
 0x135   : > { %p7698_p1 = pnand %p7696_p12, %p7693_p3 }
 0x137   : > { %7701 = shalt.err (!%p7698_p1)
}
 0x138   : > { %s7702_s8 = scalar_lea.vmem %s554_s20, 16  ;;  %s7709_s6 = scalar_lea.vmem %s554_s20, 32 }
 0x139   : > { %p7703_p2 = scmp.ne.s32.totalorder %s554_s20, %s7702_s8  ;;  %p7710_p4 = scmp.lt.s32.totalorder %s554_s20, %s554_s20 }
 0x13a   : > { %p7711_p7 = scmp.lt.s32.totalorder %s7709_s6, %s7702_s8 }
 0x13b   : > { %p7705_p6 = pnand %p7703_p2, %p9445_p10 }
 0x13c   : > { %p7712_p5 = por %p7711_p7, %p7710_p4 }
 0x13d   : > { %p7706_p0 = pneg %p7705_p6 }
 0x13f   : > { %p7713_p11 = pnand %p7712_p5, %p7706_p0 }
 0x141   : > { %7716 = shalt.err (!%p7713_p11)
}
 0x142   : > { %7076 = dma.hbm_to_vmem [thread:$0]  (!%p9446_p13), %s9377_s16, 16, %s554_s20, [#allocation28]  }
 0x143   : > { %s7010_s5 = smul.u32 48, %s7993_s27  ;;  %s589_s22 = scalar_lea.vmem [#allocation11], %s7009_s14 }
 0x144   : > { %s597_s18 = sshll.u32 %s589_s22, 4  ;;  %p9447_p8 = scmp.ne.s32.totalorder %s9441_s17, 0  ;;  %s598_s18 = int_to_ptr.vmem [resolvable:$true] %s597_s18 }
 0x145   : > { %s595_s3 = scalar_lea.hbm %s9365_s4, %s7010_s5  ;;  %s7722_s8 = scalar_lea.hbm %s9365_s4, 144 }
 0x146   : > { %s7717_s26 = scalar_lea.hbm %s595_s3, 48  ;;  %p7723_p13 = scmp.lt.u32.totalorder %s595_s3, %s9365_s4 }
 0x147   : > { %p7718_p10 = scmp.ne.s32.totalorder %s595_s3, %s7717_s26  ;;  %p7724_p12 = scmp.lt.u32.totalorder %s7722_s8, %s7717_s26 }
 0x148   : > { %p7726_p2 = scmp.lt.u32.totalorder %s7717_s26, %s595_s3 }
 0x149   : > { %p7720_p9 = pnand %p7718_p10, %p9447_p8  ;;  %p7725_p1 = por %p7724_p12, %p7723_p13 }
 0x14b   : > { %p7721_p3 = pneg %p7720_p9  ;;  %p7727_p6 = por %p7726_p2, %p7725_p1 }
 0x14d   : > { %p7728_p0 = pnand %p7727_p6, %p7721_p3 }
 0x14f   : > { %7731 = shalt.err (!%p7728_p0)
}
 0x150   : > { %s7732_s20 = scalar_lea.vmem %s598_s18, 48  ;;  %s8013_s14 = smov [#allocation11]  }
 0x151   : > { %p7733_p4 = scmp.ne.s32.totalorder %s598_s18, %s7732_s20  ;;  %s7737_s29 = sshll.u32 %s8013_s14, 4  ;;  %s7738_s29 = int_to_ptr.vmem [resolvable:$false] %s7737_s29 }
 0x152   : > { %s7739_s5 = scalar_lea.vmem %s7738_s29, 96  ;;  %p7740_p11 = scmp.lt.s32.totalorder %s598_s18, %s7738_s29 }
 0x153   : > { %p7735_p7 = pnand %p7733_p4, %p9447_p8  ;;  %p7741_p10 = scmp.lt.s32.totalorder %s7739_s5, %s7732_s20 }
 0x155   : > { %p7736_p5 = pneg %p7735_p7  ;;  %p7742_p9 = por %p7741_p10, %p7740_p11 }
 0x157   : > { %p7743_p12 = pnand %p7742_p9, %p7736_p5 }
 0x159   : > { %7746 = shalt.err (!%p7743_p12)
}
 0x15a   : > { %p9448_p13 = scmp.ne.s32.totalorder %s9436_s0, 0  ;;  %s9449_s22 = scalar_lea.sflag [#allocation10], %s8221_s28 }
 0x15b   : > { %s9450_s26 = sld [smem:[#allocation52_spill]]  ;;  %s628_s8 = scalar_lea.vmem [#allocation14], %s8188_s24 }
 0x15c   : > { %7083 = dma.hbm_to_vmem [thread:$0]  (!%p9448_p13), %s595_s3, 48, %s598_s18, %s9449_s22  }
 0x15d   : > { %s635_s6 = sshll.u32 %s628_s8, 4  ;;  %s636_s6 = int_to_ptr.vmem [resolvable:$true] %s635_s6 }
 0x161   : > { %s9451_s23 = smov %s9450_s26  ;;  %s8541_s10 = scalar_lea.hbm %s9450_s26, %s8317_s30 }
 0x162   : > { %s7747_s19 = scalar_lea.hbm %s8541_s10, 16  ;;  %s7752_s18 = scalar_lea.hbm %s9451_s23, 48 }
 0x163   : > { %p7748_p3 = scmp.ne.s32.totalorder %s8541_s10, %s7747_s19  ;;  %p7753_p6 = scmp.lt.u32.totalorder %s8541_s10, %s9451_s23 }
 0x164   : > { %p7754_p0 = scmp.lt.u32.totalorder %s7752_s18, %s7747_s19  ;;  %p7756_p7 = scmp.lt.u32.totalorder %s7747_s19, %s8541_s10 }
 0x165   : > { %p7750_p1 = pnand %p7748_p3, %p9447_p8 }
 0x166   : > { %p7755_p4 = por %p7754_p0, %p7753_p6 }
 0x167   : > { %p7751_p2 = pneg %p7750_p1 }
 0x168   : > { %p7757_p5 = por %p7756_p7, %p7755_p4 }
 0x16a   : > { %p7758_p11 = pnand %p7757_p5, %p7751_p2 }
 0x16c   : > { %7761 = shalt.err (!%p7758_p11)
}
 0x16d   : > { %s7762_s5 = scalar_lea.vmem %s636_s6, 16  ;;  %s8014_s22 = smov [#allocation14]  }
 0x16e   : > { %p7763_p10 = scmp.ne.s32.totalorder %s636_s6, %s7762_s5  ;;  %s7767_s25 = sshll.u32 %s8014_s22, 4  ;;  %s7768_s25 = int_to_ptr.vmem [resolvable:$false] %s7767_s25 }
 0x16f   : > { %s7769_s1 = scalar_lea.vmem %s7768_s25, 32  ;;  %p7770_p3 = scmp.lt.s32.totalorder %s636_s6, %s7768_s25 }
 0x170   : > { %p7765_p9 = pnand %p7763_p10, %p9447_p8  ;;  %p7771_p1 = scmp.lt.s32.totalorder %s7769_s1, %s7762_s5 }
 0x172   : > { %p7766_p12 = pneg %p7765_p9  ;;  %p7772_p13 = por %p7771_p1, %p7770_p3 }
 0x174   : > { %p7773_p0 = pnand %p7772_p13, %p7766_p12 }
 0x176   : > { %7776 = shalt.err (!%p7773_p0)
}
 0x177   : > { %p9452_p6 = scmp.ne.s32.totalorder %s9436_s0, 0  ;;  %s9453_s26 = scalar_lea.sflag [#allocation13], %s8221_s28 }
 0x178   : > { %s9454_s20 = sld [smem:[#allocation53_spill]]  ;;  %s662_s18 = scalar_lea.vmem [#allocation17], %s8188_s24 }
 0x179   : > { %7089 = dma.hbm_to_vmem [thread:$0]  (!%p9452_p6), %s8541_s10, 16, %s636_s6, %s9453_s26  }
 0x17a   : > { %s669_s3 = sshll.u32 %s662_s18, 4  ;;  %s6179_s29 = sshll.u32 %s8188_s24, 4  ;;  %s670_s3 = int_to_ptr.vmem [resolvable:$true] %s669_s3 }
 0x17e   : > { %s8567_s14 = scalar_lea.hbm %s9454_s20, %s8317_s30  ;;  %s7782_s6 = scalar_lea.hbm %s9454_s20, 48 }
 0x17f   : > { %s7777_s5 = scalar_lea.hbm %s8567_s14, 16  ;;  %p7783_p7 = scmp.lt.u32.totalorder %s8567_s14, %s9454_s20 }
 0x180   : > { %p7778_p13 = scmp.ne.s32.totalorder %s8567_s14, %s7777_s5  ;;  %p7784_p5 = scmp.lt.u32.totalorder %s7782_s6, %s7777_s5 }
 0x181   : > { %p7786_p10 = scmp.lt.u32.totalorder %s7777_s5, %s8567_s14 }
 0x182   : > { %p7780_p2 = pnand %p7778_p13, %p9447_p8  ;;  %p7785_p11 = por %p7784_p5, %p7783_p7 }
 0x184   : > { %p7781_p4 = pneg %p7780_p2  ;;  %p7787_p9 = por %p7786_p10, %p7785_p11 }
 0x186   : > { %p7788_p12 = pnand %p7787_p9, %p7781_p4 }
 0x188   : > { %7791 = shalt.err (!%p7788_p12)
}
 0x189   : > { %s7792_s26 = scalar_lea.vmem %s670_s3, 16  ;;  %s8015_s8 = smov [#allocation17]  }
 0x18a   : > { %p7793_p3 = scmp.ne.s32.totalorder %s670_s3, %s7792_s26  ;;  %s7797_s19 = sshll.u32 %s8015_s8, 4  ;;  %s7798_s19 = int_to_ptr.vmem [resolvable:$false] %s7797_s19 }
 0x18b   : > { %s7799_s18 = scalar_lea.vmem %s7798_s19, 32  ;;  %p7800_p13 = scmp.lt.s32.totalorder %s670_s3, %s7798_s19 }
 0x18c   : > { %p7795_p1 = pnand %p7793_p3, %p9447_p8  ;;  %p7801_p2 = scmp.lt.s32.totalorder %s7799_s18, %s7792_s26 }
 0x18e   : > { %p7796_p0 = pneg %p7795_p1  ;;  %p7802_p6 = por %p7801_p2, %p7800_p13 }
 0x190   : > { %p7803_p5 = pnand %p7802_p6, %p7796_p0 }
 0x192   : > { %7806 = shalt.err (!%p7803_p5)
}
 0x193   : > { %p9455_p7 = scmp.ne.s32.totalorder %s9436_s0, 0  ;;  %s9456_s5 = scalar_lea.sflag [#allocation16], %s8221_s28 }
 0x194   : > { %s6535_s22 = sshll.u32 %s7993_s27, 8  ;;  %s9457_s25 = sld [smem:[#allocation54_spill]] }
 0x195   : > { %7095 = dma.hbm_to_vmem [thread:$0]  (!%p9455_p7), %s8567_s14, 16, %s670_s3, %s9456_s5  }
 0x196   : > { %s701_s26 = scalar_lea.vmem [#allocation20], %s6179_s29 }
 0x197   : > { %s709_s19 = sshll.u32 %s701_s26, 4  ;;  %s710_s19 = int_to_ptr.vmem [resolvable:$true] %s709_s19 }
 0x19a   : > { %s9458_s1 = smov %s9457_s25  ;;  %s8594_s8 = scalar_lea.hbm %s9457_s25, %s6535_s22 }
 0x19b   : > { %s7807_s18 = scalar_lea.hbm %s8594_s8, 256  ;;  %s7812_s3 = scalar_lea.hbm %s9458_s1, 768 }
 0x19c   : > { %p7808_p6 = scmp.ne.s32.totalorder %s8594_s8, %s7807_s18  ;;  %p7813_p10 = scmp.lt.u32.totalorder %s8594_s8, %s9458_s1 }
 0x19d   : > { %p7814_p9 = scmp.lt.u32.totalorder %s7812_s3, %s7807_s18  ;;  %p7816_p3 = scmp.lt.u32.totalorder %s7807_s18, %s8594_s8 }
 0x19e   : > { %p7810_p4 = pnand %p7808_p6, %p9447_p8 }
 0x19f   : > { %p7815_p12 = por %p7814_p9, %p7813_p10 }
 0x1a0   : > { %p7811_p11 = pneg %p7810_p4 }
 0x1a1   : > { %p7817_p1 = por %p7816_p3, %p7815_p12 }
 0x1a3   : > { %p7818_p0 = pnand %p7817_p1, %p7811_p11 }
 0x1a5   : > { %7821 = shalt.err (!%p7818_p0)
}
 0x1a6   : > { %s7822_s29 = scalar_lea.vmem %s710_s19, 256  ;;  %s8016_s10 = smov [#allocation20]  }
 0x1a7   : > { %p7823_p13 = scmp.ne.s32.totalorder %s710_s19, %s7822_s29  ;;  %s7827_s6 = sshll.u32 %s8016_s10, 4  ;;  %s7828_s6 = int_to_ptr.vmem [resolvable:$false] %s7827_s6 }
 0x1a8   : > { %s7829_s25 = scalar_lea.vmem %s7828_s6, 512  ;;  %p7830_p6 = scmp.lt.s32.totalorder %s710_s19, %s7828_s6 }
 0x1a9   : > { %p7825_p2 = pnand %p7823_p13, %p9447_p8  ;;  %p7831_p4 = scmp.lt.s32.totalorder %s7829_s25, %s7822_s29 }
 0x1ab   : > { %p7826_p5 = pneg %p7825_p2  ;;  %p7832_p7 = por %p7831_p4, %p7830_p6 }
 0x1ad   : > { %p7833_p9 = pnand %p7832_p7, %p7826_p5 }
 0x1af   : > { %7836 = shalt.err (!%p7833_p9)
}
 0x1b0   : > { %p9459_p10 = scmp.ne.s32.totalorder %s9436_s0, 0  ;;  %s9460_s26 = scalar_lea.sflag [#allocation19], %s8221_s28 }
 0x1b1   : > { %s9461_s27 = sld [smem:[#allocation55_spill]]  ;;  %s740_s22 = scalar_lea.vmem [#allocation23], %s8188_s24 }
 0x1b2   : > { %7101 = dma.hbm_to_vmem [thread:$0]  (!%p9459_p10), %s8594_s8, 256, %s710_s19, %s9460_s26  }
 0x1b3   : > { %s747_s29 = sshll.u32 %s740_s22, 4  ;;  %s748_s29 = int_to_ptr.vmem [resolvable:$true] %s747_s29 }
 0x1b7   : > { %s9462_s3 = smov %s9461_s27  ;;  %s8621_s5 = scalar_lea.hbm %s9461_s27, %s8317_s30 }
 0x1b8   : > { %s7837_s10 = scalar_lea.hbm %s8621_s5, 16  ;;  %s7842_s8 = scalar_lea.hbm %s9462_s3, 48 }
 0x1b9   : > { %p7838_p7 = scmp.ne.s32.totalorder %s8621_s5, %s7837_s10  ;;  %p7843_p3 = scmp.lt.u32.totalorder %s8621_s5, %s9462_s3 }
 0x1ba   : > { %p7844_p1 = scmp.lt.u32.totalorder %s7842_s8, %s7837_s10  ;;  %p7846_p13 = scmp.lt.u32.totalorder %s7837_s10, %s8621_s5 }
 0x1bb   : > { %p7840_p11 = pnand %p7838_p7, %p9447_p8 }
 0x1bc   : > { %p7845_p0 = por %p7844_p1, %p7843_p3 }
 0x1bd   : > { %p7841_p12 = pneg %p7840_p11 }
 0x1be   : > { %p7847_p2 = por %p7846_p13, %p7845_p0 }
 0x1c0   : > { %p7848_p5 = pnand %p7847_p2, %p7841_p12 }
 0x1c2   : > { %7851 = shalt.err (!%p7848_p5)
}
 0x1c3   : > { %s7852_s18 = scalar_lea.vmem %s748_s29, 16  ;;  %s8017_s14 = smov [#allocation23]  }
 0x1c4   : > { %p7853_p6 = scmp.ne.s32.totalorder %s748_s29, %s7852_s18  ;;  %s7857_s27 = sshll.u32 %s8017_s14, 4  ;;  %s7858_s27 = int_to_ptr.vmem [resolvable:$false] %s7857_s27 }
 0x1c5   : > { %s7859_s22 = scalar_lea.vmem %s7858_s27, 32  ;;  %p7860_p7 = scmp.lt.s32.totalorder %s748_s29, %s7858_s27 }
 0x1c6   : > { %p7855_p4 = pnand %p7853_p6, %p9447_p8  ;;  %p7861_p11 = scmp.lt.s32.totalorder %s7859_s22, %s7852_s18 }
 0x1c8   : > { %p7856_p9 = pneg %p7855_p4  ;;  %p7862_p10 = por %p7861_p11, %p7860_p7 }
 0x1ca   : > { %p7863_p1 = pnand %p7862_p10, %p7856_p9 }
 0x1cc   : > { %7866 = shalt.err (!%p7863_p1)
}
 0x1cd   : > { %p9463_p3 = scmp.ne.s32.totalorder %s9436_s0, 0  ;;  %s9464_s10 = scalar_lea.sflag [#allocation22], %s8221_s28 }
 0x1ce   : > { %s9465_s8 = sld [smem:[#allocation56_spill]]  ;;  %s774_s26 = scalar_lea.vmem [#allocation26], %s8188_s24 }
 0x1cf   : > { %7107 = dma.hbm_to_vmem [thread:$0]  (!%p9463_p3), %s8621_s5, 16, %s748_s29, %s9464_s10  }
 0x1d0   : > { %s781_s18 = sshll.u32 %s774_s26, 4  ;;  %s782_s18 = int_to_ptr.vmem [resolvable:$true] %s781_s18 }
 0x1d4   : > { %s8647_s19 = scalar_lea.hbm %s9465_s8, %s8317_s30  ;;  %s7872_s5 = scalar_lea.hbm %s9465_s8, 48 }
 0x1d5   : > { %s7867_s14 = scalar_lea.hbm %s8647_s19, 16  ;;  %p7873_p13 = scmp.lt.u32.totalorder %s8647_s19, %s9465_s8 }
 0x1d6   : > { %p7868_p10 = scmp.ne.s32.totalorder %s8647_s19, %s7867_s14  ;;  %p7874_p2 = scmp.lt.u32.totalorder %s7872_s5, %s7867_s14 }
 0x1d7   : > { %p7876_p6 = scmp.lt.u32.totalorder %s7867_s14, %s8647_s19 }
 0x1d8   : > { %p7870_p12 = pnand %p7868_p10, %p9447_p8  ;;  %p7875_p5 = por %p7874_p2, %p7873_p13 }
 0x1da   : > { %p7871_p0 = pneg %p7870_p12  ;;  %p7877_p4 = por %p7876_p6, %p7875_p5 }
 0x1dc   : > { %p7878_p9 = pnand %p7877_p4, %p7871_p0 }
 0x1de   : > { %7881 = shalt.err (!%p7878_p9)
}
 0x1df   : > { %s7882_s24 = scalar_lea.vmem %s782_s18, 16  ;;  %s8018_s30 = smov [#allocation26]  }
 0x1e0   : > { %p7883_p7 = scmp.ne.s32.totalorder %s782_s18, %s7882_s24  ;;  %s7887_s6 = sshll.u32 %s8018_s30, 4  ;;  %s7888_s6 = int_to_ptr.vmem [resolvable:$false] %s7887_s6 }
 0x1e1   : > { %s7889_s25 = scalar_lea.vmem %s7888_s6, 32  ;;  %p7890_p10 = scmp.lt.s32.totalorder %s782_s18, %s7888_s6 }
 0x1e2   : > { %p7885_p11 = pnand %p7883_p7, %p9447_p8  ;;  %p7891_p12 = scmp.lt.s32.totalorder %s7889_s25, %s7882_s24 }
 0x1e4   : > { %p7886_p1 = pneg %p7885_p11  ;;  %p7892_p3 = por %p7891_p12, %p7890_p10 }
 0x1e6   : > { %p7893_p2 = pnand %p7892_p3, %p7886_p1 }
 0x1e8   : > { %7896 = shalt.err (!%p7893_p2)
}
 0x1e9   : > { %p9466_p13 = scmp.ne.s32.totalorder %s9436_s0, 0  ;;  %s9467_s26 = scalar_lea.sflag [#allocation25], %s8221_s28 }
 0x1ea   : > { %s9468_s14 = sld [smem:[#allocation47_spill]] }
 0x1eb   : > { %7113 = dma.hbm_to_vmem [thread:$0]  (!%p9466_p13), %s8647_s19, 16, %s782_s18, %s9467_s26  }
 0x1f0   : > { %p9469_p0 = scmp.ne.s32.totalorder %s9468_s14, 0 }
 0x1f1   : > { %s9470_s17 = sld [smem:[#allocation43_spill]] (!%p9469_p0) }
 0x1f2   : > { %790 = sbr.rel (%p9469_p0) target bundleno = 6936 (0x1b18), region = 88 }
 0x1f7   : > { %p9471_p8 = scmp.eq.s32.totalorder (!%p9469_p0), %s9470_s17, 0 }
 0x1f9   : > { %7940 = dma.done.wait (%p9471_p8), [#allocation4], 128   ;;  %p9472_p5 = pmov %p9471_p8 }
 0x1fb   : > { %7942 = vsyncadd (%p9472_p5), [#allocation4], 4294967168  ;;  %p9473_p6 = pmov %p9472_p5 }
 0x1fc   : > { %p9474_p3 = pmov %p9472_p5 }
 0x1fd   : > { %7944 = dma.done.wait (%p9473_p6), [#allocation7], 272  }
 0x1fe   : > { %7946 = vsyncadd (%p9474_p3), [#allocation7], 4294967024  ;;  %s9475_s0 = sld [smem:[#allocation41_spill]]  ;;  %s9476_s28 = sld [smem:[#allocation46_spill]] }
 0x1ff   : > { %s8680_s27 = sand.u32 1, %s9470_s17  }
 0x200   : > { %s805_s22 = scalar_lea.sflag [#allocation10], %s8680_s27 }
 0x204   : > { %s8683_s19 = sand.u32 1, %s9475_s0   ;;  %p9477_p4 = scmp.ne.s32.totalorder %s9476_s28, 0 }
 0x205   : > { %s7011_s18 = smul.u32 192, %s8683_s19 }
 0x207   : > { %s8687_s5 = scalar_lea.vmem [#allocation9], %s7011_s18 }
 0x208   : > { %7948 = dma.done.wait (%p9477_p4), %s805_s22, 3120  }
 0x209   : > { %7950 = vsyncadd (%p9477_p4), %s805_s22, 4294964176  ;;  %s7012_s29 = smul.u32 3, %s8683_s19  ;;  %s6192_s10 = sshll.u32 %s8683_s19, 6 }
 0x20a   : > { %s823_s30 = scalar_lea.sflag [#allocation13], %s8680_s27  ;;  %s8698_s6 = scalar_lea.vmem [#allocation12], %s6192_s10 }
 0x20b   : > { %s8695_s24 = scalar_lea.vmem [#allocation11], %s7012_s29 }
 0x20c   : > { %7952 = dma.done.wait (%p9477_p4), %s823_s30, 1040  }
 0x20d   : > { %7954 = vsyncadd (%p9477_p4), %s823_s30, 4294966256  ;;  %s840_s26 = scalar_lea.sflag [#allocation16], %s8680_s27 }
 0x20e   : > { %7956 = dma.done.wait (%p9477_p4), %s840_s26, 32  }
 0x20f   : > { %7958 = vsyncadd (%p9477_p4), %s840_s26, 4294967264  ;;  %s6193_s0 = sshll.u32 %s8683_s19, 10  ;;  %s856_s22 = scalar_lea.sflag [#allocation19], %s8680_s27 }
 0x210   : > { %s8714_s29 = scalar_lea.vmem [#allocation18], %s6193_s0 }
 0x211   : > { %7960 = dma.done.wait (%p9477_p4), %s856_s22, 16640  }
 0x212   : > { %7962 = vsyncadd (%p9477_p4), %s856_s22, 4294950656  ;;  %s6194_s10 = sshll.u32 %s8683_s19, 4  ;;  %s874_s26 = scalar_lea.sflag [#allocation22], %s8680_s27 }
 0x213   : > { %s8721_s30 = scalar_lea.vmem [#allocation20], %s6194_s10  ;;  %s8724_s14 = scalar_lea.vmem [#allocation21], %s6193_s0 }
 0x214   : > { %7964 = dma.done.wait (%p9477_p4), %s874_s26, 16400  }
 0x215   : > { %7966 = vsyncadd (%p9477_p4), %s874_s26, 4294950896  ;;  %s885_s18 = scalar_lea.vmem [#allocation23], %s8683_s19  ;;  %s891_s22 = scalar_lea.sflag [#allocation25], %s8680_s27 }
 0x216   : > { %s893_s25 = scalar_lea.vmem [#allocation24], %s8683_s19 }
 0x217   : > { %7968 = dma.done.wait (%p9477_p4), %s891_s22, 32  }
 0x218   : > { %7970 = vsyncadd (%p9477_p4), %s891_s22, 4294967264  ;;  %s901_s0 = scalar_lea.vmem [#allocation26], %s8683_s19  ;;  %p9478_p9 = pmov %p9474_p3 }
 0x219   : > { %p9479_p7 = pmov %p9474_p3 }
 0x21a   : > { %7972 = dma.done.wait (%p9478_p9), [#allocation28], 2064  }
 0x21b   : > { %7974 = vsyncadd (%p9479_p7), [#allocation28], 4294965232  ;;  %p9480_p11 = scmp.ne.s32.totalorder %s9470_s17, 0 }
 0x21c   : > { %v1010_v0 = vld [vmem:[#allocation6] sm:$0xff] (!%p9480_p11)  ;;  %v1011_v1 = vld [vmem:[#allocation6 + $0x8] sm:$0xff] (!%p9480_p11)  ;;  %v8019_v2 = vmov (!%p9480_p11), 0.0|0.0   ;;  %vm8020_vm0 = vmmov (!%p9480_p11), 0   ;;  %v8021_v4 = vmov (!%p9480_p11), 0.0   ;;  %v1009_v5 = vld [vmem:[#allocation3] sm:$0xff] (!%p9480_p11) }
 0x21d   : > { %1008 = sbr.rel (%p9480_p11) target bundleno = 761 (0x2f9), region = 160  ;;  %6980 = vmatprep.subr.bf16.mxu0 (!%p9480_p11), %v8019_v2  ;;  %v6981_v3 = vpack.c.bf16 (!%p9480_p11), %v1011_v1, %v1010_v0  ;;  %6794 = vmatprep.mubr.msk.f32.mxu0 (!%p9480_p11), %vm8020_vm0, %v8021_v4  ;;  %vm1019_vm1 = vcmask (!%p9480_p11), 130048   ;;  %v6199_v6 = vld [vmem:[#allocation8] ss:$0 sm:$0xff] (!%p9480_p11) }
 0x21f   : > { %6982 = vmatpush3.bf16.msra.mxu0 (!%p9480_p11), %v6981_v3 }
 0x222   : > { %6795 = vmatmul.mubr.msk.f32.vlgmr.msra.gmra.mrb[0].mxu0 (!%p9480_p11), %vm1019_vm1, %v1009_v5 }
 0x2f5   : > { %v1089_v7 = vpop.f32.mrb[0].mxu0 }
 0x2f6   : > { %v1090_v8 = vadd.f32 %v6199_v6, %v1089_v7  ;;  %v6796_v9 = vpop.f32.mrb[1].mxu0 }
 0x2f8   : > { %1093 = vst [vmem:[#allocation2] sm:$0xff] %v1090_v8 }
 0x2f9 PF: > { %v7188_v10 = vld [vmem:[%s8687_s5 + $0x4] ss:$12 sps:$4 sm:$0xff]   ;;  %v7190_v11 = vld [vmem:[%s8687_s5] ss:$12 sps:$4 sm:$0xff]   ;;  %v8022_v12 = vmov 0   ;;  %v8023_v29 = vmov 0.0   ;;  %v1130_v30 = vlaneseq }
 0x2fa   : > { %1305 = vmatprep.mubr.bf16.mxu0 %v8022_v12  ;;  %1273 = vmatprep.subr.bf16.mxu0 %v7188_v10  ;;  %v7191_v13 = vld [vmem:[%s8687_s5 + $0x1c] ss:$12 sps:$4 sm:$0xff]   ;;  %v7193_v14 = vld [vmem:[%s8687_s5 + $0x18] ss:$12 sps:$4 sm:$0xff]   ;;  %v7194_v15 = vld [vmem:[%s8687_s5 + $0x34] ss:$12 sps:$4 sm:$0xff]  }
 0x2fb   : > { %1274 = vmatpush1.bf16.msra.mxu0 %v7190_v11  ;;  %v7196_v16 = vld [vmem:[%s8687_s5 + $0x30] ss:$12 sps:$4 sm:$0xff]   ;;  %v7197_v17 = vld [vmem:[%s8687_s5 + $0x4c] ss:$12 sps:$4 sm:$0xff]   ;;  %v7199_v18 = vld [vmem:[%s8687_s5 + $0x48] ss:$12 sps:$4 sm:$0xff]   ;;  %6797 = vmatprep.subr.bf16.mxu1 %v8023_v29 }
 0x2fc   : > { %1275 = vmatprep.subr.bf16.mxu0 %v7191_v13  ;;  %v7200_v19 = vld [vmem:[%s8687_s5 + $0x64] ss:$12 sps:$4 sm:$0xff]   ;;  %v7202_v20 = vld [vmem:[%s8687_s5 + $0x60] ss:$12 sps:$4 sm:$0xff]   ;;  %v7203_v21 = vld [vmem:[%s8687_s5 + $0x7c] ss:$12 sps:$4 sm:$0xff]  }
 0x2fd   : > { %v7205_v22 = vld [vmem:[%s8687_s5 + $0x78] ss:$12 sps:$4 sm:$0xff]   ;;  %v7206_v23 = vld [vmem:[%s8687_s5 + $0x94] ss:$12 sps:$4 sm:$0xff]   ;;  %v7208_v24 = vld [vmem:[%s8687_s5 + $0x90] ss:$12 sps:$4 sm:$0xff]  }
 0x2fe   : > { %v7209_v25 = vld [vmem:[%s8687_s5 + $0xac] ss:$12 sps:$4 sm:$0xff]   ;;  %v7211_v26 = vld [vmem:[%s8687_s5 + $0xa8] ss:$12 sps:$4 sm:$0xff]   ;;  %vm8024_vm2 = vmmov 0   ;;  %v8767_v31 = vshrl.u32 %v1130_v30, 7 }
 0x2ff   : > { %1276 = vmatpush1.bf16.msra.mxu0 %v7193_v14  ;;  %v1094_v27 = vld [vmem:[#allocation2] sm:$0xff]  ;;  %6813 = vmatprep.mubr.msk.bf16.mxu1 %vm8024_vm2, %v8023_v29  ;;  %v7212_v34 = vld [vmem:[%s8687_s5 + $0x8] ss:$12 sps:$4 sm:$0xff]   ;;  %vm1354_vm3 = vcmask 130048   ;;  %s8025_s17 = smov 112   ;;  %vm1432_vm4 = vcmask 64512  }
 0x300   : > { %1277 = vmatprep.subr.bf16.mxu0 %v7194_v15  ;;  %v1095_v28 = vpack.c.bf16 %v1094_v27, %v1094_v27  ;;  %v8770_v32 = vsub.s32 1, %v8767_v31  ;;  %v8773_v33 = vld [vmem:[%s8695_s24] sm:$0x7]  ;;  %v8777_v35 = vsub.s32 0, %v8767_v31  ;;  %6798 = vmatpush3.bf16.msra.mxu1 %v7212_v34  ;;  %v7215_v46 = vld [vmem:[%s8687_s5 + $0x50] ss:$12 sps:$4 sm:$0xff]  }
 0x301   : > { %v7213_v36 = vld [vmem:[%s8687_s5 + $0x20] ss:$12 sps:$4 sm:$0xff]   ;;  %6799 = vmatprep.subr.bf16.mxu1 %v8023_v29  ;;  %v7214_v41 = vld [vmem:[%s8687_s5 + $0x38] ss:$12 sps:$4 sm:$0xff]   ;;  %v7216_v47 = vld [vmem:[%s8687_s5 + $0x68] ss:$12 sps:$4 sm:$0xff]  }
 0x302   : > { %v1137_v37 = vrot.slane %v8773_v33, %v8770_v32  ;;  %v1133_v39 = vrot.slane %v8773_v33, %v8777_v35  ;;  %v7217_v48 = vld [vmem:[%s8687_s5 + $0x80] ss:$12 sps:$4 sm:$0xff]   ;;  %v7218_v49 = vld [vmem:[%s8687_s5 + $0x98] ss:$12 sps:$4 sm:$0xff]   ;;  %v7219_v50 = vld [vmem:[%s8687_s5 + $0xb0] ss:$12 sps:$4 sm:$0xff]  }
 0x303   : > { %1278 = vmatpush1.bf16.msra.mxu0 %v7196_v16  ;;  %v8822_v57 = vsub.s32 2, %v8767_v31  ;;  %s8026_s28 = smov 96   ;;  %s8027_s27 = smov 80  }
 0x304   : > { %1279 = vmatprep.subr.bf16.mxu0 %v7197_v17  ;;  %6800 = vmatpush3.bf16.msra.mxu1 %v7213_v36  ;;  %s8028_s5 = smov 64   ;;  %s8029_s24 = smov 48  }
 0x305   : > { %6801 = vmatprep.subr.bf16.mxu1 %v8023_v29  ;;  %v1141_v60 = vrot.slane %v8773_v33, %v8822_v57  ;;  %s8030_s10 = smov 32   ;;  %s8031_s26 = smov 16  }
 0x306   : > { %s9482_s22 = scalar_lea.vmem [#allocation15], %s8683_s19 }
 0x307   : > { %1280 = vmatpush1.bf16.msra.mxu0 %v7199_v18  ;;  %v7221_v18 = vld [vmem:[%s8698_s6 + $0x8] sm:$0xff]  }
 0x308   : > { %1281 = vmatprep.subr.bf16.mxu0 %v7200_v19  ;;  %6802 = vmatpush3.bf16.msra.mxu1 %v7214_v41 }
 0x309   : > { %6803 = vmatprep.subr.bf16.mxu1 %v8023_v29 }
 0x30b   : > { %1282 = vmatpush1.bf16.msra.mxu0 %v7202_v20 }
 0x30c   : > { %1283 = vmatprep.subr.bf16.mxu0 %v7203_v21  ;;  %6804 = vmatpush3.bf16.msra.mxu1 %v7215_v46 }
 0x30d   : > { %6805 = vmatprep.subr.bf16.mxu1 %v8023_v29 }
 0x30f   : > { %1284 = vmatpush1.bf16.msra.mxu0 %v7205_v22  ;;  %v7220_v22 = vld [vmem:[%s8698_s6] sm:$0xff]  }
 0x310   : > { %1285 = vmatprep.subr.bf16.mxu0 %v7206_v23  ;;  %6806 = vmatpush3.bf16.msra.mxu1 %v7216_v47 }
 0x311   : > { %6807 = vmatprep.subr.bf16.mxu1 %v8023_v29 }
 0x313   : > { %1286 = vmatpush1.bf16.msra.mxu0 %v7208_v24 }
 0x314   : > { %1287 = vmatprep.subr.bf16.mxu0 %v7209_v25  ;;  %6808 = vmatpush3.bf16.msra.mxu1 %v7217_v48 }
 0x315   : > { %6809 = vmatprep.subr.bf16.mxu1 %v8023_v29 }
 0x317   : > { %1288 = vmatpush1.bf16.msra.mxu0 %v7211_v26 }
 0x318   : > { %6817 = vmatprep.subr.mxu0 %v8023_v29  ;;  %6810 = vmatpush3.bf16.msra.mxu1 %v7218_v49 }
 0x319   : > { %6811 = vmatprep.subr.bf16.mxu1 %v8023_v29 }
 0x31a   : > { %1306 = vmatmul.mubr.bf16.vlgmr.msra.gmra.mrb[0].mxu0 %v1095_v28 }
 0x31b   : > { %6819 = vmatprep.mubr.msk.f32.mxu0 %vm8024_vm2, %v8023_v29 }
 0x31c   : > { %6812 = vmatpush3.bf16.msra.mxu1 %v7219_v50 }
 0x31d   : > { %6822 = vmatprep.subr.mxu1 %v8023_v29 }
 0x31f   : > { %6814 = vmatmul.mubr.bf16.vlgmr.msra.gmra.mrb[0].mxu1 %v1095_v28 }
 0x320   : > { %6824 = vmatprep.mubr.msk.f32.mxu1 %vm8024_vm2, %v8023_v29 }
 0x3ed   : > { %v1307_v38 = vpop.f32.mrb[0].mxu0 }
 0x3ee   : > { %v1309_v40 = vpop.f32.mrb[1].mxu0  ;;  %v8793_v45 = vadd.f32 %v1307_v38, %v1133_v39 }
 0x3ef   : > { %v8786_v42 = vadd.f32 %v1309_v40, %v1137_v37  ;;  %v1311_v43 = vpop.f32.mrb[2].mxu0 }
 0x3f0   : > { %v1312_v44 = vpop.f32.mrb[3].mxu0 }
 0x3f1   : > { %1522 = vrot.lane.b32.xlu0 %v8786_v42, %s8025_s17  ;;  %6818 = vmatpush3.xpose.msk.msra.mxu0 %vm1354_vm3, %v8786_v42 }
 0x3f2   : > { %6827 = vmatprep.subr.mxu0 %v8023_v29  ;;  %v1348_v58 = vpop.f32.mrb[0].mxu1 }
 0x3f3   : > { %v6815_v59 = vpop.f32.mrb[1].mxu1  ;;  %v8826_v63 = vadd.f32 %v1348_v58, %v1141_v60 }
 0x3f4   : > { %6820 = vmatmul.mubr.msk.f32.vlgmr.msra.gmra.mrb[4].mxu0 %vm1354_vm3, %v8793_v45  ;;  %v1351_v61 = vpop.f32.mrb[2].mxu1 }
 0x3f5   : > { %1520 = vrot.lane.b32.xlu0 %v8793_v45, %s8025_s17  ;;  %6829 = vmatprep.mubr.msk.f32.mxu0 %vm8024_vm2, %v8023_v29  ;;  %v6816_v62 = vpop.f32.mrb[3].mxu1 }
 0x3f6   : > { %6823 = vmatpush3.msra.mxu1 %v8826_v63 }
 0x3f7   : > { %6832 = vmatprep.subr.mxu1 %v8023_v29 }
 0x463   : > { %v1523_v51 = vpop.permute.xlu0 %1522 }
 0x464   : > { %6828 = vmatpush3.xpose.msk.msra.mxu0 %vm1354_vm3, %v1523_v51 }
 0x465   : > { %6837 = vmatprep.subr.bf16.mxu0 %v8023_v29 }
 0x467   : > { %v1521_v52 = vpop.permute.xlu0 %1520 }
 0x468   : > { %6830 = vmatmul.mubr.msk.f32.vlgmr.msra.gmra.mrb[6].mxu0 %vm1354_vm3, %v1521_v52 }
 0x469   : > { %6839 = vmatprep.mubr.msk.bf16.mxu0 %vm8024_vm2, %v8023_v29  ;;  %6838 = vmatpush3.bf16.msra.mxu0 %v7221_v18 }
 0x46a   : > { %6849 = vmatprep.subr.mxu0 %v8023_v29 }
 0x4c7   : > { %v1427_v53 = vpop.f32.mrb[4].mxu0 }
 0x4c8   : > { %v1431_v54 = vmul.f32 0.25, %v1427_v53  ;;  %v6821_v55 = vpop.f32.mrb[5].mxu0 }
 0x4ca   : > { %v1433_v56 = vsel %vm1432_vm4, %v1431_v54, -inf }
 0x4cb   : > { %1434 = vmax.xlane.f32.xlu1 %v1433_v56 }
 0x53b   : > { %v1594_v0 = vpop.f32.mrb[6].mxu0 }
 0x53c   : > { %v1598_v1 = vmul.f32 0.25, %v1594_v0  ;;  %v6831_v2 = vpop.f32.mrb[7].mxu0 }
 0x53e   : > { %v1599_v3 = vsel %vm1432_vm4, %v1598_v1, -inf }
 0x53f   : > { %1600 = vmax.xlane.f32.xlu1 %v1599_v3 }
 0x558   : > { %v1435_v4 = vpop.xlane.xlu1 %1434 }
 0x559   : > { %v1436_v5 = vsub.f32 %v1431_v54, %v1435_v4 }
 0x55b   : > { %v1437_v6 = vmul.f32 1.442695, %v1436_v5 }
 0x55d   : > { %7356 = vpow2.f32 %v1437_v6 }
 0x567   : > { %v7357_v7 = vpop.eup %7356 }
 0x568   : > { %v1439_v8 = vsel %vm1432_vm4, %v7357_v7, 0.0 }
 0x569   : > { %1440 = vadd.xlane.f32.xlu0 %v1439_v8 }
 0x57f   : > { %1878 = vrot.lane.b32.xlu0 %v8826_v63, %s8026_s28 }
 0x583   : > { %2009 = vrot.lane.b32.xlu0 %v8786_v42, %s8027_s27 }
 0x5cc   : > { %v1601_v9 = vpop.xlane.xlu1 %1600 }
 0x5cd   : > { %v1602_v10 = vsub.f32 %v1598_v1, %v1601_v9  ;;  %v7222_v1 = vld [vmem:[%s8698_s6 + $0x10] sm:$0xff]  }
 0x5cf   : > { %v1603_v11 = vmul.f32 1.442695, %v1602_v10 }
 0x5d1   : > { %7358 = vpow2.f32 %v1603_v11 }
 0x5db   : > { %v7359_v13 = vpop.eup %7358 }
 0x5dc   : > { %v1605_v14 = vsel %vm1432_vm4, %v7359_v13, 0.0 }
 0x5dd   : > { %1606 = vadd.xlane.f32.xlu1 %v1605_v14 }
 0x5ee   : > { %1611 = vrot.lane.b32.xlu1 %v8826_v63, %s8025_s17  ;;  %s9483_s17 = scalar_lea.vmem [#allocation17], %s8683_s19 }
 0x5f2   : > { %1790 = vrot.lane.b32.xlu1 %v8786_v42, %s8026_s28 }
 0x5f6   : > { %v1441_v15 = vpop.xlane.xlu0 %1440  ;;  %1788 = vrot.lane.b32.xlu1 %v8793_v45, %s8026_s28 }
 0x5f7   : > { %7360 = vrcp.f32 %v1441_v15 }
 0x5fa   : > { %v1879_v27 = vpop.permute.xlu0 %1878 }
 0x5fe   : > { %v2010_v58 = vpop.permute.xlu0 %2009 }
 0x601   : > { %v7361_v16 = vpop.eup %7360 }
 0x602   : > { %v1443_v17 = vmul.f32 %v7361_v16, %v7357_v7 }
 0x604   : > { %6825 = vmatmul.mubr.msk.f32.vlgmr.msra.gmra.mrb[4].mxu1 %vm1432_vm4, %v1443_v17 }
 0x605   : > { %6834 = vmatprep.mubr.msk.f32.mxu1 %vm8024_vm2, %v8023_v29 }
 0x66a   : > { %v1607_v19 = vpop.xlane.xlu1 %1606 }
 0x66b   : > { %7362 = vrcp.f32 %v1607_v19 }
 0x66e   : > { %v1612_v20 = vpop.permute.xlu1 %1611 }
 0x66f   : > { %6833 = vmatpush3.msra.mxu1 %v1612_v20 }
 0x670   : > { %6843 = vmatprep.subr.bf16.mxu1 %v8023_v29 }
 0x672   : > { %v1791_v34 = vpop.permute.xlu1 %1790 }
 0x675   : > { %v7363_v21 = vpop.eup %7362 }
 0x676   : > { %v1609_v23 = vmul.f32 %v7363_v21, %v7359_v13  ;;  %v1789_v36 = vpop.permute.xlu1 %1788 }
 0x678   : > { %6835 = vmatmul.mubr.msk.f32.vlgmr.msra.gmra.mrb[6].mxu1 %vm1432_vm4, %v1609_v23 }
 0x679   : > { %6844 = vmatpush3.bf16.msra.mxu1 %v7220_v22  ;;  %6845 = vmatprep.mubr.msk.bf16.mxu1 %vm8024_vm2, %v8023_v29 }
 0x67a   : > { %6854 = vmatprep.subr.mxu1 %v8023_v29 }
 0x6d7   : > { %v1513_v24 = vpop.f32.mrb[4].mxu1 }
 0x6d8   : > { %v1517_v25 = vpack.c.bf16 %v1513_v24, %v1513_v24  ;;  %v6826_v26 = vpop.f32.mrb[5].mxu1 }
 0x6d9   : > { %v7223_v26 = vld [vmem:[%s8698_s6 + $0x18] sm:$0xff]  }
 0x6da   : > { %6846 = vmatmul.mubr.msk.bf16.vlgmr.msra.gmra.mrb[8].mxu1 %vm1354_vm3, %v1517_v25 }
 0x6db   : > { %6855 = vmatpush3.msra.mxu1 %v1879_v27  ;;  %6856 = vmatprep.mubr.msk.f32.mxu1 %vm8024_vm2, %v8023_v29 }
 0x6dc   : > { %6865 = vmatprep.subr.mxu1 %v8023_v29 }
 0x74b   : > { %v1683_v28 = vpop.f32.mrb[6].mxu1 }
 0x74c   : > { %v1687_v30 = vpack.c.bf16 %v1683_v28, %v1683_v28  ;;  %v6836_v33 = vpop.f32.mrb[7].mxu1 }
 0x74e   : > { %6840 = vmatmul.mubr.msk.bf16.vlgmr.msra.gmra.mrb[8].mxu0 %vm1354_vm3, %v1687_v30 }
 0x74f   : > { %6850 = vmatpush3.xpose.msk.msra.mxu0 %vm1354_vm3, %v1791_v34  ;;  %6851 = vmatprep.mubr.msk.f32.mxu0 %vm8024_vm2, %v8023_v29 }
 0x750   : > { %6859 = vmatprep.subr.bf16.mxu0 %v8023_v29 }
 0x756   : > { %6852 = vmatmul.mubr.msk.f32.vlgmr.msra.gmra.mrb[12].mxu0 %vm1354_vm3, %v1789_v36 }
 0x757   : > { %6861 = vmatprep.mubr.msk.bf16.mxu0 %vm8024_vm2, %v8023_v29  ;;  %6860 = vmatpush3.bf16.msra.mxu0 %v7222_v1 }
 0x758   : > { %6875 = vmatprep.subr.bf16.mxu0 %v8023_v29 }
 0x7ad   : > { %v1782_v37 = vpop.f32.mrb[8].mxu1 }
 0x7ae   : > { %v6847_v38 = vpop.f32.mrb[9].mxu1 }
 0x7af   : > { %v1785_v39 = vpop.f32.mrb[10].mxu1 }
 0x7b0   : > { %v6848_v40 = vpop.f32.mrb[11].mxu1 }
 0x821   : > { %v1733_v41 = vpop.f32.mrb[8].mxu0 }
 0x822   : > { %v1783_v43 = vadd.f32 %v1782_v37, %v1733_v41  ;;  %v6841_v44 = vpop.f32.mrb[9].mxu0 }
 0x823   : > { %v1736_v46 = vpop.f32.mrb[10].mxu0 }
 0x824   : > { %v6842_v47 = vpop.f32.mrb[11].mxu0 }
 0x829   : > { %v1862_v48 = vpop.f32.mrb[12].mxu0 }
 0x82a   : > { %v1866_v49 = vmul.f32 0.25, %v1862_v48  ;;  %v6853_v50 = vpop.f32.mrb[13].mxu0 }
 0x82c   : > { %v1867_v51 = vsel %vm1432_vm4, %v1866_v49, -inf }
 0x82d   : > { %1868 = vmax.xlane.f32.xlu1 %v1867_v51 }
 0x83e   : > { %2097 = vrot.lane.b32.xlu1 %v8826_v63, %s8027_s27 }
 0x842   : > { %2228 = vrot.lane.b32.xlu1 %v8786_v42, %s8028_s5 }
 0x8ba   : > { %v1869_v52 = vpop.xlane.xlu1 %1868 }
 0x8bb   : > { %v1870_v53 = vsub.f32 %v1866_v49, %v1869_v52 }
 0x8bd   : > { %v1871_v54 = vmul.f32 1.442695, %v1870_v53 }
 0x8be   : > { %v2098_v0 = vpop.permute.xlu1 %2097 }
 0x8bf   : > { %7364 = vpow2.f32 %v1871_v54 }
 0x8c2   : > { %v2229_v20 = vpop.permute.xlu1 %2228 }
 0x8c9   : > { %v7365_v55 = vpop.eup %7364 }
 0x8ca   : > { %v1873_v56 = vsel %vm1432_vm4, %v7365_v55, 0.0 }
 0x8cb   : > { %1874 = vadd.xlane.f32.xlu0 %v1873_v56  ;;  %v7224_v56 = vld [vmem:[%s8698_s6 + $0x20] sm:$0xff]  }
 0x8e1   : > { %2007 = vrot.lane.b32.xlu0 %v8793_v45, %s8027_s27 }
 0x958   : > { %v1875_v59 = vpop.xlane.xlu0 %1874 }
 0x959   : > { %7366 = vrcp.f32 %v1875_v59 }
 0x95c   : > { %v2008_v62 = vpop.permute.xlu0 %2007 }
 0x963   : > { %v7367_v60 = vpop.eup %7366 }
 0x964   : > { %v1877_v61 = vmul.f32 %v7367_v60, %v7365_v55 }
 0x966   : > { %6857 = vmatmul.mubr.msk.f32.vlgmr.msra.gmra.mrb[12].mxu1 %vm1432_vm4, %v1877_v61 }
 0x967   : > { %6866 = vmatpush3.xpose.msk.msra.mxu1 %vm1354_vm3, %v2010_v58  ;;  %6867 = vmatprep.mubr.msk.f32.mxu1 %vm8024_vm2, %v8023_v29 }
 0x968   : > { %6870 = vmatprep.subr.mxu1 %v8023_v29 }
 0x96a   : > { %6868 = vmatmul.mubr.msk.f32.vlgmr.msra.gmra.mrb[14].mxu1 %vm1354_vm3, %v2008_v62 }
 0x96b   : > { %6871 = vmatpush3.msra.mxu1 %v2098_v0  ;;  %6872 = vmatprep.mubr.msk.f32.mxu1 %vm8024_vm2, %v8023_v29 }
 0x96c   : > { %6881 = vmatprep.subr.mxu1 %v8023_v29 }
 0xa39   : > { %v1950_v2 = vpop.f32.mrb[12].mxu1 }
 0xa3a   : > { %v1954_v3 = vpack.c.bf16 %v1950_v2, %v1950_v2  ;;  %v6858_v4 = vpop.f32.mrb[13].mxu1 }
 0xa3c   : > { %6862 = vmatmul.mubr.msk.bf16.vlgmr.msra.gmra.mrb[16].mxu0 %vm1354_vm3, %v1954_v3 }
 0xa3d   : > { %v2081_v5 = vpop.f32.mrb[14].mxu1  ;;  %6877 = vmatprep.mubr.msk.bf16.mxu0 %vm8024_vm2, %v8023_v29  ;;  %6876 = vmatpush3.bf16.msra.mxu0 %v7223_v26 }
 0xa3e   : > { %v2085_v6 = vmul.f32 0.25, %v2081_v5  ;;  %v6869_v7 = vpop.f32.mrb[15].mxu1  ;;  %6891 = vmatprep.subr.bf16.mxu0 %v8023_v29 }
 0xa40   : > { %v2086_v8 = vsel %vm1432_vm4, %v2085_v6, -inf }
 0xa41   : > { %2087 = vmax.xlane.f32.xlu0 %v2086_v8 }
 0xa57   : > { %2316 = vrot.lane.b32.xlu0 %v8826_v63, %s8028_s5 }
 0xa5b   : > { %2447 = vrot.lane.b32.xlu0 %v8786_v42, %s8029_s24 }
 0xace   : > { %v2088_v9 = vpop.xlane.xlu0 %2087 }
 0xacf   : > { %v2089_v10 = vsub.f32 %v2085_v6, %v2088_v9 }
 0xad1   : > { %v2090_v11 = vmul.f32 1.442695, %v2089_v10 }
 0xad2   : > { %v2317_v25 = vpop.permute.xlu0 %2316 }
 0xad3   : > { %7368 = vpow2.f32 %v2090_v11 }
 0xad6   : > { %v2448_v50 = vpop.permute.xlu0 %2447 }
 0xadd   : > { %v7369_v13 = vpop.eup %7368 }
 0xade   : > { %v2092_v14 = vsel %vm1432_vm4, %v7369_v13, 0.0 }
 0xadf   : > { %2093 = vadd.xlane.f32.xlu1 %v2092_v14 }
 0xaf0   : > { %2226 = vrot.lane.b32.xlu1 %v8793_v45, %s8028_s5 }
 0xb0f   : > { %v2000_v15 = vpop.f32.mrb[16].mxu0 }
 0xb10   : > { %v2006_v16 = vadd.f32 %v2000_v15, %v1783_v43  ;;  %v6863_v17 = vpop.f32.mrb[17].mxu0 }
 0xb11   : > { %v2003_v18 = vpop.f32.mrb[18].mxu0 }
 0xb12   : > { %v6864_v19 = vpop.f32.mrb[19].mxu0  ;;  %v7225_v18 = vld [vmem:[%s8698_s6 + $0x28] sm:$0xff]  }
 0xb6c   : > { %v2094_v21 = vpop.xlane.xlu1 %2093 }
 0xb6d   : > { %7370 = vrcp.f32 %v2094_v21 }
 0xb70   : > { %v2227_v24 = vpop.permute.xlu1 %2226 }
 0xb77   : > { %v7371_v22 = vpop.eup %7370 }
 0xb78   : > { %v2096_v23 = vmul.f32 %v7371_v22, %v7369_v13 }
 0xb7a   : > { %6873 = vmatmul.mubr.msk.f32.vlgmr.msra.gmra.mrb[16].mxu1 %vm1432_vm4, %v2096_v23 }
 0xb7b   : > { %6882 = vmatpush3.xpose.msk.msra.mxu1 %vm1354_vm3, %v2229_v20  ;;  %6883 = vmatprep.mubr.msk.f32.mxu1 %vm8024_vm2, %v8023_v29 }
 0xb7c   : > { %6886 = vmatprep.subr.mxu1 %v8023_v29 }
 0xb7e   : > { %6884 = vmatmul.mubr.msk.f32.vlgmr.msra.gmra.mrb[18].mxu1 %vm1354_vm3, %v2227_v24 }
 0xb7f   : > { %6887 = vmatpush3.msra.mxu1 %v2317_v25  ;;  %6888 = vmatprep.mubr.msk.f32.mxu1 %vm8024_vm2, %v8023_v29 }
 0xb80   : > { %6897 = vmatprep.subr.mxu1 %v8023_v29 }
 0xc4d   : > { %v2169_v27 = vpop.f32.mrb[16].mxu1 }
 0xc4e   : > { %v2173_v28 = vpack.c.bf16 %v2169_v27, %v2169_v27  ;;  %v6874_v30 = vpop.f32.mrb[17].mxu1 }
 0xc50   : > { %6878 = vmatmul.mubr.msk.bf16.vlgmr.msra.gmra.mrb[20].mxu0 %vm1354_vm3, %v2173_v28 }
 0xc51   : > { %v2300_v33 = vpop.f32.mrb[18].mxu1  ;;  %6893 = vmatprep.mubr.msk.bf16.mxu0 %vm8024_vm2, %v8023_v29  ;;  %6892 = vmatpush3.bf16.msra.mxu0 %v7224_v56 }
 0xc52   : > { %v2304_v34 = vmul.f32 0.25, %v2300_v33  ;;  %v6885_v36 = vpop.f32.mrb[19].mxu1  ;;  %6907 = vmatprep.subr.bf16.mxu0 %v8023_v29 }
 0xc54   : > { %v2305_v37 = vsel %vm1432_vm4, %v2304_v34, -inf }
 0xc55   : > { %2306 = vmax.xlane.f32.xlu1 %v2305_v37 }
 0xc66   : > { %2535 = vrot.lane.b32.xlu1 %v8826_v63, %s8029_s24 }
 0xc6a   : > { %2666 = vrot.lane.b32.xlu1 %v8786_v42, %s8030_s10 }
 0xce2   : > { %v2307_v38 = vpop.xlane.xlu1 %2306 }
 0xce3   : > { %v2308_v39 = vsub.f32 %v2304_v34, %v2307_v38 }
 0xce5   : > { %v2309_v40 = vmul.f32 1.442695, %v2308_v39 }
 0xce6   : > { %v2536_v55 = vpop.permute.xlu1 %2535 }
 0xce7   : > { %7372 = vpow2.f32 %v2309_v40 }
 0xcea   : > { %v2667_v13 = vpop.permute.xlu1 %2666 }
 0xcf1   : > { %v7373_v41 = vpop.eup %7372 }
 0xcf2   : > { %v2311_v43 = vsel %vm1432_vm4, %v7373_v41, 0.0 }
 0xcf3   : > { %2312 = vadd.xlane.f32.xlu0 %v2311_v43 }
 0xd09   : > { %2445 = vrot.lane.b32.xlu0 %v8793_v45, %s8029_s24 }
 0xd23   : > { %v2219_v44 = vpop.f32.mrb[20].mxu0 }
 0xd24   : > { %v2225_v46 = vadd.f32 %v2219_v44, %v2006_v16  ;;  %v6879_v47 = vpop.f32.mrb[21].mxu0 }
 0xd25   : > { %v2222_v48 = vpop.f32.mrb[22].mxu0 }
 0xd26   : > { %v6880_v49 = vpop.f32.mrb[23].mxu0 }
 0xd80   : > { %v2313_v51 = vpop.xlane.xlu0 %2312 }
 0xd81   : > { %7374 = vrcp.f32 %v2313_v51 }
 0xd84   : > { %v2446_v54 = vpop.permute.xlu0 %2445 }
 0xd8b   : > { %v7375_v52 = vpop.eup %7374 }
 0xd8c   : > { %v2315_v53 = vmul.f32 %v7375_v52, %v7373_v41 }
 0xd8e   : > { %6889 = vmatmul.mubr.msk.f32.vlgmr.msra.gmra.mrb[20].mxu1 %vm1432_vm4, %v2315_v53 }
 0xd8f   : > { %6898 = vmatpush3.xpose.msk.msra.mxu1 %vm1354_vm3, %v2448_v50  ;;  %6899 = vmatprep.mubr.msk.f32.mxu1 %vm8024_vm2, %v8023_v29 }
 0xd90   : > { %6902 = vmatprep.subr.mxu1 %v8023_v29 }
 0xd92   : > { %6900 = vmatmul.mubr.msk.f32.vlgmr.msra.gmra.mrb[22].mxu1 %vm1354_vm3, %v2446_v54 }
 0xd93   : > { %6903 = vmatpush3.msra.mxu1 %v2536_v55  ;;  %6904 = vmatprep.mubr.msk.f32.mxu1 %vm8024_vm2, %v8023_v29 }
 0xd94   : > { %6913 = vmatprep.subr.mxu1 %v8023_v29 }
 0xe61   : > { %v2388_v58 = vpop.f32.mrb[20].mxu1 }
 0xe62   : > { %v2392_v59 = vpack.c.bf16 %v2388_v58, %v2388_v58  ;;  %v6890_v60 = vpop.f32.mrb[21].mxu1 }
 0xe63   : > { %v7227_v60 = vld [vmem:[%s8698_s6 + $0x38] sm:$0xff]  }
 0xe64   : > { %6894 = vmatmul.mubr.msk.bf16.vlgmr.msra.gmra.mrb[24].mxu0 %vm1354_vm3, %v2392_v59 }
 0xe65   : > { %v2519_v61 = vpop.f32.mrb[22].mxu1  ;;  %6909 = vmatprep.mubr.msk.bf16.mxu0 %vm8024_vm2, %v8023_v29  ;;  %6908 = vmatpush3.bf16.msra.mxu0 %v7225_v18  ;;  %v3148_v18 = vld [vmem:[%s8714_s29 + $0x40] sm:$0xff] }
 0xe66   : > { %v2523_v62 = vmul.f32 0.25, %v2519_v61  ;;  %v6901_v0 = vpop.f32.mrb[23].mxu1  ;;  %6923 = vmatprep.subr.bf16.mxu0 %v8023_v29 }
 0xe68   : > { %v2524_v1 = vsel %vm1432_vm4, %v2523_v62, -inf }
 0xe69   : > { %2525 = vmax.xlane.f32.xlu0 %v2524_v1 }
 0xe7f   : > { %2754 = vrot.lane.b32.xlu0 %v8826_v63, %s8030_s10 }
 0xe83   : > { %2885 = vrot.lane.b32.xlu0 %v8786_v42, %s8031_s26 }
 0xef6   : > { %v2526_v2 = vpop.xlane.xlu0 %2525 }
 0xef7   : > { %v2527_v3 = vsub.f32 %v2523_v62, %v2526_v2 }
 0xef9   : > { %v2528_v4 = vmul.f32 1.442695, %v2527_v3 }
 0xefa   : > { %v2755_v17 = vpop.permute.xlu0 %2754 }
 0xefb   : > { %7376 = vpow2.f32 %v2528_v4 }
 0xefe   : > { %v2886_v40 = vpop.permute.xlu0 %2885 }
 0xf05   : > { %v7377_v5 = vpop.eup %7376 }
 0xf06   : > { %v2530_v6 = vsel %vm1432_vm4, %v7377_v5, 0.0 }
 0xf07   : > { %2531 = vadd.xlane.f32.xlu1 %v2530_v6 }
 0xf18   : > { %2664 = vrot.lane.b32.xlu1 %v8793_v45, %s8030_s10 }
 0xf37   : > { %v2438_v7 = vpop.f32.mrb[24].mxu0 }
 0xf38   : > { %v2444_v8 = vadd.f32 %v2438_v7, %v2225_v46  ;;  %v6895_v9 = vpop.f32.mrb[25].mxu0  ;;  %v7226_v46 = vld [vmem:[%s8698_s6 + $0x30] sm:$0xff]   ;;  %s9481_s6 = scalar_lea.vmem [#allocation14], %s8683_s19 }
 0xf39   : > { %v2441_v10 = vpop.f32.mrb[26].mxu0  ;;  %v6265_v9 = vld [vmem:[%s9481_s6] ss:$0 sm:$0xff] }
 0xf3a   : > { %v6896_v11 = vpop.f32.mrb[27].mxu0 }
 0xf94   : > { %v2532_v14 = vpop.xlane.xlu1 %2531 }
 0xf95   : > { %7378 = vrcp.f32 %v2532_v14 }
 0xf98   : > { %v2665_v16 = vpop.permute.xlu1 %2664 }
 0xf9f   : > { %v7379_v42 = vpop.eup %7378 }
 0xfa0   : > { %v2534_v15 = vmul.f32 %v7379_v42, %v7377_v5 }
 0xfa2   : > { %6905 = vmatmul.mubr.msk.f32.vlgmr.msra.gmra.mrb[24].mxu1 %vm1432_vm4, %v2534_v15  ;;  %v7392_v15 = vld [vmem:[#allocation2] sm:$0xff] }
 0xfa3   : > { %6914 = vmatpush3.xpose.msk.msra.mxu1 %vm1354_vm3, %v2667_v13  ;;  %6915 = vmatprep.mubr.msk.f32.mxu1 %vm8024_vm2, %v8023_v29 }
 0xfa4   : > { %6918 = vmatprep.subr.mxu1 %v8023_v29 }
 0xfa6   : > { %6916 = vmatmul.mubr.msk.f32.vlgmr.msra.gmra.mrb[26].mxu1 %vm1354_vm3, %v2665_v16 }
 0xfa7   : > { %6919 = vmatpush3.msra.mxu1 %v2755_v17  ;;  %6920 = vmatprep.mubr.msk.f32.mxu1 %vm8024_vm2, %v8023_v29  ;;  %v3140_v17 = vld [vmem:[%s8714_s29] sm:$0xff] }
 0xfa8   : > { %6929 = vmatprep.subr.mxu1 %v8023_v29 }
0x1075   : > { %v2607_v19 = vpop.f32.mrb[24].mxu1 }
0x1076   : > { %v2611_v20 = vpack.c.bf16 %v2607_v19, %v2607_v19  ;;  %v6906_v21 = vpop.f32.mrb[25].mxu1  ;;  %v3141_v19 = vld [vmem:[%s8714_s29 + $0x8] sm:$0xff] }
0x1077   : > { %v6269_v21 = vcombine.high %v3140_v17, %v3148_v18 }
0x1078   : > { %6910 = vmatmul.mubr.msk.bf16.vlgmr.msra.gmra.mrb[28].mxu0 %vm1354_vm3, %v2611_v20  ;;  %v6268_v20 = vcombine.low %v3140_v17, %v3148_v18  ;;  %v3252_v18 = vld [vmem:[%s8714_s29 + $0x380] sm:$0xff] }
0x1079   : > { %v2738_v22 = vpop.f32.mrb[26].mxu1  ;;  %6925 = vmatprep.mubr.msk.bf16.mxu0 %vm8024_vm2, %v8023_v29  ;;  %6924 = vmatpush3.bf16.msra.mxu0 %v7226_v46 }
0x107a   : > { %v2742_v23 = vmul.f32 0.25, %v2738_v22  ;;  %v6917_v24 = vpop.f32.mrb[27].mxu1  ;;  %6939 = vmatprep.subr.bf16.mxu0 %v8023_v29  ;;  %v3149_v22 = vld [vmem:[%s8714_s29 + $0x48] sm:$0xff] }
0x107b   : > { %v3164_v24 = vld [vmem:[%s8714_s29 + $0xc0] sm:$0xff] }
0x107c   : > { %v2743_v25 = vsel %vm1432_vm4, %v2742_v23, -inf }
0x107d   : > { %2744 = vmax.xlane.f32.xlu1 %v2743_v25  ;;  %v6270_v25 = vcombine.low %v3141_v19, %v3149_v22 }
0x110a   : > { %v2745_v26 = vpop.xlane.xlu1 %2744 }
0x110b   : > { %v2746_v27 = vsub.f32 %v2742_v23, %v2745_v26  ;;  %v3156_v23 = vld [vmem:[%s8714_s29 + $0x80] sm:$0xff]  ;;  %v6271_v26 = vcombine.high %v3141_v19, %v3149_v22  ;;  %v3261_v22 = vld [vmem:[%s8714_s29 + $0x3c8] sm:$0xff] }
0x110c   : > { %v3260_v19 = vld [vmem:[%s8714_s29 + $0x3c0] sm:$0xff] }
0x110d   : > { %v2747_v28 = vmul.f32 1.442695, %v2746_v27  ;;  %v6285_v27 = vcombine.high %v3156_v23, %v3164_v24 }
0x110f   : > { %7380 = vpow2.f32 %v2747_v28  ;;  %v3157_v28 = vld [vmem:[%s8714_s29 + $0x88] sm:$0xff] }
0x1119   : > { %v7381_v30 = vpop.eup %7380 }
0x111a   : > { %v2749_v33 = vsel %vm1432_vm4, %v7381_v30, 0.0 }
0x111b   : > { %2750 = vadd.xlane.f32.xlu0 %v2749_v33  ;;  %v3172_v33 = vld [vmem:[%s8714_s29 + $0x100] sm:$0xff] }
0x1131   : > { %2883 = vrot.lane.b32.xlu0 %v8793_v45, %s8031_s26 }
0x114b   : > { %v2657_v34 = vpop.f32.mrb[28].mxu0 }
0x114c   : > { %v2663_v36 = vadd.f32 %v2657_v34, %v2444_v8  ;;  %v6911_v37 = vpop.f32.mrb[29].mxu0 }
0x114d   : > { %v2660_v38 = vpop.f32.mrb[30].mxu0  ;;  %v3173_v37 = vld [vmem:[%s8714_s29 + $0x108] sm:$0xff] }
0x114e   : > { %v6912_v39 = vpop.f32.mrb[31].mxu0  ;;  %v3181_v38 = vld [vmem:[%s8714_s29 + $0x148] sm:$0xff] }
0x114f   : > { %v6284_v39 = vcombine.low %v3156_v23, %v3164_v24  ;;  %v6380_v23 = vcombine.low %v3252_v18, %v3260_v19 }
0x11a8   : > { %v2751_v41 = vpop.xlane.xlu0 %2750 }
0x11a9   : > { %7382 = vrcp.f32 %v2751_v41 }
0x11ac   : > { %v2884_v45 = vpop.permute.xlu0 %2883 }
0x11b3   : > { %v7383_v43 = vpop.eup %7382 }
0x11b4   : > { %v2753_v44 = vmul.f32 %v7383_v43, %v7381_v30  ;;  %v3165_v30 = vld [vmem:[%s8714_s29 + $0xc8] sm:$0xff]  ;;  %v6303_v43 = vcombine.high %v3173_v37, %v3181_v38 }
0x11b5   : > { %v6287_v34 = vcombine.high %v3157_v28, %v3165_v30 }
0x11b6   : > { %6921 = vmatmul.mubr.msk.f32.vlgmr.msra.gmra.mrb[28].mxu1 %vm1432_vm4, %v2753_v44 }
0x11b7   : > { %6930 = vmatpush3.xpose.msk.msra.mxu1 %vm1354_vm3, %v2886_v40  ;;  %6931 = vmatprep.mubr.msk.f32.mxu1 %vm8024_vm2, %v8023_v29  ;;  %v6286_v40 = vcombine.low %v3157_v28, %v3165_v30  ;;  %v3143_v28 = vld [vmem:[%s8714_s29 + $0x18] sm:$0xff] }
0x11b8   : > { %6934 = vmatprep.subr.mxu1 %v8023_v29 }
0x11ba   : > { %6932 = vmatmul.mubr.msk.f32.vlgmr.msra.gmra.mrb[30].mxu1 %vm1354_vm3, %v2884_v45  ;;  %v6302_v45 = vcombine.low %v3173_v37, %v3181_v38 }
0x11bb   : > { %6936 = vmatprep.mubr.msk.f32.mxu1 %vm8024_vm2, %v8023_v29 }
0x1289   : > { %v2826_v47 = vpop.f32.mrb[28].mxu1 }
0x128a   : > { %v2830_v48 = vpack.c.bf16 %v2826_v47, %v2826_v47  ;;  %v6922_v49 = vpop.f32.mrb[29].mxu1 }
0x128c   : > { %6926 = vmatmul.mubr.msk.bf16.vlgmr.msra.gmra.mrb[32].mxu0 %vm1354_vm3, %v2830_v48 }
0x128d   : > { %v2957_v50 = vpop.f32.mrb[30].mxu1  ;;  %6941 = vmatprep.mubr.msk.bf16.mxu0 %vm8024_vm2, %v8023_v29  ;;  %6940 = vmatpush3.bf16.msra.mxu0 %v7227_v60  ;;  %v3212_v60 = vld [vmem:[%s8714_s29 + $0x240] sm:$0xff] }
0x128e   : > { %v2961_v51 = vmul.f32 0.25, %v2957_v50  ;;  %v6933_v52 = vpop.f32.mrb[31].mxu1  ;;  %4033 = vmatprep.subr.bf16.mxu0 %v6271_v26  ;;  %v3188_v50 = vld [vmem:[%s8714_s29 + $0x180] sm:$0xff]  ;;  %v3142_v26 = vld [vmem:[%s8714_s29 + $0x10] sm:$0xff] }
0x128f   : > { %v3189_v52 = vld [vmem:[%s8714_s29 + $0x188] sm:$0xff] }
0x1290   : > { %v2962_v53 = vsel %vm1432_vm4, %v2961_v51, -inf }
0x1291   : > { %2963 = vmax.xlane.f32.xlu0 %v2962_v53 }
0x131e   : > { %v2964_v54 = vpop.xlane.xlu0 %2963 }
0x131f   : > { %v2965_v55 = vsub.f32 %v2961_v51, %v2964_v54  ;;  %v3196_v51 = vld [vmem:[%s8714_s29 + $0x1c0] sm:$0xff]  ;;  %v3197_v54 = vld [vmem:[%s8714_s29 + $0x1c8] sm:$0xff] }
0x1320   : > { %v6317_v53 = vcombine.high %v3188_v50, %v3196_v51 }
0x1321   : > { %v2966_v56 = vmul.f32 1.442695, %v2965_v55  ;;  %v6316_v55 = vcombine.low %v3188_v50, %v3196_v51  ;;  %v3159_v50 = vld [vmem:[%s8714_s29 + $0x98] sm:$0xff] }
0x1322   : > { %v3167_v51 = vld [vmem:[%s8714_s29 + $0xd8] sm:$0xff] }
0x1323   : > { %7384 = vpow2.f32 %v2966_v56  ;;  %v6318_v56 = vcombine.low %v3189_v52, %v3197_v54 }
0x132d   : > { %v7385_v58 = vpop.eup %7384 }
0x132e   : > { %v2968_v59 = vsel %vm1432_vm4, %v7385_v58, 0.0 }
0x132f   : > { %2969 = vadd.xlane.f32.xlu1 %v2968_v59  ;;  %v3204_v59 = vld [vmem:[%s8714_s29 + $0x200] sm:$0xff] }
0x1340   : > { %2973 = vrot.lane.b32.xlu1 %v8826_v63, %s8031_s26 }
0x135f   : > { %v2876_v61 = vpop.f32.mrb[32].mxu0 }
0x1360   : > { %v2882_v29 = vadd.f32 %v2876_v61, %v2663_v36  ;;  %v6927_v62 = vpop.f32.mrb[33].mxu0  ;;  %v3180_v36 = vld [vmem:[%s8714_s29 + $0x140] sm:$0xff]  ;;  %v3205_v61 = vld [vmem:[%s8714_s29 + $0x208] sm:$0xff] }
0x1361   : > { %v2879_v0 = vpop.f32.mrb[34].mxu0  ;;  %v6301_v41 = vcombine.high %v3172_v33, %v3180_v36  ;;  %v6300_v44 = vcombine.low %v3172_v33, %v3180_v36  ;;  %v3213_v62 = vld [vmem:[%s8714_s29 + $0x248] sm:$0xff] }
0x1362   : > { %v6928_v1 = vpop.f32.mrb[35].mxu0  ;;  %v6332_v0 = vcombine.low %v3204_v59, %v3212_v60 }
0x1363   : > { %v6334_v1 = vcombine.low %v3205_v61, %v3213_v62 }
0x13bc   : > { %v2970_v2 = vpop.xlane.xlu1 %2969 }
0x13bd   : > { %7386 = vrcp.f32 %v2970_v2  ;;  %v6335_v2 = vcombine.high %v3205_v61, %v3213_v62  ;;  %v6290_v61 = vcombine.low %v3159_v50, %v3167_v51 }
0x13c0   : > { %v2974_v3 = vpop.permute.xlu1 %2973 }
0x13c1   : > { %6935 = vmatpush3.msra.mxu1 %v2974_v3  ;;  %v3220_v3 = vld [vmem:[%s8714_s29 + $0x280] sm:$0xff] }
0x13c2   : > { %3992 = vmatprep.subr.bf16.mxu1 %v6269_v21  ;;  %v6381_v21 = vcombine.high %v3252_v18, %v3260_v19  ;;  %v3231_v18 = vld [vmem:[%s8714_s29 + $0x2d8] sm:$0xff] }
0x13c7   : > { %v7387_v4 = vpop.eup %7386 }
0x13c8   : > { %v2972_v5 = vmul.f32 %v7387_v4, %v7385_v58  ;;  %v6319_v58 = vcombine.high %v3189_v52, %v3197_v54  ;;  %v3228_v4 = vld [vmem:[%s8714_s29 + $0x2c0] sm:$0xff] }
0x13ca   : > { %6937 = vmatmul.mubr.msk.f32.vlgmr.msra.gmra.mrb[32].mxu1 %vm1432_vm4, %v2972_v5  ;;  %v3221_v5 = vld [vmem:[%s8714_s29 + $0x288] sm:$0xff] }
0x13cb   : > { %4024 = vmatprep.mubr.bf16.mxu1 %v8022_v12  ;;  %3993 = vmatpush1.bf16.msra.mxu1 %v6268_v20  ;;  %v3253_v20 = vld [vmem:[%s8714_s29 + $0x388] sm:$0xff] }
0x13cc   : > { %3994 = vmatprep.subr.bf16.mxu1 %v6285_v27  ;;  %v6382_v24 = vcombine.low %v3253_v20, %v3261_v22  ;;  %v3150_v27 = vld [vmem:[%s8714_s29 + $0x50] sm:$0xff] }
0x13cd   : > { %v6272_v30 = vcombine.low %v3142_v26, %v3150_v27  ;;  %v6273_v33 = vcombine.high %v3142_v26, %v3150_v27  ;;  %v3247_v26 = vld [vmem:[%s8714_s29 + $0x358] sm:$0xff] }
0x13cf   : > { %3995 = vmatpush1.bf16.msra.mxu1 %v6284_v39 }
0x13d0   : > { %3996 = vmatprep.subr.bf16.mxu1 %v6301_v41 }
0x13d3   : > { %3997 = vmatpush1.bf16.msra.mxu1 %v6300_v44 }
0x13d4   : > { %3998 = vmatprep.subr.bf16.mxu1 %v6317_v53 }
0x13d7   : > { %3999 = vmatpush1.bf16.msra.mxu1 %v6316_v55  ;;  %v6291_v55 = vcombine.high %v3159_v50, %v3167_v51 }
0x149d   : > { %v3045_v63 = vpop.f32.mrb[32].mxu1 }
0x149e   : > { %v3049_v6 = vpack.c.bf16 %v3045_v63, %v3045_v63  ;;  %v6938_v7 = vpop.f32.mrb[33].mxu1  ;;  %v6349_v63 = vcombine.high %v3220_v3, %v3228_v4 }
0x149f   : > { %v6348_v7 = vcombine.low %v3220_v3, %v3228_v4  ;;  %v3199_v3 = vld [vmem:[%s8714_s29 + $0x1d8] sm:$0xff] }
0x14a0   : > { %6942 = vmatmul.mubr.msk.bf16.vlgmr.msra.gmra.mrb[36].mxu0 %vm1354_vm3, %v3049_v6  ;;  %v3229_v6 = vld [vmem:[%s8714_s29 + $0x2c8] sm:$0xff] }
0x14a1   : > { %4065 = vmatprep.mubr.bf16.mxu0 %v8022_v12  ;;  %4034 = vmatpush1.bf16.msra.mxu0 %v6270_v25  ;;  %v6383_v25 = vcombine.high %v3253_v20, %v3261_v22 }
0x14a2   : > { %4035 = vmatprep.subr.bf16.mxu0 %v6287_v34  ;;  %v3151_v34 = vld [vmem:[%s8714_s29 + $0x58] sm:$0xff] }
0x14a3   : > { %v6274_v36 = vcombine.low %v3143_v28, %v3151_v34  ;;  %v6275_v37 = vcombine.high %v3143_v28, %v3151_v34  ;;  %v3254_v34 = vld [vmem:[%s8714_s29 + $0x390] sm:$0xff] }
0x14a5   : > { %4036 = vmatpush1.bf16.msra.mxu0 %v6286_v40 }
0x14a6   : > { %4037 = vmatprep.subr.bf16.mxu0 %v6303_v43  ;;  %v6266_v43 = vld [vmem:[%s9482_s22] ss:$0 sm:$0xff] }
0x14a9   : > { %4038 = vmatpush1.bf16.msra.mxu0 %v6302_v45  ;;  %v6267_v45 = vld [vmem:[%s9483_s17] ss:$0 sm:$0xff] }
0x14aa   : > { %4039 = vmatprep.subr.bf16.mxu0 %v6319_v58  ;;  %v3175_v58 = vld [vmem:[%s8714_s29 + $0x118] sm:$0xff] }
0x14ad   : > { %4040 = vmatpush1.bf16.msra.mxu0 %v6318_v56  ;;  %v3174_v56 = vld [vmem:[%s8714_s29 + $0x110] sm:$0xff] }
0x14ae   : > { %4041 = vmatprep.subr.bf16.mxu0 %v6335_v2  ;;  %v3191_v2 = vld [vmem:[%s8714_s29 + $0x198] sm:$0xff] }
0x14b1   : > { %4042 = vmatpush1.bf16.msra.mxu0 %v6334_v1  ;;  %v3198_v1 = vld [vmem:[%s8714_s29 + $0x1d0] sm:$0xff] }
0x1573   : > { %v3095_v8 = vpop.f32.mrb[36].mxu0 }
0x1574   : > { %v3101_v10 = vadd.f32 %v3095_v8, %v2882_v29  ;;  %v6943_v11 = vpop.f32.mrb[37].mxu0  ;;  %v6333_v29 = vcombine.high %v3204_v59, %v3212_v60  ;;  %v6350_v8 = vcombine.low %v3221_v5, %v3229_v6  ;;  %v3183_v59 = vld [vmem:[%s8714_s29 + $0x158] sm:$0xff] }
0x1575   : > { %v3098_v13 = vpop.f32.mrb[38].mxu0  ;;  %v3244_v11 = vld [vmem:[%s8714_s29 + $0x340] sm:$0xff]  ;;  %v6307_v62 = vcombine.high %v3175_v58, %v3183_v59 }
0x1576   : > { %v3109_v14 = vadd.f32 %v6265_v9, %v3101_v10  ;;  %v6944_v42 = vpop.f32.mrb[39].mxu0  ;;  %4000 = vmatprep.subr.bf16.mxu1 %v6333_v29  ;;  %v6351_v9 = vcombine.high %v3221_v5, %v3229_v6  ;;  %v3236_v10 = vld [vmem:[%s8714_s29 + $0x300] sm:$0xff]  ;;  %v3237_v13 = vld [vmem:[%s8714_s29 + $0x308] sm:$0xff]  ;;  %v6306_v5 = vcombine.low %v3175_v58, %v3183_v59  ;;  %v6323_v6 = vcombine.high %v3191_v2, %v3199_v3 }
0x1577   : > { %4001 = vmatpush1.bf16.msra.mxu1 %v6332_v0  ;;  %v3245_v42 = vld [vmem:[%s8714_s29 + $0x348] sm:$0xff]  ;;  %v3190_v0 = vld [vmem:[%s8714_s29 + $0x190] sm:$0xff] }
0x1578   : > { %v3110_v16 = vadd.f32 %v7392_v15, %v3109_v14  ;;  %4002 = vmatprep.subr.bf16.mxu1 %v6349_v63  ;;  %4043 = vmatprep.subr.bf16.mxu0 %v6351_v9  ;;  %v6365_v14 = vcombine.high %v3236_v10, %v3244_v11  ;;  %v6364_v15 = vcombine.low %v3236_v10, %v3244_v11  ;;  %v3207_v9 = vld [vmem:[%s8714_s29 + $0x218] sm:$0xff]  ;;  %v3169_v58 = vld [vmem:[%s8714_s29 + $0xe8] sm:$0xff] }
0x1579   : > { %4044 = vmatpush1.bf16.msra.mxu0 %v6350_v8  ;;  %v6367_v17 = vcombine.high %v3237_v13, %v3245_v42  ;;  %v6321_v63 = vcombine.high %v3190_v0, %v3198_v1  ;;  %v3214_v8 = vld [vmem:[%s8714_s29 + $0x250] sm:$0xff]  ;;  %v3215_v10 = vld [vmem:[%s8714_s29 + $0x258] sm:$0xff]  ;;  %v6320_v11 = vcombine.low %v3190_v0, %v3198_v1  ;;  %v3184_v0 = vld [vmem:[%s8714_s29 + $0x160] sm:$0xff] }
0x157a   : > { %3113 = vadd.xlane.f32.xlu1 %v3110_v16  ;;  %v6338_v20 = vcombine.low %v3207_v9, %v3215_v10  ;;  %v3177_v1 = vld [vmem:[%s8714_s29 + $0x128] sm:$0xff] }
0x157b   : > { %4003 = vmatpush1.bf16.msra.mxu1 %v6348_v7  ;;  %4045 = vmatprep.subr.bf16.mxu0 %v6367_v17  ;;  %v3206_v7 = vld [vmem:[%s8714_s29 + $0x210] sm:$0xff]  ;;  %v3223_v17 = vld [vmem:[%s8714_s29 + $0x298] sm:$0xff] }
0x157c   : > { %4004 = vmatprep.subr.bf16.mxu1 %v6365_v14  ;;  %v6337_v14 = vcombine.high %v3206_v7, %v3214_v8  ;;  %v6336_v19 = vcombine.low %v3206_v7, %v3214_v8  ;;  %v6355_v22 = vcombine.high %v3223_v17, %v3231_v18  ;;  %v6354_v28 = vcombine.low %v3223_v17, %v3231_v18  ;;  %v3200_v7 = vld [vmem:[%s8714_s29 + $0x1e0] sm:$0xff]  ;;  %v3193_v8 = vld [vmem:[%s8714_s29 + $0x1a8] sm:$0xff] }
0x157d   : > { %v3217_v17 = vld [vmem:[%s8714_s29 + $0x268] sm:$0xff] }
0x157f   : > { %4005 = vmatpush1.bf16.msra.mxu1 %v6364_v15  ;;  %v3222_v15 = vld [vmem:[%s8714_s29 + $0x290] sm:$0xff] }
0x1580   : > { %4006 = vmatprep.subr.bf16.mxu1 %v6381_v21 }
0x1583   : > { %4007 = vmatpush1.bf16.msra.mxu1 %v6380_v23  ;;  %v3238_v23 = vld [vmem:[%s8714_s29 + $0x310] sm:$0xff] }
0x1584   : > { %4074 = vmatprep.subr.bf16.mxu1 %v6273_v33 }
0x1607   : > { %v3114_v46 = vpop.xlane.xlu1 %3113 }
0x1608   : > { %v3116_v47 = vmul.f32 0.0078125, %v3114_v46 }
0x160a   : > { %v8991_v48 = vsub.f32 %v3110_v16, %v3116_v47  ;;  %v6366_v16 = vcombine.low %v3237_v13, %v3245_v42  ;;  %v3158_v47 = vld [vmem:[%s8714_s29 + $0x90] sm:$0xff]  ;;  %v6322_v13 = vcombine.low %v3191_v2, %v3199_v3  ;;  %v6339_v42 = vcombine.high %v3207_v9, %v3215_v10  ;;  %v3185_v2 = vld [vmem:[%s8714_s29 + $0x168] sm:$0xff] }
0x160b   : > { %v3201_v9 = vld [vmem:[%s8714_s29 + $0x1e8] sm:$0xff] }
0x160c   : > { %v3118_v49 = vmul.f32 %v8991_v48, %v8991_v48  ;;  %4046 = vmatpush1.bf16.msra.mxu0 %v6366_v16  ;;  %v3230_v16 = vld [vmem:[%s8714_s29 + $0x2d0] sm:$0xff] }
0x160d   : > { %4047 = vmatprep.subr.bf16.mxu0 %v6383_v25  ;;  %v6353_v21 = vcombine.high %v3222_v15, %v3230_v16  ;;  %v3239_v25 = vld [vmem:[%s8714_s29 + $0x318] sm:$0xff]  ;;  %v6352_v27 = vcombine.low %v3222_v15, %v3230_v16  ;;  %v3216_v15 = vld [vmem:[%s8714_s29 + $0x260] sm:$0xff]  ;;  %v3209_v16 = vld [vmem:[%s8714_s29 + $0x228] sm:$0xff] }
0x160e   : > { %3119 = vadd.xlane.f32.xlu0 %v3118_v49  ;;  %v3166_v49 = vld [vmem:[%s8714_s29 + $0xd0] sm:$0xff]  ;;  %v6371_v33 = vcombine.high %v3239_v25, %v3247_v26 }
0x160f   : > { %v6289_v54 = vcombine.high %v3158_v47, %v3166_v49  ;;  %v6288_v60 = vcombine.low %v3158_v47, %v3166_v49  ;;  %v3153_v47 = vld [vmem:[%s8714_s29 + $0x68] sm:$0xff] }
0x1610   : > { %4048 = vmatpush1.bf16.msra.mxu0 %v6382_v24  ;;  %v3246_v24 = vld [vmem:[%s8714_s29 + $0x350] sm:$0xff] }
0x1611   : > { %4115 = vmatprep.subr.bf16.mxu0 %v6275_v37  ;;  %v3255_v37 = vld [vmem:[%s8714_s29 + $0x398] sm:$0xff] }
0x169b   : > { %v3120_v38 = vpop.xlane.xlu0 %3119 }
0x169c   : > { %v3121_v39 = vmul.f32 0.0078125, %v3120_v38  ;;  %v3263_v38 = vld [vmem:[%s8714_s29 + $0x3d8] sm:$0xff] }
0x169d   : > { %v6386_v50 = vcombine.low %v3255_v37, %v3263_v38 }
0x169e   : > { %v3122_v40 = vadd.f32 1e-05, %v3121_v39  ;;  %v6368_v39 = vcombine.low %v3238_v23, %v3246_v24 }
0x16a0   : > { %7388 = vrsqrt.f32 %v3122_v40  ;;  %v6370_v40 = vcombine.low %v3239_v25, %v3247_v26  ;;  %v3233_v25 = vld [vmem:[%s8714_s29 + $0x2e8] sm:$0xff] }
0x16aa   : > { %v7389_v41 = vpop.eup %7388 }
0x16ab   : > { %v3124_v44 = vmul.f32 %v7389_v41, %v8991_v48  ;;  %v3182_v48 = vld [vmem:[%s8714_s29 + $0x150] sm:$0xff] }
0x16ac   : > { %v6305_v29 = vcombine.high %v3174_v56, %v3182_v48  ;;  %v6304_v4 = vcombine.low %v3174_v56, %v3182_v48  ;;  %v3168_v56 = vld [vmem:[%s8714_s29 + $0xe0] sm:$0xff]  ;;  %v3161_v48 = vld [vmem:[%s8714_s29 + $0xa8] sm:$0xff] }
0x16ad   : > { %v3131_v46 = vmul.f32 %v6266_v43, %v3124_v44  ;;  %v6387_v43 = vcombine.high %v3255_v37, %v3263_v38  ;;  %v3144_v44 = vld [vmem:[%s8714_s29 + $0x20] sm:$0xff]  ;;  %v3249_v37 = vld [vmem:[%s8714_s29 + $0x368] sm:$0xff] }
0x16af   : > { %v9028_v52 = vadd.f32 %v6267_v45, %v3131_v46  ;;  %v3152_v45 = vld [vmem:[%s8714_s29 + $0x60] sm:$0xff]  ;;  %v3145_v46 = vld [vmem:[%s8714_s29 + $0x28] sm:$0xff] }
0x16b0   : > { %v6277_v51 = vcombine.high %v3144_v44, %v3152_v45  ;;  %v6276_v59 = vcombine.low %v3144_v44, %v3152_v45  ;;  %v3264_v44 = vld [vmem:[%s8714_s29 + $0x3e0] sm:$0xff]  ;;  %v3257_v45 = vld [vmem:[%s8714_s29 + $0x3a8] sm:$0xff] }
0x16b1   : > { %v9032_v53 = vpack.c.bf16 %v9028_v52, %v9028_v52 }
0x16b3   : > { %4025 = vmatmul.mubr.bf16.vlgmr.msra.gmra.mrb[36].mxu1 %v9032_v53  ;;  %4066 = vmatmul.mubr.bf16.vlgmr.msra.gmra.mrb[40].mxu0 %v9032_v53 }
0x16b4   : > { %4075 = vmatpush1.bf16.msra.mxu1 %v6272_v30  ;;  %4116 = vmatpush1.bf16.msra.mxu0 %v6274_v36  ;;  %v6369_v30 = vcombine.high %v3238_v23, %v3246_v24  ;;  %v3262_v36 = vld [vmem:[%s8714_s29 + $0x3d0] sm:$0xff]  ;;  %v3232_v23 = vld [vmem:[%s8714_s29 + $0x2e0] sm:$0xff]  ;;  %v3225_v24 = vld [vmem:[%s8714_s29 + $0x2a8] sm:$0xff] }
0x16b5   : > { %4076 = vmatprep.subr.bf16.mxu1 %v6289_v54  ;;  %4117 = vmatprep.subr.bf16.mxu0 %v6291_v55  ;;  %v6385_v41 = vcombine.high %v3254_v34, %v3262_v36  ;;  %v6384_v49 = vcombine.low %v3254_v34, %v3262_v36  ;;  %v6279_v54 = vcombine.high %v3145_v46, %v3153_v47  ;;  %v3160_v55 = vld [vmem:[%s8714_s29 + $0xa0] sm:$0xff]  ;;  %v3241_v36 = vld [vmem:[%s8714_s29 + $0x328] sm:$0xff] }
0x16b6   : > { %4106 = vmatprep.mubr.bf16.mxu1 %v8022_v12  ;;  %4147 = vmatprep.mubr.bf16.mxu0 %v8022_v12  ;;  %v6292_v3 = vcombine.low %v3160_v55, %v3168_v56  ;;  %v3248_v34 = vld [vmem:[%s8714_s29 + $0x360] sm:$0xff] }
0x16b8   : > { %4077 = vmatpush1.bf16.msra.mxu1 %v6288_v60  ;;  %4118 = vmatpush1.bf16.msra.mxu0 %v6290_v61  ;;  %v6278_v60 = vcombine.low %v3145_v46, %v3153_v47  ;;  %v6293_v61 = vcombine.high %v3160_v55, %v3168_v56  ;;  %v3265_v46 = vld [vmem:[%s8714_s29 + $0x3e8] sm:$0xff]  ;;  %v3154_v55 = vld [vmem:[%s8714_s29 + $0x70] sm:$0xff]  ;;  %v3147_v56 = vld [vmem:[%s8714_s29 + $0x38] sm:$0xff] }
0x16b9   : > { %4078 = vmatprep.subr.bf16.mxu1 %v6305_v29  ;;  %4119 = vmatprep.subr.bf16.mxu0 %v6307_v62  ;;  %v6295_v29 = vcombine.high %v3161_v48, %v3169_v58  ;;  %v3176_v62 = vld [vmem:[%s8714_s29 + $0x120] sm:$0xff] }
0x16ba   : > { %v6308_v10 = vcombine.low %v3176_v62, %v3184_v0 }
0x16bc   : > { %4079 = vmatpush1.bf16.msra.mxu1 %v6304_v4  ;;  %4120 = vmatpush1.bf16.msra.mxu0 %v6306_v5  ;;  %v6294_v4 = vcombine.low %v3161_v48, %v3169_v58  ;;  %v6309_v5 = vcombine.high %v3176_v62, %v3184_v0  ;;  %v3155_v48 = vld [vmem:[%s8714_s29 + $0x78] sm:$0xff]  ;;  %v3170_v62 = vld [vmem:[%s8714_s29 + $0xf0] sm:$0xff] }
0x16bd   : > { %4080 = vmatprep.subr.bf16.mxu1 %v6321_v63  ;;  %4121 = vmatprep.subr.bf16.mxu0 %v6323_v6  ;;  %v6311_v63 = vcombine.high %v3177_v1, %v3185_v2  ;;  %v3192_v6 = vld [vmem:[%s8714_s29 + $0x1a0] sm:$0xff]  ;;  %v3163_v0 = vld [vmem:[%s8714_s29 + $0xb8] sm:$0xff] }
0x16be   : > { %v6324_v18 = vcombine.low %v3192_v6, %v3200_v7 }
0x16c0   : > { %4081 = vmatpush1.bf16.msra.mxu1 %v6320_v11  ;;  %4122 = vmatpush1.bf16.msra.mxu0 %v6322_v13  ;;  %v6310_v11 = vcombine.low %v3177_v1, %v3185_v2  ;;  %v6325_v13 = vcombine.high %v3192_v6, %v3200_v7  ;;  %v3171_v1 = vld [vmem:[%s8714_s29 + $0xf8] sm:$0xff]  ;;  %v3186_v6 = vld [vmem:[%s8714_s29 + $0x170] sm:$0xff] }
0x16c1   : > { %4082 = vmatprep.subr.bf16.mxu1 %v6337_v14  ;;  %4123 = vmatprep.subr.bf16.mxu0 %v6339_v42  ;;  %v6327_v14 = vcombine.high %v3193_v8, %v3201_v9  ;;  %v3208_v42 = vld [vmem:[%s8714_s29 + $0x220] sm:$0xff]  ;;  %v3179_v7 = vld [vmem:[%s8714_s29 + $0x138] sm:$0xff] }
0x16c2   : > { %v6340_v26 = vcombine.low %v3208_v42, %v3216_v15 }
0x16c4   : > { %4083 = vmatpush1.bf16.msra.mxu1 %v6336_v19  ;;  %4124 = vmatpush1.bf16.msra.mxu0 %v6338_v20  ;;  %v6326_v19 = vcombine.low %v3193_v8, %v3201_v9  ;;  %v6341_v20 = vcombine.high %v3208_v42, %v3216_v15  ;;  %v3187_v8 = vld [vmem:[%s8714_s29 + $0x178] sm:$0xff]  ;;  %v3202_v42 = vld [vmem:[%s8714_s29 + $0x1f0] sm:$0xff] }
0x16c5   : > { %4084 = vmatprep.subr.bf16.mxu1 %v6353_v21  ;;  %4125 = vmatprep.subr.bf16.mxu0 %v6355_v22  ;;  %v6343_v21 = vcombine.high %v3209_v16, %v3217_v17  ;;  %v3224_v22 = vld [vmem:[%s8714_s29 + $0x2a0] sm:$0xff]  ;;  %v3195_v15 = vld [vmem:[%s8714_s29 + $0x1b8] sm:$0xff] }
0x16c6   : > { %v6356_v38 = vcombine.low %v3224_v22, %v3232_v23 }
0x16c8   : > { %4085 = vmatpush1.bf16.msra.mxu1 %v6352_v27  ;;  %4126 = vmatpush1.bf16.msra.mxu0 %v6354_v28  ;;  %v6342_v27 = vcombine.low %v3209_v16, %v3217_v17  ;;  %v6357_v28 = vcombine.high %v3224_v22, %v3232_v23  ;;  %v3203_v16 = vld [vmem:[%s8714_s29 + $0x1f8] sm:$0xff]  ;;  %v3218_v22 = vld [vmem:[%s8714_s29 + $0x270] sm:$0xff] }
0x16c9   : > { %4086 = vmatprep.subr.bf16.mxu1 %v6369_v30  ;;  %4127 = vmatprep.subr.bf16.mxu0 %v6371_v33  ;;  %v6359_v30 = vcombine.high %v3225_v24, %v3233_v25  ;;  %v3240_v33 = vld [vmem:[%s8714_s29 + $0x320] sm:$0xff]  ;;  %v3211_v23 = vld [vmem:[%s8714_s29 + $0x238] sm:$0xff] }
0x16ca   : > { %v6372_v47 = vcombine.low %v3240_v33, %v3248_v34 }
0x16cc   : > { %4087 = vmatpush1.bf16.msra.mxu1 %v6368_v39  ;;  %4128 = vmatpush1.bf16.msra.mxu0 %v6370_v40  ;;  %v6358_v39 = vcombine.low %v3225_v24, %v3233_v25  ;;  %v6373_v40 = vcombine.high %v3240_v33, %v3248_v34  ;;  %v3219_v24 = vld [vmem:[%s8714_s29 + $0x278] sm:$0xff] }
0x16cd   : > { %4088 = vmatprep.subr.bf16.mxu1 %v6385_v41  ;;  %4129 = vmatprep.subr.bf16.mxu0 %v6387_v43  ;;  %v6375_v41 = vcombine.high %v3241_v36, %v3249_v37  ;;  %v3256_v43 = vld [vmem:[%s8714_s29 + $0x3a0] sm:$0xff]  ;;  %v3227_v33 = vld [vmem:[%s8714_s29 + $0x2b8] sm:$0xff] }
0x16ce   : > { %v6388_v58 = vcombine.low %v3256_v43, %v3264_v44  ;;  %v3235_v34 = vld [vmem:[%s8714_s29 + $0x2f8] sm:$0xff] }
0x16d0   : > { %4089 = vmatpush1.bf16.msra.mxu1 %v6384_v49  ;;  %4130 = vmatpush1.bf16.msra.mxu0 %v6386_v50  ;;  %v6374_v49 = vcombine.low %v3241_v36, %v3249_v37  ;;  %v6389_v50 = vcombine.high %v3256_v43, %v3264_v44  ;;  %v6346_v37 = vcombine.low %v3211_v23, %v3219_v24  ;;  %v3243_v43 = vld [vmem:[%s8714_s29 + $0x338] sm:$0xff] }
0x16d1   : > { %4156 = vmatprep.subr.bf16.mxu1 %v6277_v51  ;;  %4197 = vmatprep.subr.bf16.mxu0 %v6279_v54  ;;  %v6391_v51 = vcombine.high %v3257_v45, %v3265_v46  ;;  %v3146_v54 = vld [vmem:[%s8714_s29 + $0x30] sm:$0xff]  ;;  %v3251_v44 = vld [vmem:[%s8714_s29 + $0x378] sm:$0xff] }
0x16d2   : > { %v6280_v2 = vcombine.low %v3146_v54, %v3154_v55 }
0x16d3   : > { %4107 = vmatmul.mubr.bf16.vlgmr.msra.gmra.mrb[40].mxu1 %v9032_v53  ;;  %4148 = vmatmul.mubr.bf16.vlgmr.msra.gmra.mrb[44].mxu0 %v9032_v53 }
0x16d4   : > { %4157 = vmatpush1.bf16.msra.mxu1 %v6276_v59  ;;  %4198 = vmatpush1.bf16.msra.mxu0 %v6278_v60  ;;  %v6390_v59 = vcombine.low %v3257_v45, %v3265_v46  ;;  %v6281_v60 = vcombine.high %v3146_v54, %v3154_v55  ;;  %v6362_v46 = vcombine.low %v3227_v33, %v3235_v34  ;;  %v3259_v54 = vld [vmem:[%s8714_s29 + $0x3b8] sm:$0xff] }
0x16d5   : > { %4158 = vmatprep.subr.bf16.mxu1 %v6293_v61  ;;  %4199 = vmatprep.subr.bf16.mxu0 %v6295_v29  ;;  %v6283_v61 = vcombine.high %v3147_v56, %v3155_v48  ;;  %v3162_v29 = vld [vmem:[%s8714_s29 + $0xb0] sm:$0xff]  ;;  %v3267_v55 = vld [vmem:[%s8714_s29 + $0x3f8] sm:$0xff] }
0x16d6   : > { %4188 = vmatprep.mubr.bf16.mxu1 %v8022_v12  ;;  %4229 = vmatprep.mubr.bf16.mxu0 %v8022_v12  ;;  %v6296_v9 = vcombine.low %v3162_v29, %v3170_v62 }
0x16d8   : > { %4159 = vmatpush1.bf16.msra.mxu1 %v6292_v3  ;;  %4200 = vmatpush1.bf16.msra.mxu0 %v6294_v4  ;;  %v6282_v3 = vcombine.low %v3147_v56, %v3155_v48  ;;  %v6297_v4 = vcombine.high %v3162_v29, %v3170_v62  ;;  %v6378_v48 = vcombine.low %v3243_v43, %v3251_v44  ;;  %v7228_v29 = vld [vmem:[%s8724_s14 + $0x40] sm:$0xff]  }
0x16d9   : > { %4160 = vmatprep.subr.bf16.mxu1 %v6309_v5  ;;  %4201 = vmatprep.subr.bf16.mxu0 %v6311_v63  ;;  %v6299_v5 = vcombine.high %v3163_v0, %v3171_v1  ;;  %v3178_v63 = vld [vmem:[%s8714_s29 + $0x130] sm:$0xff]  ;;  %v7229_v62 = vld [vmem:[%s8724_s14 + $0xc0] sm:$0xff]  }
0x16da   : > { %v6312_v17 = vcombine.low %v3178_v63, %v3186_v6 }
0x16dc   : > { %4161 = vmatpush1.bf16.msra.mxu1 %v6308_v10  ;;  %4202 = vmatpush1.bf16.msra.mxu0 %v6310_v11  ;;  %v6298_v10 = vcombine.low %v3163_v0, %v3171_v1  ;;  %v6313_v11 = vcombine.high %v3178_v63, %v3186_v6  ;;  %v7230_v0 = vld [vmem:[%s8724_s14] sm:$0xff]   ;;  %v7236_v63 = vld [vmem:[%s8724_s14 + $0x50] sm:$0xff]  }
0x16dd   : > { %4162 = vmatprep.subr.bf16.mxu1 %v6325_v13  ;;  %4203 = vmatprep.subr.bf16.mxu0 %v6327_v14  ;;  %v6315_v13 = vcombine.high %v3179_v7, %v3187_v8  ;;  %v3194_v14 = vld [vmem:[%s8714_s29 + $0x1b0] sm:$0xff]  ;;  %v7231_v1 = vld [vmem:[%s8724_s14 + $0x80] sm:$0xff]  }
0x16de   : > { %v6328_v25 = vcombine.low %v3194_v14, %v3202_v42  ;;  %v7237_v6 = vld [vmem:[%s8724_s14 + $0xd0] sm:$0xff]  }
0x16e0   : > { %4163 = vmatpush1.bf16.msra.mxu1 %v6324_v18  ;;  %4204 = vmatpush1.bf16.msra.mxu0 %v6326_v19  ;;  %v6314_v18 = vcombine.low %v3179_v7, %v3187_v8  ;;  %v6329_v19 = vcombine.high %v3194_v14, %v3202_v42  ;;  %v7238_v7 = vld [vmem:[%s8724_s14 + $0x10] sm:$0xff]   ;;  %v7245_v14 = vld [vmem:[%s8724_s14 + $0xe0] sm:$0xff]  }
0x16e1   : > { %4164 = vmatprep.subr.bf16.mxu1 %v6341_v20  ;;  %4205 = vmatprep.subr.bf16.mxu0 %v6343_v21  ;;  %v6331_v20 = vcombine.high %v3195_v15, %v3203_v16  ;;  %v3210_v21 = vld [vmem:[%s8714_s29 + $0x230] sm:$0xff]  ;;  %v7246_v42 = vld [vmem:[%s8724_s14 + $0x20] sm:$0xff]  }
0x16e2   : > { %v6344_v36 = vcombine.low %v3210_v21, %v3218_v22  ;;  %v7239_v8 = vld [vmem:[%s8724_s14 + $0x90] sm:$0xff]  }
0x16e4   : > { %4165 = vmatpush1.bf16.msra.mxu1 %v6340_v26  ;;  %4206 = vmatpush1.bf16.msra.mxu0 %v6342_v27  ;;  %v6345_v26 = vcombine.high %v3210_v21, %v3218_v22  ;;  %v6347_v27 = vcombine.high %v3211_v23, %v3219_v24  ;;  %v7253_v21 = vld [vmem:[%s8724_s14 + $0xf0] sm:$0xff]   ;;  %v7256_v24 = vld [vmem:[%s8724_s14 + $0x78] sm:$0xff]  }
0x16e5   : > { %4166 = vmatprep.subr.bf16.mxu1 %v6357_v28  ;;  %4207 = vmatprep.subr.bf16.mxu0 %v6359_v30  ;;  %v3226_v28 = vld [vmem:[%s8714_s29 + $0x2b0] sm:$0xff] }
0x16e6   : > { %v3234_v30 = vld [vmem:[%s8714_s29 + $0x2f0] sm:$0xff] }
0x16e7   : > { %v6360_v45 = vcombine.low %v3226_v28, %v3234_v30  ;;  %v7254_v22 = vld [vmem:[%s8724_s14 + $0x30] sm:$0xff]  }
0x16e8   : > { %4167 = vmatpush1.bf16.msra.mxu1 %v6356_v38  ;;  %4208 = vmatpush1.bf16.msra.mxu0 %v6358_v39  ;;  %v6361_v38 = vcombine.high %v3226_v28, %v3234_v30  ;;  %v6363_v39 = vcombine.high %v3227_v33, %v3235_v34  ;;  %v7255_v23 = vld [vmem:[%s8724_s14 + $0xb0] sm:$0xff]   ;;  %v7261_v28 = vld [vmem:[%s8724_s14 + $0x1c0] sm:$0xff]   ;;  %v3286_v33 = vsub.s32 3, %v8767_v31 }
0x16e9   : > { %4168 = vmatprep.subr.bf16.mxu1 %v6373_v40  ;;  %4209 = vmatprep.subr.bf16.mxu0 %v6375_v41  ;;  %v3242_v40 = vld [vmem:[%s8714_s29 + $0x330] sm:$0xff] }
0x16ea   : > { %v3250_v41 = vld [vmem:[%s8714_s29 + $0x370] sm:$0xff] }
0x16eb   : > { %v6376_v56 = vcombine.low %v3242_v40, %v3250_v41  ;;  %v9171_v30 = vld [vmem:[%s8721_s30] sm:$0xff] }
0x16ec   : > { %4169 = vmatpush1.bf16.msra.mxu1 %v6372_v47  ;;  %4210 = vmatpush1.bf16.msra.mxu0 %v6374_v49  ;;  %v6377_v47 = vcombine.high %v3242_v40, %v3250_v41  ;;  %v6379_v49 = vcombine.high %v3243_v43, %v3251_v44  ;;  %v3275_v34 = vrot.slane %v9171_v30, %v8777_v35 }
0x16ed   : > { %4170 = vmatprep.subr.bf16.mxu1 %v6389_v50  ;;  %4211 = vmatprep.subr.bf16.mxu0 %v6391_v51  ;;  %v3258_v50 = vld [vmem:[%s8714_s29 + $0x3b0] sm:$0xff] }
0x16ee   : > { %v3266_v51 = vld [vmem:[%s8714_s29 + $0x3f0] sm:$0xff] }
0x16f0   : > { %4171 = vmatpush1.bf16.msra.mxu1 %v6388_v58  ;;  %4212 = vmatpush1.bf16.msra.mxu0 %v6390_v59  ;;  %v6393_v58 = vcombine.high %v3258_v50, %v3266_v51  ;;  %v6395_v59 = vcombine.high %v3259_v54, %v3267_v55 }
0x16f1   : > { %4238 = vmatprep.subr.bf16.mxu1 %v6281_v60  ;;  %4279 = vmatprep.subr.bf16.mxu0 %v6283_v61  ;;  %v6392_v60 = vcombine.low %v3258_v50, %v3266_v51  ;;  %v6394_v61 = vcombine.low %v3259_v54, %v3267_v55 }
0x16f3   : > { %4189 = vmatmul.mubr.bf16.vlgmr.msra.gmra.mrb[44].mxu1 %v9032_v53  ;;  %4230 = vmatmul.mubr.bf16.vlgmr.msra.gmra.mrb[48].mxu0 %v9032_v53 }
0x16f4   : > { %4239 = vmatpush1.bf16.msra.mxu1 %v6280_v2  ;;  %4280 = vmatpush1.bf16.msra.mxu0 %v6282_v3  ;;  %v7232_v2 = vld [vmem:[%s8724_s14 + $0x48] sm:$0xff]  }
0x16f5   : > { %4240 = vmatprep.subr.bf16.mxu1 %v6297_v4  ;;  %4281 = vmatprep.subr.bf16.mxu0 %v6299_v5  ;;  %v7233_v3 = vld [vmem:[%s8724_s14 + $0xc8] sm:$0xff]  }
0x16f6   : > { %4270 = vmatprep.mubr.bf16.mxu1 %v8022_v12  ;;  %4311 = vmatprep.mubr.bf16.mxu0 %v8022_v12  ;;  %v6330_v12 = vcombine.low %v3195_v15, %v3203_v16  ;;  %v7234_v4 = vld [vmem:[%s8724_s14 + $0x8] sm:$0xff]   ;;  %v7247_v15 = vld [vmem:[%s8724_s14 + $0xa0] sm:$0xff]  }
0x16f7   : > { %v7235_v5 = vld [vmem:[%s8724_s14 + $0x88] sm:$0xff]  }
0x16f8   : > { %4241 = vmatpush1.bf16.msra.mxu1 %v6296_v9  ;;  %4282 = vmatpush1.bf16.msra.mxu0 %v6298_v10  ;;  %v7241_v9 = vld [vmem:[%s8724_s14 + $0xd8] sm:$0xff]   ;;  %v7248_v16 = vld [vmem:[%s8724_s14 + $0x68] sm:$0xff]  }
0x16f9   : > { %4242 = vmatprep.subr.bf16.mxu1 %v6313_v11  ;;  %4283 = vmatprep.subr.bf16.mxu0 %v6315_v13  ;;  %v7242_v10 = vld [vmem:[%s8724_s14 + $0x18] sm:$0xff]   ;;  %v7244_v13 = vld [vmem:[%s8724_s14 + $0x60] sm:$0xff]  }
0x16fa   : > { %v7243_v11 = vld [vmem:[%s8724_s14 + $0x98] sm:$0xff]  }
0x16fc   : > { %4243 = vmatpush1.bf16.msra.mxu1 %v6312_v17  ;;  %4284 = vmatpush1.bf16.msra.mxu0 %v6314_v18  ;;  %v7249_v17 = vld [vmem:[%s8724_s14 + $0xe8] sm:$0xff]  }
0x16fd   : > { %4244 = vmatprep.subr.bf16.mxu1 %v6329_v19  ;;  %4285 = vmatprep.subr.bf16.mxu0 %v6331_v20  ;;  %v7250_v18 = vld [vmem:[%s8724_s14 + $0x28] sm:$0xff]   ;;  %v7252_v20 = vld [vmem:[%s8724_s14 + $0x70] sm:$0xff]  }
0x16fe   : > { %v7251_v19 = vld [vmem:[%s8724_s14 + $0xa8] sm:$0xff]  }
0x1700   : > { %4245 = vmatpush1.bf16.msra.mxu1 %v6328_v25  ;;  %4286 = vmatpush1.bf16.msra.mxu0 %v6330_v12  ;;  %v7257_v25 = vld [vmem:[%s8724_s14 + $0xf8] sm:$0xff]  }
0x1701   : > { %4246 = vmatprep.subr.bf16.mxu1 %v6345_v26  ;;  %4287 = vmatprep.subr.bf16.mxu0 %v6347_v27  ;;  %v7258_v12 = vld [vmem:[%s8724_s14 + $0x38] sm:$0xff]   ;;  %v7260_v27 = vld [vmem:[%s8724_s14 + $0x140] sm:$0xff]  }
0x1702   : > { %v7259_v26 = vld [vmem:[%s8724_s14 + $0xb8] sm:$0xff]  }
0x1704   : > { %4247 = vmatpush1.bf16.msra.mxu1 %v6344_v36  ;;  %4288 = vmatpush1.bf16.msra.mxu0 %v6346_v37  ;;  %v3283_v36 = vrot.slane %v9171_v30, %v8822_v57  ;;  %v3279_v37 = vrot.slane %v9171_v30, %v8770_v32 }
0x1705   : > { %4248 = vmatprep.subr.bf16.mxu1 %v6361_v38  ;;  %4289 = vmatprep.subr.bf16.mxu0 %v6363_v39  ;;  %v3287_v38 = vrot.slane %v9171_v30, %v3286_v33 }
0x1708   : > { %4249 = vmatpush1.bf16.msra.mxu1 %v6360_v45  ;;  %4290 = vmatpush1.bf16.msra.mxu0 %v6362_v46 }
0x1709   : > { %4250 = vmatprep.subr.bf16.mxu1 %v6377_v47  ;;  %4291 = vmatprep.subr.bf16.mxu0 %v6379_v49 }
0x170c   : > { %4251 = vmatpush1.bf16.msra.mxu1 %v6376_v56  ;;  %4292 = vmatpush1.bf16.msra.mxu0 %v6378_v48 }
0x170d   : > { %4252 = vmatprep.subr.bf16.mxu1 %v6393_v58  ;;  %4293 = vmatprep.subr.bf16.mxu0 %v6395_v59 }
0x1710   : > { %4253 = vmatpush1.bf16.msra.mxu1 %v6392_v60  ;;  %4294 = vmatpush1.bf16.msra.mxu0 %v6394_v61  ;;  %v7262_v61 = vld [vmem:[%s8724_s14 + $0x100] sm:$0xff]  }
0x1711   : > { %6597 = vmatprep.subr.bf16.mxu1 %v7228_v29  ;;  %6619 = vmatprep.subr.bf16.mxu0 %v7229_v62  ;;  %v7263_v29 = vld [vmem:[%s8724_s14 + $0x180] sm:$0xff]  }
0x1713   : > { %4271 = vmatmul.mubr.bf16.vlgmr.msra.gmra.mrb[48].mxu1 %v9032_v53  ;;  %4312 = vmatmul.mubr.bf16.vlgmr.msra.gmra.mrb[52].mxu0 %v9032_v53  ;;  %v7240_v53 = vld [vmem:[%s8724_s14 + $0x58] sm:$0xff]  }
0x1714   : > { %6598 = vmatpush3.bf16.msra.mxu1 %v7230_v0  ;;  %6620 = vmatpush3.bf16.msra.mxu0 %v7231_v1  ;;  %v7264_v1 = vld [vmem:[%s8724_s14 + $0x148] sm:$0xff]  }
0x1715   : > { %6599 = vmatprep.subr.bf16.mxu1 %v7232_v2  ;;  %6621 = vmatprep.subr.bf16.mxu0 %v7233_v3  ;;  %v7265_v2 = vld [vmem:[%s8724_s14 + $0x1c8] sm:$0xff]  }
0x1716   : > { %v7266_v3 = vld [vmem:[%s8724_s14 + $0x108] sm:$0xff]  }
0x1718   : > { %6600 = vmatpush3.bf16.msra.mxu1 %v7234_v4  ;;  %6622 = vmatpush3.bf16.msra.mxu0 %v7235_v5  ;;  %v7267_v4 = vld [vmem:[%s8724_s14 + $0x188] sm:$0xff]   ;;  %v7268_v5 = vld [vmem:[%s8724_s14 + $0x150] sm:$0xff]  }
0x1719   : > { %6601 = vmatprep.subr.bf16.mxu1 %v7236_v63  ;;  %6623 = vmatprep.subr.bf16.mxu0 %v7237_v6  ;;  %v7269_v63 = vld [vmem:[%s8724_s14 + $0x1d0] sm:$0xff]  }
0x171a   : > { %v7270_v6 = vld [vmem:[%s8724_s14 + $0x110] sm:$0xff]  }
0x171c   : > { %6602 = vmatpush3.bf16.msra.mxu1 %v7238_v7  ;;  %6624 = vmatpush3.bf16.msra.mxu0 %v7239_v8  ;;  %v7271_v7 = vld [vmem:[%s8724_s14 + $0x190] sm:$0xff]   ;;  %v7272_v8 = vld [vmem:[%s8724_s14 + $0x158] sm:$0xff]  }
0x171d   : > { %6603 = vmatprep.subr.bf16.mxu1 %v7240_v53  ;;  %6625 = vmatprep.subr.bf16.mxu0 %v7241_v9  ;;  %v7273_v53 = vld [vmem:[%s8724_s14 + $0x1d8] sm:$0xff]  }
0x171e   : > { %v7274_v9 = vld [vmem:[%s8724_s14 + $0x118] sm:$0xff]  }
0x1720   : > { %6604 = vmatpush3.bf16.msra.mxu1 %v7242_v10  ;;  %6626 = vmatpush3.bf16.msra.mxu0 %v7243_v11  ;;  %v7275_v10 = vld [vmem:[%s8724_s14 + $0x198] sm:$0xff]   ;;  %v7276_v11 = vld [vmem:[%s8724_s14 + $0x160] sm:$0xff]  }
0x1721   : > { %6605 = vmatprep.subr.bf16.mxu1 %v7244_v13  ;;  %6627 = vmatprep.subr.bf16.mxu0 %v7245_v14  ;;  %v7277_v13 = vld [vmem:[%s8724_s14 + $0x1e0] sm:$0xff]  }
0x1722   : > { %v7278_v14 = vld [vmem:[%s8724_s14 + $0x120] sm:$0xff]  }
0x1724   : > { %6606 = vmatpush3.bf16.msra.mxu1 %v7246_v42  ;;  %6628 = vmatpush3.bf16.msra.mxu0 %v7247_v15  ;;  %v7279_v42 = vld [vmem:[%s8724_s14 + $0x1a0] sm:$0xff]   ;;  %v7280_v15 = vld [vmem:[%s8724_s14 + $0x168] sm:$0xff]  }
0x1725   : > { %6607 = vmatprep.subr.bf16.mxu1 %v7248_v16  ;;  %6629 = vmatprep.subr.bf16.mxu0 %v7249_v17  ;;  %v7281_v16 = vld [vmem:[%s8724_s14 + $0x1e8] sm:$0xff]   ;;  %v3290_v17 = vsub.s32 4, %v8767_v31 }
0x1728   : > { %6608 = vmatpush3.bf16.msra.mxu1 %v7250_v18  ;;  %6630 = vmatpush3.bf16.msra.mxu0 %v7251_v19  ;;  %v3298_v18 = vsub.s32 6, %v8767_v31  ;;  %v7282_v19 = vld [vmem:[%s8724_s14 + $0x128] sm:$0xff]  }
0x1729   : > { %6609 = vmatprep.subr.bf16.mxu1 %v7252_v20  ;;  %6631 = vmatprep.subr.bf16.mxu0 %v7253_v21  ;;  %v7283_v20 = vld [vmem:[%s8724_s14 + $0x1a8] sm:$0xff]   ;;  %v3294_v21 = vsub.s32 5, %v8767_v31 }
0x172c   : > { %6610 = vmatpush3.bf16.msra.mxu1 %v7254_v22  ;;  %6632 = vmatpush3.bf16.msra.mxu0 %v7255_v23  ;;  %v3302_v22 = vsub.s32 7, %v8767_v31  ;;  %v7284_v23 = vld [vmem:[%s8724_s14 + $0x170] sm:$0xff]  }
0x172d   : > { %6611 = vmatprep.subr.bf16.mxu1 %v7256_v24  ;;  %6633 = vmatprep.subr.bf16.mxu0 %v7257_v25  ;;  %v7285_v24 = vld [vmem:[%s8724_s14 + $0x1f0] sm:$0xff]   ;;  %v3291_v25 = vrot.slane %v9171_v30, %v3290_v17 }
0x1730   : > { %6612 = vmatpush3.bf16.msra.mxu1 %v7258_v12  ;;  %6634 = vmatpush3.bf16.msra.mxu0 %v7259_v26  ;;  %v3299_v12 = vrot.slane %v9171_v30, %v3298_v18  ;;  %v3295_v26 = vrot.slane %v9171_v30, %v3294_v21 }
0x1731   : > { %6641 = vmatprep.subr.bf16.mxu1 %v7260_v27  ;;  %6663 = vmatprep.subr.bf16.mxu0 %v7261_v28  ;;  %v3303_v27 = vrot.slane %v9171_v30, %v3302_v22  ;;  %v7286_v28 = vld [vmem:[%s8724_s14 + $0x130] sm:$0xff]  }
0x1786   : > { %v4026_v39 = vpop.f32.mrb[36].mxu1  ;;  %v4067_v40 = vpop.f32.mrb[40].mxu0 }
0x1787   : > { %v4027_v41 = vadd.f32 %v4026_v39, %v3275_v34  ;;  %v4068_v43 = vadd.f32 %v4067_v40, %v3283_v36  ;;  %v4028_v44 = vpop.f32.mrb[37].mxu1  ;;  %v4069_v45 = vpop.f32.mrb[41].mxu0  ;;  %v7287_v34 = vld [vmem:[%s8724_s14 + $0x1b0] sm:$0xff]   ;;  %v7288_v36 = vld [vmem:[%s8724_s14 + $0x178] sm:$0xff]  }
0x1788   : > { %v4029_v46 = vadd.f32 %v4028_v44, %v3279_v37  ;;  %v4070_v47 = vadd.f32 %v4069_v45, %v3287_v38  ;;  %v4030_v49 = vpop.f32.mrb[38].mxu1  ;;  %v4071_v50 = vpop.f32.mrb[42].mxu0  ;;  %v7289_v37 = vld [vmem:[%s8724_s14 + $0x1f8] sm:$0xff]  }
0x1789   : > { %v4320_v51 = vmax.f32 %v4027_v41, 0.0  ;;  %v4322_v54 = vmax.f32 %v4068_v43, 0.0  ;;  %v4031_v55 = vpop.f32.mrb[39].mxu1  ;;  %v4072_v56 = vpop.f32.mrb[43].mxu0  ;;  %v7290_v49 = vld [vmem:[%s8724_s14 + $0x138] sm:$0xff]  }
0x178a   : > { %v4321_v48 = vmax.f32 %v4029_v46, 0.0  ;;  %v4323_v58 = vmax.f32 %v4070_v47, 0.0  ;;  %v7291_v50 = vld [vmem:[%s8724_s14 + $0x1b8] sm:$0xff]  }
0x178b   : > { %v4336_v62 = vpack.c.bf16 %v4320_v51, %v4320_v51  ;;  %v4338_v0 = vpack.c.bf16 %v4322_v54, %v4322_v54 }
0x178c   : > { %v4337_v59 = vpack.c.bf16 %v4321_v48, %v4321_v48  ;;  %v4339_v60 = vpack.c.bf16 %v4323_v58, %v4323_v58  ;;  %v7292_v48 = vld [vmem:[%s8724_s14 + $0x240] sm:$0xff]  }
0x178d   : > { %v7293_v58 = vld [vmem:[%s8724_s14 + $0x2c0] sm:$0xff]  }
0x178e   : > { %5415 = vmatprep.mubr.bf16.mxu1 %v4337_v59  ;;  %5455 = vmatprep.mubr.bf16.mxu0 %v4339_v60 }
0x178f   : > { %5416 = vmatmul.mubr.bf16.vlgmr.msra.gmra.mrb[52].mxu1 %v4336_v62  ;;  %5456 = vmatmul.mubr.bf16.vlgmr.msra.gmra.mrb[56].mxu0 %v4338_v0  ;;  %v7294_v62 = vld [vmem:[%s8724_s14 + $0x200] sm:$0xff]  }
0x1790   : > { %6642 = vmatpush3.bf16.msra.mxu1 %v7262_v61  ;;  %6664 = vmatpush3.bf16.msra.mxu0 %v7263_v29  ;;  %v7295_v0 = vld [vmem:[%s8724_s14 + $0x280] sm:$0xff]  }
0x1791   : > { %6643 = vmatprep.subr.bf16.mxu1 %v7264_v1  ;;  %6665 = vmatprep.subr.bf16.mxu0 %v7265_v2 }
0x1794   : > { %6644 = vmatpush3.bf16.msra.mxu1 %v7266_v3  ;;  %6666 = vmatpush3.bf16.msra.mxu0 %v7267_v4  ;;  %v7296_v3 = vld [vmem:[%s8724_s14 + $0x248] sm:$0xff]  }
0x1795   : > { %6645 = vmatprep.subr.bf16.mxu1 %v7268_v5  ;;  %6667 = vmatprep.subr.bf16.mxu0 %v7269_v63  ;;  %v7297_v4 = vld [vmem:[%s8724_s14 + $0x2c8] sm:$0xff]  }
0x1796   : > { %v7298_v5 = vld [vmem:[%s8724_s14 + $0x208] sm:$0xff]  }
0x1797   : > { %v7299_v63 = vld [vmem:[%s8724_s14 + $0x288] sm:$0xff]  }
0x1798   : > { %6646 = vmatpush3.bf16.msra.mxu1 %v7270_v6  ;;  %6668 = vmatpush3.bf16.msra.mxu0 %v7271_v7  ;;  %v7300_v6 = vld [vmem:[%s8724_s14 + $0x250] sm:$0xff]  }
0x1799   : > { %6647 = vmatprep.subr.bf16.mxu1 %v7272_v8  ;;  %6669 = vmatprep.subr.bf16.mxu0 %v7273_v53  ;;  %v7301_v7 = vld [vmem:[%s8724_s14 + $0x2d0] sm:$0xff]  }
0x179a   : > { %v7302_v8 = vld [vmem:[%s8724_s14 + $0x210] sm:$0xff]  }
0x179b   : > { %v7303_v53 = vld [vmem:[%s8724_s14 + $0x290] sm:$0xff]  }
0x179c   : > { %6648 = vmatpush3.bf16.msra.mxu1 %v7274_v9  ;;  %6670 = vmatpush3.bf16.msra.mxu0 %v7275_v10  ;;  %v7304_v9 = vld [vmem:[%s8724_s14 + $0x258] sm:$0xff]  }
0x179d   : > { %6649 = vmatprep.subr.bf16.mxu1 %v7276_v11  ;;  %6671 = vmatprep.subr.bf16.mxu0 %v7277_v13  ;;  %v7305_v10 = vld [vmem:[%s8724_s14 + $0x2d8] sm:$0xff]  }
0x179e   : > { %v7306_v11 = vld [vmem:[%s8724_s14 + $0x218] sm:$0xff]  }
0x179f   : > { %v7307_v13 = vld [vmem:[%s8724_s14 + $0x298] sm:$0xff]  }
0x17a0   : > { %6650 = vmatpush3.bf16.msra.mxu1 %v7278_v14  ;;  %6672 = vmatpush3.bf16.msra.mxu0 %v7279_v42  ;;  %v7308_v14 = vld [vmem:[%s8724_s14 + $0x260] sm:$0xff]  }
0x17a1   : > { %6651 = vmatprep.subr.bf16.mxu1 %v7280_v15  ;;  %6673 = vmatprep.subr.bf16.mxu0 %v7281_v16  ;;  %v7309_v42 = vld [vmem:[%s8724_s14 + $0x2e0] sm:$0xff]  }
0x17a2   : > { %v7310_v15 = vld [vmem:[%s8724_s14 + $0x220] sm:$0xff]  }
0x17a3   : > { %v7311_v16 = vld [vmem:[%s8724_s14 + $0x2a0] sm:$0xff]  }
0x17a4   : > { %6652 = vmatpush3.bf16.msra.mxu1 %v7282_v19  ;;  %6674 = vmatpush3.bf16.msra.mxu0 %v7283_v20  ;;  %v7312_v19 = vld [vmem:[%s8724_s14 + $0x268] sm:$0xff]  }
0x17a5   : > { %6653 = vmatprep.subr.bf16.mxu1 %v7284_v23  ;;  %6675 = vmatprep.subr.bf16.mxu0 %v7285_v24  ;;  %v7313_v20 = vld [vmem:[%s8724_s14 + $0x2e8] sm:$0xff]  }
0x17a6   : > { %v4108_v38 = vpop.f32.mrb[40].mxu1  ;;  %v4149_v39 = vpop.f32.mrb[44].mxu0  ;;  %v7314_v23 = vld [vmem:[%s8724_s14 + $0x228] sm:$0xff]  }
0x17a7   : > { %v4109_v40 = vadd.f32 %v4108_v38, %v3291_v25  ;;  %v4150_v41 = vadd.f32 %v4149_v39, %v3299_v12  ;;  %v4110_v43 = vpop.f32.mrb[41].mxu1  ;;  %v4151_v44 = vpop.f32.mrb[45].mxu0  ;;  %v7315_v24 = vld [vmem:[%s8724_s14 + $0x2a8] sm:$0xff]   ;;  %v7316_v12 = vld [vmem:[%s8724_s14 + $0x270] sm:$0xff]   ;;  %v7320_v39 = vld [vmem:[%s8724_s14 + $0x278] sm:$0xff]  }
0x17a8   : > { %v4111_v45 = vadd.f32 %v4110_v43, %v3295_v26  ;;  %v4152_v46 = vadd.f32 %v4151_v44, %v3303_v27  ;;  %v4112_v47 = vpop.f32.mrb[42].mxu1  ;;  %v4153_v30 = vpop.f32.mrb[46].mxu0  ;;  %6654 = vmatpush3.bf16.msra.mxu1 %v7286_v28  ;;  %6676 = vmatpush3.bf16.msra.mxu0 %v7287_v34  ;;  %v9254_v25 = vld [vmem:[%s8721_s30 + $0x8] sm:$0xff]  ;;  %v7317_v26 = vld [vmem:[%s8724_s14 + $0x2f0] sm:$0xff]  }
0x17a9   : > { %v4324_v51 = vmax.f32 %v4109_v40, 0.0  ;;  %v4326_v54 = vmax.f32 %v4150_v41, 0.0  ;;  %v4113_v55 = vpop.f32.mrb[43].mxu1  ;;  %v4154_v56 = vpop.f32.mrb[47].mxu0  ;;  %6655 = vmatprep.subr.bf16.mxu1 %v7288_v36  ;;  %6677 = vmatprep.subr.bf16.mxu0 %v7289_v37  ;;  %v3307_v27 = vrot.slane %v9254_v25, %v8777_v35  ;;  %v3315_v28 = vrot.slane %v9254_v25, %v8822_v57  ;;  %v7318_v37 = vld [vmem:[%s8724_s14 + $0x230] sm:$0xff]   ;;  %v7321_v35 = vld [vmem:[%s8724_s14 + $0x2f8] sm:$0xff]  }
0x17aa   : > { %v4325_v59 = vmax.f32 %v4111_v45, 0.0  ;;  %v4327_v60 = vmax.f32 %v4152_v46, 0.0  ;;  %v3311_v34 = vrot.slane %v9254_v25, %v8770_v32  ;;  %v3319_v36 = vrot.slane %v9254_v25, %v3286_v33  ;;  %v7319_v38 = vld [vmem:[%s8724_s14 + $0x2b0] sm:$0xff]   ;;  %v7322_v30 = vld [vmem:[%s8724_s14 + $0x238] sm:$0xff]   ;;  %v7324_v56 = vld [vmem:[%s8724_s14 + $0x340] sm:$0xff]  }
0x17ab   : > { %v4340_v1 = vpack.c.bf16 %v4324_v51, %v4324_v51  ;;  %v4342_v2 = vpack.c.bf16 %v4326_v54, %v4326_v54 }
0x17ac   : > { %v4341_v61 = vpack.c.bf16 %v4325_v59, %v4325_v59  ;;  %v4343_v29 = vpack.c.bf16 %v4327_v60, %v4327_v60  ;;  %6656 = vmatpush3.bf16.msra.mxu1 %v7290_v49  ;;  %6678 = vmatpush3.bf16.msra.mxu0 %v7291_v50  ;;  %v7323_v49 = vld [vmem:[%s8724_s14 + $0x2b8] sm:$0xff]  }
0x17ad   : > { %6685 = vmatprep.subr.bf16.mxu1 %v7292_v48  ;;  %6707 = vmatprep.subr.bf16.mxu0 %v7293_v58  ;;  %v7325_v48 = vld [vmem:[%s8724_s14 + $0x3c0] sm:$0xff]  }
0x17ae   : > { %5495 = vmatprep.mubr.bf16.mxu1 %v4341_v61  ;;  %5535 = vmatprep.mubr.bf16.mxu0 %v4343_v29  ;;  %v7326_v29 = vld [vmem:[%s8724_s14 + $0x300] sm:$0xff]  }
0x17af   : > { %5496 = vmatmul.mubr.bf16.vlgmr.msra.gmra.mrb[56].mxu1 %v4340_v1  ;;  %5536 = vmatmul.mubr.bf16.vlgmr.msra.gmra.mrb[60].mxu0 %v4342_v2  ;;  %v7328_v2 = vld [vmem:[%s8724_s14 + $0x348] sm:$0xff]  }
0x17b0   : > { %6686 = vmatpush3.bf16.msra.mxu1 %v7294_v62  ;;  %6708 = vmatpush3.bf16.msra.mxu0 %v7295_v0  ;;  %v7327_v62 = vld [vmem:[%s8724_s14 + $0x380] sm:$0xff]  }
0x17b1   : > { %6687 = vmatprep.subr.bf16.mxu1 %v7296_v3  ;;  %6709 = vmatprep.subr.bf16.mxu0 %v7297_v4  ;;  %v7329_v3 = vld [vmem:[%s8724_s14 + $0x3c8] sm:$0xff]  }
0x17b2   : > { %v7330_v4 = vld [vmem:[%s8724_s14 + $0x308] sm:$0xff]  }
0x17b4   : > { %6688 = vmatpush3.bf16.msra.mxu1 %v7298_v5  ;;  %6710 = vmatpush3.bf16.msra.mxu0 %v7299_v63  ;;  %v7331_v5 = vld [vmem:[%s8724_s14 + $0x388] sm:$0xff]   ;;  %v7332_v63 = vld [vmem:[%s8724_s14 + $0x350] sm:$0xff]  }
0x17b5   : > { %6689 = vmatprep.subr.bf16.mxu1 %v7300_v6  ;;  %6711 = vmatprep.subr.bf16.mxu0 %v7301_v7  ;;  %v7333_v6 = vld [vmem:[%s8724_s14 + $0x3d0] sm:$0xff]  }
0x17b6   : > { %v7334_v7 = vld [vmem:[%s8724_s14 + $0x310] sm:$0xff]  }
0x17b8   : > { %6690 = vmatpush3.bf16.msra.mxu1 %v7302_v8  ;;  %6712 = vmatpush3.bf16.msra.mxu0 %v7303_v53  ;;  %v7335_v8 = vld [vmem:[%s8724_s14 + $0x390] sm:$0xff]   ;;  %v7336_v53 = vld [vmem:[%s8724_s14 + $0x358] sm:$0xff]  }
0x17b9   : > { %6691 = vmatprep.subr.bf16.mxu1 %v7304_v9  ;;  %6713 = vmatprep.subr.bf16.mxu0 %v7305_v10  ;;  %v7337_v9 = vld [vmem:[%s8724_s14 + $0x3d8] sm:$0xff]  }
0x17ba   : > { %v7338_v10 = vld [vmem:[%s8724_s14 + $0x318] sm:$0xff]  }
0x17bc   : > { %6692 = vmatpush3.bf16.msra.mxu1 %v7306_v11  ;;  %6714 = vmatpush3.bf16.msra.mxu0 %v7307_v13  ;;  %v7339_v11 = vld [vmem:[%s8724_s14 + $0x398] sm:$0xff]   ;;  %v7340_v13 = vld [vmem:[%s8724_s14 + $0x360] sm:$0xff]  }
0x17bd   : > { %6693 = vmatprep.subr.bf16.mxu1 %v7308_v14  ;;  %6715 = vmatprep.subr.bf16.mxu0 %v7309_v42  ;;  %v7341_v14 = vld [vmem:[%s8724_s14 + $0x3e0] sm:$0xff]  }
0x17be   : > { %v7342_v42 = vld [vmem:[%s8724_s14 + $0x320] sm:$0xff]  }
0x17c0   : > { %6694 = vmatpush3.bf16.msra.mxu1 %v7310_v15  ;;  %6716 = vmatpush3.bf16.msra.mxu0 %v7311_v16  ;;  %v7343_v15 = vld [vmem:[%s8724_s14 + $0x3a0] sm:$0xff]   ;;  %v7344_v16 = vld [vmem:[%s8724_s14 + $0x368] sm:$0xff]  }
0x17c1   : > { %6695 = vmatprep.subr.bf16.mxu1 %v7312_v19  ;;  %6717 = vmatprep.subr.bf16.mxu0 %v7313_v20  ;;  %v7345_v19 = vld [vmem:[%s8724_s14 + $0x3e8] sm:$0xff]  }
0x17c2   : > { %v7346_v20 = vld [vmem:[%s8724_s14 + $0x328] sm:$0xff]  }
0x17c4   : > { %6696 = vmatpush3.bf16.msra.mxu1 %v7314_v23  ;;  %6718 = vmatpush3.bf16.msra.mxu0 %v7315_v24  ;;  %v7347_v23 = vld [vmem:[%s8724_s14 + $0x3a8] sm:$0xff]   ;;  %v7348_v24 = vld [vmem:[%s8724_s14 + $0x370] sm:$0xff]  }
0x17c5   : > { %6697 = vmatprep.subr.bf16.mxu1 %v7316_v12  ;;  %6719 = vmatprep.subr.bf16.mxu0 %v7317_v26  ;;  %v7349_v12 = vld [vmem:[%s8724_s14 + $0x3f0] sm:$0xff]   ;;  %v3323_v26 = vrot.slane %v9254_v25, %v3290_v17  ;;  %v7352_v17 = vld [vmem:[%s8724_s14 + $0x378] sm:$0xff]  }
0x17c6   : > { %v4190_v40 = vpop.f32.mrb[44].mxu1  ;;  %v4231_v41 = vpop.f32.mrb[48].mxu0 }
0x17c7   : > { %v4191_v57 = vadd.f32 %v4190_v40, %v3307_v27  ;;  %v4232_v43 = vadd.f32 %v4231_v41, %v3315_v28  ;;  %v4192_v44 = vpop.f32.mrb[45].mxu1  ;;  %v4233_v45 = vpop.f32.mrb[49].mxu0  ;;  %v3331_v27 = vrot.slane %v9254_v25, %v3298_v18  ;;  %v3327_v28 = vrot.slane %v9254_v25, %v3294_v21 }
0x17c8   : > { %v4193_v32 = vadd.f32 %v4192_v44, %v3311_v34  ;;  %v4234_v46 = vadd.f32 %v4233_v45, %v3319_v36  ;;  %v4194_v47 = vpop.f32.mrb[46].mxu1  ;;  %v4235_v33 = vpop.f32.mrb[50].mxu0  ;;  %6698 = vmatpush3.bf16.msra.mxu1 %v7318_v37  ;;  %6720 = vmatpush3.bf16.msra.mxu0 %v7319_v38  ;;  %v3335_v34 = vrot.slane %v9254_v25, %v3302_v22  ;;  %v7350_v36 = vld [vmem:[%s8724_s14 + $0x330] sm:$0xff]   ;;  %v7353_v38 = vld [vmem:[%s8724_s14 + $0x3f8] sm:$0xff]  }
0x17c9   : > { %v4328_v50 = vmax.f32 %v4191_v57, 0.0  ;;  %v4330_v51 = vmax.f32 %v4232_v43, 0.0  ;;  %v4195_v54 = vpop.f32.mrb[47].mxu1  ;;  %v4236_v55 = vpop.f32.mrb[51].mxu0  ;;  %6699 = vmatprep.subr.bf16.mxu1 %v7320_v39  ;;  %6721 = vmatprep.subr.bf16.mxu0 %v7321_v35  ;;  %v7351_v37 = vld [vmem:[%s8724_s14 + $0x3b0] sm:$0xff]   ;;  %v7354_v22 = vld [vmem:[%s8724_s14 + $0x338] sm:$0xff]  }
0x17ca   : > { %v4329_v58 = vmax.f32 %v4193_v32, 0.0  ;;  %v4331_v59 = vmax.f32 %v4234_v46, 0.0  ;;  %v7355_v25 = vld [vmem:[%s8724_s14 + $0x3b8] sm:$0xff]   ;;  %s9484_s14 = sld [smem:[#allocation43_spill]] }
0x17cb   : > { %v4344_v0 = vpack.c.bf16 %v4328_v50, %v4328_v50  ;;  %v4346_v1 = vpack.c.bf16 %v4330_v51, %v4330_v51 }
0x17cc   : > { %v4345_v60 = vpack.c.bf16 %v4329_v58, %v4329_v58  ;;  %v4347_v61 = vpack.c.bf16 %v4331_v59, %v4331_v59  ;;  %6700 = vmatpush3.bf16.msra.mxu1 %v7322_v30  ;;  %6722 = vmatpush3.bf16.msra.mxu0 %v7323_v49 }
0x17cd   : > { %6729 = vmatprep.subr.bf16.mxu1 %v7324_v56  ;;  %6751 = vmatprep.subr.bf16.mxu0 %v7325_v48  ;;  %v6396_v48 = vld [vmem:[%s885_s18] ss:$0 sm:$0xff] }
0x17ce   : > { %5575 = vmatprep.mubr.bf16.mxu1 %v4345_v60  ;;  %5615 = vmatprep.mubr.bf16.mxu0 %v4347_v61 }
0x17cf   : > { %5576 = vmatmul.mubr.bf16.vlgmr.msra.gmra.mrb[60].mxu1 %v4344_v0  ;;  %5616 = vmatmul.mubr.bf16.vlgmr.msra.gmra.mrb[64].mxu0 %v4346_v1 }
0x17d0   : > { %6730 = vmatpush3.bf16.msra.mxu1 %v7326_v29  ;;  %6752 = vmatpush3.bf16.msra.mxu0 %v7327_v62  ;;  %p6527_p1 = scmp.ne.s32.totalorder %s9484_s14, 2 }
0x17d1   : > { %6731 = vmatprep.subr.bf16.mxu1 %v7328_v2  ;;  %6753 = vmatprep.subr.bf16.mxu0 %v7329_v3  ;;  %vm8033_vm5 = vmmov (!%p6527_p1), 0  }
0x17d4   : > { %6732 = vmatpush3.bf16.msra.mxu1 %v7330_v4  ;;  %6754 = vmatpush3.bf16.msra.mxu0 %v7331_v5 }
0x17d5   : > { %6733 = vmatprep.subr.bf16.mxu1 %v7332_v63  ;;  %6755 = vmatprep.subr.bf16.mxu0 %v7333_v6 }
0x17d8   : > { %6734 = vmatpush3.bf16.msra.mxu1 %v7334_v7  ;;  %6756 = vmatpush3.bf16.msra.mxu0 %v7335_v8 }
0x17d9   : > { %6735 = vmatprep.subr.bf16.mxu1 %v7336_v53  ;;  %6757 = vmatprep.subr.bf16.mxu0 %v7337_v9 }
0x17dc   : > { %6736 = vmatpush3.bf16.msra.mxu1 %v7338_v10  ;;  %6758 = vmatpush3.bf16.msra.mxu0 %v7339_v11 }
0x17dd   : > { %6737 = vmatprep.subr.bf16.mxu1 %v7340_v13  ;;  %6759 = vmatprep.subr.bf16.mxu0 %v7341_v14 }
0x17e0   : > { %6738 = vmatpush3.bf16.msra.mxu1 %v7342_v42  ;;  %6760 = vmatpush3.bf16.msra.mxu0 %v7343_v15 }
0x17e1   : > { %6739 = vmatprep.subr.bf16.mxu1 %v7344_v16  ;;  %6761 = vmatprep.subr.bf16.mxu0 %v7345_v19 }
0x17e4   : > { %6740 = vmatpush3.bf16.msra.mxu1 %v7346_v20  ;;  %6762 = vmatpush3.bf16.msra.mxu0 %v7347_v23 }
0x17e5   : > { %6741 = vmatprep.subr.bf16.mxu1 %v7348_v24  ;;  %6763 = vmatprep.subr.bf16.mxu0 %v7349_v12 }
0x17e6   : > { %v4272_v39 = vpop.f32.mrb[48].mxu1  ;;  %v4313_v18 = vpop.f32.mrb[52].mxu0 }
0x17e7   : > { %v4273_v35 = vadd.f32 %v4272_v39, %v3323_v26  ;;  %v4314_v40 = vadd.f32 %v4313_v18, %v3331_v27  ;;  %v4274_v41 = vpop.f32.mrb[49].mxu1  ;;  %v4315_v57 = vpop.f32.mrb[53].mxu0 }
0x17e8   : > { %v4275_v43 = vadd.f32 %v4274_v41, %v3327_v28  ;;  %v4316_v21 = vadd.f32 %v4315_v57, %v3335_v34  ;;  %v4276_v44 = vpop.f32.mrb[50].mxu1  ;;  %v4317_v31 = vpop.f32.mrb[54].mxu0  ;;  %6742 = vmatpush3.bf16.msra.mxu1 %v7350_v36  ;;  %6764 = vmatpush3.bf16.msra.mxu0 %v7351_v37 }
0x17e9   : > { %v4332_v45 = vmax.f32 %v4273_v35, 0.0  ;;  %v4334_v32 = vmax.f32 %v4314_v40, 0.0  ;;  %v4277_v46 = vpop.f32.mrb[51].mxu1  ;;  %v4318_v47 = vpop.f32.mrb[55].mxu0  ;;  %6743 = vmatprep.subr.bf16.mxu1 %v7352_v17  ;;  %6765 = vmatprep.subr.bf16.mxu0 %v7353_v38 }
0x17ea   : > { %v4333_v33 = vmax.f32 %v4275_v43, 0.0  ;;  %v4335_v30 = vmax.f32 %v4316_v21, 0.0 }
0x17eb   : > { %v4348_v51 = vpack.c.bf16 %v4332_v45, %v4332_v45  ;;  %v4350_v54 = vpack.c.bf16 %v4334_v32, %v4334_v32 }
0x17ec   : > { %v4349_v49 = vpack.c.bf16 %v4333_v33, %v4333_v33  ;;  %v4351_v50 = vpack.c.bf16 %v4335_v30, %v4335_v30  ;;  %6744 = vmatpush3.bf16.msra.mxu1 %v7354_v22  ;;  %6766 = vmatpush3.bf16.msra.mxu0 %v7355_v25  ;;  %v6525_v30 = vld [vmem:[%s893_s25] ss:$0 sm:$0xff] }
0x17ee   : > { %5655 = vmatprep.mubr.bf16.mxu1 %v4349_v49  ;;  %5695 = vmatprep.mubr.bf16.mxu0 %v4351_v50  ;;  %v6526_v50 = vld [vmem:[%s901_s0] ss:$0 sm:$0xff] }
0x17ef   : > { %5656 = vmatmul.mubr.bf16.vlgmr.msra.gmra.mrb[64].mxu1 %v4348_v51  ;;  %5696 = vmatmul.mubr.bf16.vlgmr.msra.gmra.mrb[68].mxu0 %v4350_v54 }
0x1862   : > { %v6613_v55 = vpop.f32.mrb[52].mxu1  ;;  %v6635_v56 = vpop.f32.mrb[56].mxu0 }
0x1863   : > { %v6614_v58 = vpop.f32.mrb[53].mxu1  ;;  %v6636_v59 = vpop.f32.mrb[57].mxu0 }
0x1864   : > { %v6615_v60 = vadd.f32 %v6614_v58, %v6613_v55  ;;  %v6637_v61 = vadd.f32 %v6636_v59, %v6635_v56  ;;  %v6616_v29 = vpop.f32.mrb[54].mxu1  ;;  %v6638_v62 = vpop.f32.mrb[58].mxu0  ;;  %v5737_v55 = vld [vmem:[#allocation27 + $0x8] sm:$0xff] (!%p6527_p1)  ;;  %v5738_v56 = vld [vmem:[#allocation27 + $0x10] sm:$0xff] (!%p6527_p1)  ;;  %v5739_v59 = vld [vmem:[#allocation27 + $0x18] sm:$0xff] (!%p6527_p1) }
0x1865   : > { %v6617_v0 = vpop.f32.mrb[55].mxu1  ;;  %v6639_v1 = vpop.f32.mrb[59].mxu0  ;;  %v5740_v29 = vld [vmem:[#allocation27 + $0x20] sm:$0xff] (!%p6527_p1)  ;;  %v5741_v62 = vld [vmem:[#allocation27 + $0x28] sm:$0xff] (!%p6527_p1) }
0x1866   : > { %v5418_v2 = vadd.f32 %v6615_v60, %v6396_v48  ;;  %v8032_v48 = vmov (!%p6527_p1), 0.0|0.0   ;;  %v8034_v60 = vmov (!%p6527_p1), 0.0   ;;  %v6990_v0 = vpack.c.bf16 (!%p6527_p1), %v5741_v62, %v5740_v29  ;;  %v5742_v1 = vld [vmem:[#allocation27 + $0x30] sm:$0xff] (!%p6527_p1) }
0x1867   : > { %6983 = vmatprep.subr.bf16.mxu0 (!%p6527_p1), %v8032_v48  ;;  %6977 = vmatprep.mubr.msk.f32.mxu0 (!%p6527_p1), %vm8033_vm5, %v8034_v60 }
0x1868   : > { %v5458_v3 = vadd.f32 %v6637_v61, %v5418_v2  ;;  %v6987_v61 = vpack.c.bf16 (!%p6527_p1), %v5739_v59, %v5738_v56  ;;  %v5743_v2 = vld [vmem:[#allocation27 + $0x38] sm:$0xff] (!%p6527_p1) }
0x1882   : > { %v6657_v4 = vpop.f32.mrb[56].mxu1  ;;  %v6679_v5 = vpop.f32.mrb[60].mxu0 }
0x1883   : > { %v6658_v63 = vpop.f32.mrb[57].mxu1  ;;  %v6680_v6 = vpop.f32.mrb[61].mxu0 }
0x1884   : > { %v6659_v7 = vadd.f32 %v6658_v63, %v6657_v4  ;;  %v6681_v8 = vadd.f32 %v6680_v6, %v6679_v5  ;;  %v6660_v53 = vpop.f32.mrb[58].mxu1  ;;  %v6682_v9 = vpop.f32.mrb[62].mxu0  ;;  %v5744_v4 = vld [vmem:[#allocation27 + $0x40] sm:$0xff] (!%p6527_p1)  ;;  %v5745_v5 = vld [vmem:[#allocation27 + $0x48] sm:$0xff] (!%p6527_p1)  ;;  %v5746_v6 = vld [vmem:[#allocation27 + $0x50] sm:$0xff] (!%p6527_p1) }
0x1885   : > { %v6661_v10 = vpop.f32.mrb[59].mxu1  ;;  %v6683_v11 = vpop.f32.mrb[63].mxu0  ;;  %v6996_v63 = vpack.c.bf16 (!%p6527_p1), %v5745_v5, %v5744_v4  ;;  %v5748_v53 = vld [vmem:[#allocation27 + $0x60] sm:$0xff] (!%p6527_p1)  ;;  %v5749_v9 = vld [vmem:[#allocation27 + $0x68] sm:$0xff] (!%p6527_p1) }
0x1886   : > { %v5498_v13 = vadd.f32 %v6659_v7, %v5458_v3  ;;  %v6993_v3 = vpack.c.bf16 (!%p6527_p1), %v5743_v2, %v5742_v1  ;;  %v5747_v7 = vld [vmem:[#allocation27 + $0x58] sm:$0xff] (!%p6527_p1)  ;;  %v7002_v10 = vpack.c.bf16 (!%p6527_p1), %v5749_v9, %v5748_v53  ;;  %v5750_v11 = vld [vmem:[#allocation27 + $0x70] sm:$0xff] (!%p6527_p1) }
0x1888   : > { %v5538_v14 = vadd.f32 %v6681_v8, %v5498_v13  ;;  %v6999_v8 = vpack.c.bf16 (!%p6527_p1), %v5747_v7, %v5746_v6  ;;  %v5751_v13 = vld [vmem:[#allocation27 + $0x78] sm:$0xff] (!%p6527_p1) }
0x18a2   : > { %v6701_v42 = vpop.f32.mrb[60].mxu1  ;;  %v6723_v15 = vpop.f32.mrb[64].mxu0 }
0x18a3   : > { %v6702_v16 = vpop.f32.mrb[61].mxu1  ;;  %v6724_v19 = vpop.f32.mrb[65].mxu0 }
0x18a4   : > { %v6703_v20 = vadd.f32 %v6702_v16, %v6701_v42  ;;  %v6725_v23 = vadd.f32 %v6724_v19, %v6723_v15  ;;  %v6704_v24 = vpop.f32.mrb[62].mxu1  ;;  %v6726_v12 = vpop.f32.mrb[66].mxu0  ;;  %v6528_v42 = vld [vmem:[#allocation29] ss:$0 sm:$0xff] (!%p6527_p1) }
0x18a5   : > { %v6705_v26 = vpop.f32.mrb[63].mxu1  ;;  %v6727_v27 = vpop.f32.mrb[67].mxu0 }
0x18a6   : > { %v5578_v28 = vadd.f32 %v6703_v20, %v5538_v14  ;;  %v7005_v14 = vpack.c.bf16 (!%p6527_p1), %v5751_v13, %v5750_v11 }
0x18a8   : > { %v5618_v34 = vadd.f32 %v6725_v23, %v5578_v28 }
0x18c2   : > { %v6745_v36 = vpop.f32.mrb[64].mxu1  ;;  %v6767_v37 = vpop.f32.mrb[68].mxu0 }
0x18c3   : > { %v6746_v17 = vpop.f32.mrb[65].mxu1  ;;  %v6768_v38 = vpop.f32.mrb[69].mxu0 }
0x18c4   : > { %v6747_v39 = vadd.f32 %v6746_v17, %v6745_v36  ;;  %v6769_v18 = vadd.f32 %v6768_v38, %v6767_v37  ;;  %v6748_v35 = vpop.f32.mrb[66].mxu1  ;;  %v6770_v40 = vpop.f32.mrb[70].mxu0 }
0x18c5   : > { %v6749_v41 = vpop.f32.mrb[67].mxu1  ;;  %v6771_v57 = vpop.f32.mrb[71].mxu0 }
0x18c6   : > { %v5658_v43 = vadd.f32 %v6747_v39, %v5618_v34 }
0x18c8   : > { %v5698_v21 = vadd.f32 %v6769_v18, %v5658_v43 }
0x18ca   : > { %v5703_v44 = vadd.f32 %v5698_v21, %v9028_v52  ;;  %v5736_v52 = vld [vmem:[#allocation27] sm:$0xff] (!%p6527_p1) }
0x18cb   : > { %v6984_v58 = vpack.c.bf16 (!%p6527_p1), %v5737_v55, %v5736_v52 }
0x18cc   : > { %5706 = vadd.xlane.f32.xlu0 %v5703_v44 }
0x18cd   : > { %6985 = vmatpush3.bf16.msra.mxu0 (!%p6527_p1), %v6984_v58 }
0x18ce   : > { %6986 = vmatprep.subr.bf16.mxu0 (!%p6527_p1), %v8032_v48 }
0x18d1   : > { %6988 = vmatpush3.bf16.msra.mxu0 (!%p6527_p1), %v6987_v61 }
0x18d2   : > { %6989 = vmatprep.subr.bf16.mxu0 (!%p6527_p1), %v8032_v48 }
0x18d5   : > { %6991 = vmatpush3.bf16.msra.mxu0 (!%p6527_p1), %v6990_v0 }
0x18d6   : > { %6992 = vmatprep.subr.bf16.mxu0 (!%p6527_p1), %v8032_v48 }
0x18d9   : > { %6994 = vmatpush3.bf16.msra.mxu0 (!%p6527_p1), %v6993_v3 }
0x18da   : > { %6995 = vmatprep.subr.bf16.mxu0 (!%p6527_p1), %v8032_v48 }
0x18dd   : > { %6997 = vmatpush3.bf16.msra.mxu0 (!%p6527_p1), %v6996_v63 }
0x18de   : > { %6998 = vmatprep.subr.bf16.mxu0 (!%p6527_p1), %v8032_v48 }
0x18e1   : > { %7000 = vmatpush3.bf16.msra.mxu0 (!%p6527_p1), %v6999_v8 }
0x18e2   : > { %7001 = vmatprep.subr.bf16.mxu0 (!%p6527_p1), %v8032_v48 }
0x18e5   : > { %7003 = vmatpush3.bf16.msra.mxu0 (!%p6527_p1), %v7002_v10 }
0x18e6   : > { %7004 = vmatprep.subr.bf16.mxu0 (!%p6527_p1), %v8032_v48 }
0x18e9   : > { %7006 = vmatpush3.bf16.msra.mxu0 (!%p6527_p1), %v7005_v14 }
0x1959   : > { %v5707_v31 = vpop.xlane.xlu0 %5706 }
0x195a   : > { %v5708_v22 = vmul.f32 0.0078125, %v5707_v31 }
0x195c   : > { %v5709_v25 = vsub.f32 %v5703_v44, %v5708_v22 }
0x195e   : > { %v5710_v45 = vmul.f32 %v5709_v25, %v5709_v25 }
0x1960   : > { %5711 = vadd.xlane.f32.xlu0 %v5710_v45 }
0x19ed   : > { %v5712_v32 = vpop.xlane.xlu0 %5711 }
0x19ee   : > { %v5713_v46 = vmul.f32 0.0078125, %v5712_v32 }
0x19f0   : > { %v5714_v47 = vadd.f32 1e-05, %v5713_v46 }
0x19f2   : > { %7390 = vrsqrt.f32 %v5714_v47 }
0x19fc   : > { %v7391_v33 = vpop.eup %7390 }
0x19fd   : > { %v5716_v49 = vmul.f32 %v7391_v33, %v5709_v25  ;;  %5735 = sbr.rel (%p6527_p1) target bundleno = 6902 (0x1af6), region = 164 }
0x19ff   : > { %v5723_v51 = vmul.f32 %v6525_v30, %v5716_v49 }
0x1a01   : > { %v5730_v54 = vadd.f32 %v6526_v50, %v5723_v51 }
0x1a03   : > { %5731 = vst [vmem:[#allocation2] sm:$0xff] %v5730_v54  ;;  %6978 = vmatmul.mubr.f32.vlgmr.msra.gmra.mrb[0].mxu0 (!%p6527_p1), %v5730_v54 }
0x1ad6   : > { %v5825_v15 = vpop.f32.mrb[0].mxu0 }
0x1ad7   : > { %v5826_v16 = vadd.f32 %v6528_v42, %v5825_v15  ;;  %v6979_v19 = vpop.f32.mrb[1].mxu0 }
0x1ad9   : > { %v5829_v20 = vsub.f32 0.0, %v5826_v16 }
0x1adb   : > { %v5830_v23 = vmul.f32 1.442695, %v5829_v20 }
0x1add   : > { %7393 = vpow2.f32 %v5830_v23 }
0x1ae7   : > { %v7394_v24 = vpop.eup %7393 }
0x1ae8   : > { %v5832_v12 = vadd.f32 1.0, %v7394_v24 }
0x1aea   : > { %7395 = vrcp.f32 %v5832_v12 }
0x1af4   : > { %v7396_v26 = vpop.eup %7395 }
0x1af5   : > { %5835 = vst [vmem:[#allocation30] sm:$0xff] %v7396_v26 }
0x1af6 PF: > { %s9485_s19 = sld [smem:[#allocation43_spill]]  ;;  %s8035_s25 = smov [#allocation30]  }
0x1af7   : > { %s5843_s18 = sshll.u32 %s8035_s25, 4  ;;  %s5844_s18 = int_to_ptr.vmem [resolvable:$true] %s5843_s18 }
0x1af8   : > { %s7897_s29 = scalar_lea.vmem %s5844_s18, 128  ;;  %p7904_p0 = scmp.lt.s32.totalorder %s5844_s18, %s5844_s18 }
0x1af9   : > { %p7898_p12 = scmp.ne.s32.totalorder %s5844_s18, %s7897_s29  ;;  %p7905_p8 = scmp.lt.s32.totalorder %s7897_s29, %s7897_s29 }
0x1afb   : > { %p7906_p5 = por %p7905_p8, %p7904_p0 }
0x1afc   : > { %p7125_p10 = scmp.eq.s32.totalorder %s9485_s19, 2 }
0x1afe   : > { %p7899_p2 = pnand %p7898_p12, %p7125_p10 }
0x1b00   : > { %p7900_p13 = pneg %p7899_p2 }
0x1b02   : > { %p7907_p6 = pnand %p7906_p5, %p7900_p13 }
0x1b04   : > { %7910 = shalt.err (!%p7907_p6)
}
0x1b05   : > { %s9486_s28 = sld [smem:[#allocation57_spill]] }
0x1b0b   : > { %s7911_s27 = scalar_lea.hbm %s9486_s28, 128 }
0x1b0c   : > { %p7912_p3 = scmp.ne.s32.totalorder %s9486_s28, %s7911_s27  ;;  %p7917_p7 = scmp.lt.u32.totalorder %s7911_s27, %s9486_s28 }
0x1b0e   : > { %p7913_p4 = pnand %p7912_p3, %p7125_p10 }
0x1b10   : > { %p7914_p9 = pneg %p7913_p4 }
0x1b12   : > { %p7919_p11 = pnand %p7917_p7, %p7914_p9 }
0x1b14   : > { %7922 = shalt.err (!%p7919_p11)
}
0x1b15   : > { %7058 = dma.vmem_to_hbm [thread:$0]  (%p7125_p10), %s5844_s18, 128, %s9486_s28, [#allocation5]  }
0x1b16   : > { %7976 = dma.done.wait (%p7125_p10), [#allocation5], 128  }
0x1b17   : > { %7978 = vsyncadd (%p7125_p10), [#allocation5], 4294967168 }
0x1b18 PF: > { %s9487_s27 = sld [smem:[#allocation44_spill]]  ;;  %s9488_s24 = sld [smem:[#allocation41_spill]] }
0x1b19   : > { %s9489_s25 = sld [smem:[#allocation42_spill]]  ;;  %s9490_s26 = sld [smem:[#allocation45_spill]] }
0x1b1e   : > { %p46_p1 = scmp.ge.s32.totalorder %s9487_s27, 5  }
0x1b20   :  { %48 = sbr.rel (!%p46_p1) target bundleno = 28 (0x1c), region = 285 }
0x1b27   :  { %5856 = vsyncpa [#allocation4], 1 }
0x1b28   :  { %5858 = vsyncpa [#allocation4 + $0x1], 1 }
0x1b29   :  { %5859 = vsyncpa [#allocation7], 1 }
0x1b2a   :  { %5860 = vsyncpa [#allocation10], 1 }
0x1b2b   :  { %5862 = vsyncpa [#allocation10 + $0x1], 1 }
0x1b2c   :  { %5863 = vsyncpa [#allocation13], 1 }
0x1b2d   :  { %5865 = vsyncpa [#allocation13 + $0x1], 1 }
0x1b2e   :  { %5866 = vsyncpa [#allocation16], 1 }
0x1b2f   :  { %5868 = vsyncpa [#allocation16 + $0x1], 1 }
0x1b30   :  { %5869 = vsyncpa [#allocation19], 1 }
0x1b31   :  { %5871 = vsyncpa [#allocation19 + $0x1], 1 }
0x1b32   :  { %5872 = vsyncpa [#allocation22], 1 }
0x1b33   :  { %5874 = vsyncpa [#allocation22 + $0x1], 1 }
0x1b34   :  { %5875 = vsyncpa [#allocation25], 1 }
0x1b35   :  { %5877 = vsyncpa [#allocation25 + $0x1], 1 }
0x1b36   :  { %5878 = vsyncpa [#allocation28], 1 }
0x1b37   :  { %5879 = vsyncpa [#allocation5], 1 }
0x1b38   :  { %5881 = vsyncpa [#allocation5 + $0x1], 1 }

</bundles_post_ra>
